<compile_context>
chip_gen: v6e
topology: v6e:2x2x1
jax: 0.10.0
libtpu: 0.0.40
codegen_flags: <defaults>
</compile_context>

<pallas_src>
import functools
import math
from typing import NamedTuple

import jax
import jax.numpy as jnp
from jax.experimental import pallas as pl
from jax.experimental.pallas import tpu as pltpu


# ----------------------------------------------------------------------------
# generation-aware VMEM budget / row tiling
# ----------------------------------------------------------------------------
def _tpu_generation_budget():
    """(vmem_limit_bytes, row_tile): 96MiB/1024 on v5e-v6e, 48MiB/512 on v7x."""
    phys = 64 * 1024 * 1024  # conservative fallback (v7x physical)
    try:
        info = pltpu.get_tpu_info()
        for attr in ("vmem_capacity_bytes", "vmem_size_bytes", "vmem_bytes"):
            v = getattr(info, attr, None)
            if v:
                phys = int(v)
                break
    except Exception:
        pass
    if phys >= 96 * 1024 * 1024:          # v5e / v6e: 128 MiB physical
        return 96 * 1024 * 1024, 1024
    return 48 * 1024 * 1024, 512          # v7x: 64 MiB physical

VMEM_LIMIT, ROW_TILE = _tpu_generation_budget()


def _round_up(n, m):
    return ((n + m - 1) // m) * m


def _row_tile(n):
    """Largest multiple-of-8 tile <= ROW_TILE that divides n (n % 8 == 0)."""
    tm = min(ROW_TILE, n)
    tm -= tm % 8
    while n % tm:
        tm -= 8
    return tm


def _pad_rows(x2d, n_pad):
    n = x2d.shape[0]
    return x2d if n == n_pad else jnp.pad(x2d, ((0, n_pad - n), (0, 0)))


def _cparams(n_parallel):
    return pltpu.CompilerParams(dimension_semantics=("parallel",) * n_parallel,
                                vmem_limit_bytes=VMEM_LIMIT)


def _ln(x, g, b):
    mu = jnp.mean(x, axis=-1, keepdims=True)
    var = jnp.mean(jnp.square(x - mu), axis=-1, keepdims=True)
    return (x - mu) * jax.lax.rsqrt(var + 1e-5) * g + b


# ----------------------------------------------------------------------------
# Pallas kernels
# ----------------------------------------------------------------------------
def _linear_kernel(x_ref, w_ref, b_ref, o_ref):
    y = jnp.dot(x_ref[...].astype(jnp.bfloat16), w_ref[...],
                preferred_element_type=jnp.float32)
    o_ref[...] = y + b_ref[...]


def linear(x2d, w, b):
    """y = x @ w + b.  x: [N, Din] f32, w: [Din, Dout] bf16 (kept resident)."""
    n, d_in = x2d.shape
    d_out = w.shape[1]
    n_pad = _round_up(n, 8)
    tm = _row_tile(n_pad)
    out = pl.pallas_call(
        _linear_kernel,
        out_shape=jax.ShapeDtypeStruct((n_pad, d_out), jnp.float32),
        grid=(n_pad // tm,),
        in_specs=[pl.BlockSpec((tm, d_in), lambda i: (i, 0)),
                  pl.BlockSpec((d_in, d_out), lambda i: (0, 0)),
                  pl.BlockSpec((1, d_out), lambda i: (0, 0))],
        out_specs=pl.BlockSpec((tm, d_out), lambda i: (i, 0)),
        compiler_params=_cparams(1),
    )(_pad_rows(x2d, n_pad), w, b)
    return out[:n] if n_pad != n else out


def _ffn_kernel(x_ref, g_ref, b_ref, w1_ref, b1_ref, w2_ref, b2_ref,
                g2_ref, bf_ref, o_ref, *, rs, final_ln):
    x = x_ref[...]
    h = _ln(x, g_ref[...], b_ref[...])
    h = jnp.dot(h.astype(jnp.bfloat16), w1_ref[...],
                preferred_element_type=jnp.float32) + b1_ref[...]
    h = h * jax.nn.sigmoid(h)                                  # SiLU in f32
    y = jnp.dot(h.astype(jnp.bfloat16), w2_ref[...],
                preferred_element_type=jnp.float32) + b2_ref[...]
    y = x + rs * y                                             # fused residual
    if final_ln:                                               # fused block LN
        y = _ln(y, g2_ref[...], bf_ref[...])
    o_ref[...] = y


def ffn_residual(x2d, p, ln2, rs, final_ln):
    n, d = x2d.shape                      # n = B*T_pad, multiple of 8, no padding
    e_d = p["w1"].shape[1]
    tm = _row_tile(n)
    const = lambda i: (0, 0)
    row = pl.BlockSpec((tm, d), lambda i: (i, 0))
    return pl.pallas_call(
        functools.partial(_ffn_kernel, rs=rs, final_ln=final_ln),
        out_shape=jax.ShapeDtypeStruct((n, d), jnp.float32),
        grid=(n // tm,),
        in_specs=[row,
                  pl.BlockSpec((1, d), const), pl.BlockSpec((1, d), const),
                  pl.BlockSpec((d, e_d), const), pl.BlockSpec((1, e_d), const),
                  pl.BlockSpec((e_d, d), const), pl.BlockSpec((1, d), const),
                  pl.BlockSpec((1, d), const), pl.BlockSpec((1, d), const)],
        out_specs=row,
        compiler_params=_cparams(1),
    )(x2d, p["ln_g"], p["ln_b"], p["w1"], p["b1"], p["w2"], p["b2"],
      ln2[0], ln2[1])


def _qkv_kernel(x_ref, pe_ref, g_ref, b_ref, w_ref, bias_ref,
                q_ref, k_ref, v_ref, *, D):
    h = _ln(x_ref[0], g_ref[...], b_ref[...]) + pe_ref[...]    # LN then +PE
    y = jnp.dot(h.astype(jnp.bfloat16), w_ref[...],           # fused [D,3D]
                preferred_element_type=jnp.float32) + bias_ref[...]
    # lane-aligned slices (D is a multiple of 128); bf16 handoff halves HBM
    q_ref[0] = y[:, :D].astype(jnp.bfloat16)
    k_ref[0] = y[:, D:2 * D].astype(jnp.bfloat16)
    v_ref[0] = y[:, 2 * D:].astype(jnp.bfloat16)


def qkv_project(x3d, pe, p):
    """x3d: [B, T_pad, D] f32; pe: [T_pad, D] f32 (NOT tiled over batch)."""
    B, Tp, D = x3d.shape
    tt = _row_tile(Tp)
    row3 = pl.BlockSpec((1, tt, D), lambda b, t: (b, t, 0))
    const = lambda b, t: (0, 0)
    q, k, v = pl.pallas_call(
        functools.partial(_qkv_kernel, D=D),
        out_shape=tuple(jax.ShapeDtypeStruct((B, Tp, D), jnp.bfloat16)
                        for _ in range(3)),
        grid=(B, Tp // tt),
        in_specs=[row3,
                  pl.BlockSpec((tt, D), lambda b, t: (t, 0)),   # shared PE
                  pl.BlockSpec((1, D), const), pl.BlockSpec((1, D), const),
                  pl.BlockSpec((D, 3 * D), const),
                  pl.BlockSpec((1, 3 * D), const)],
        out_specs=(row3, row3, row3),
        compiler_params=_cparams(2),
    )(x3d, pe, p["ln_g"], p["ln_b"], p["wqkv"], p["bqkv"])
    return q, k, v


def _attn_kernel(len_ref, q_ref, k_ref, v_ref, r_ref, o_ref, *, scale):
    """Masked attention + residual for one (batch, head) grid point.
    Lengths arrive via scalar prefetch (SMEM); scores are [T, T] per head and
    the head output is written directly into its dk-wide lane slice."""
    b = pl.program_id(0)
    length = len_ref[b]
    q = q_ref[0]                                  # [T, dk] bf16
    k = k_ref[0]
    v = v_ref[0]
    T = q.shape[0]
    # NOTE: dk=128 matches v5e's MXU exactly; it half-fills v6e/v7x's 256-wide
    # MXU (accepted — dk comes from the model config).
    s = jax.lax.dot_general(q, k, (((1,), (1,)), ((), ())),
                            preferred_element_type=jnp.float32) * scale
    rows = jax.lax.broadcasted_iota(jnp.int32, (T, T), 0)
    cols = jax.lax.broadcasted_iota(jnp.int32, (T, T), 1)
    valid = (rows < length) & (cols < length)
    s = jnp.where(valid, s, -1e15)                # masking_value = -1e15
    s = s - jnp.max(s, axis=-1, keepdims=True)
    p = jnp.exp(s)
    p = p * (1.0 / jnp.sum(p, axis=-1, keepdims=True))   # exact reciprocal
    pv = jnp.dot(p.astype(jnp.bfloat16), v, preferred_element_type=jnp.float32)
    # concat-free: residual slice + per-head result straight into the output
    o_ref[0] = r_ref[0] + pv


def attention_residual(q, k, v, res, lengths, n_heads):
    # TODO(synk): for long sequences (esp. v7x, 64 MiB VMEM) switch to a
    # KV-tiled flash-style grid with online-softmax m/l/acc scratch.
    B, Tp, D = q.shape
    dk = D // n_heads
    blk = pl.BlockSpec((1, Tp, dk), lambda b, h, lens: (b, 0, h))
    gs = pltpu.PrefetchScalarGridSpec(
        num_scalar_prefetch=1, grid=(B, n_heads),
        in_specs=[blk, blk, blk, blk], out_specs=blk)
    return pl.pallas_call(
        functools.partial(_attn_kernel, scale=1.0 / math.sqrt(dk)),
        out_shape=jax.ShapeDtypeStruct((B, Tp, D), jnp.float32),
        grid_spec=gs,
        compiler_params=_cparams(2),
    )(lengths, q, k, v, res)


def _conv_module_kernel(x_ref, g_ref, b_ref, w1_ref, b1_ref, dww_ref, dwb_ref,
                        bns_ref, bnb_ref, w2_ref, b2_ref, o_ref, scr_ref,
                        *, K, left, T_valid):
    x = x_ref[0]                                   # [T_pad, D] f32
    Tp, D = x.shape
    Tscr = scr_ref.shape[0]
    h = _ln(x, g_ref[...], b_ref[...])
    # fused pointwise conv1 + GLU as one [D, 2D] matmul + lane-aligned slices
    y = jnp.dot(h.astype(jnp.bfloat16), w1_ref[...],
                preferred_element_type=jnp.float32) + b1_ref[...]
    glu = y[:, :D] * jax.nn.sigmoid(y[:, D:])
    # Rows >= T_valid (artificial T padding) must behave like the Conv1d 'same'
    # zero padding; rows in [length, T_valid) keep their computed values, as in
    # the torch reference (padding frames participate in the depthwise conv).
    row = jax.lax.broadcasted_iota(jnp.int32, (Tp, 1), 0)
    glu = jnp.where(row < T_valid, glu, 0.0)
    # VMEM scratch instead of a per-step concatenate copy: valid rows written,
    # tail rows (small, <= K+7) re-zeroed each step so "parallel" stays safe
    # under megacore sharding (no cross-iteration scratch state).
    scr_ref[pl.ds(0, Tp), :] = glu
    if Tscr > Tp:
        scr_ref[pl.ds(Tp, Tscr - Tp), :] = jnp.zeros((Tscr - Tp, D), jnp.float32)
    buf = scr_ref[...]
    w = dww_ref[...]                               # [K, D]
    acc = jnp.zeros_like(buf)
    for kk in range(K):                            # static tap unroll (XLU roll)
        acc = acc + pltpu.roll(buf, shift=(left - kk) % Tscr, axis=0) * w[kk:kk + 1, :]
    z = acc[:Tp, :] + dwb_ref[...]
    z = z * bns_ref[...] + bnb_ref[...]            # BatchNorm1d (eval, folded)
    z = z * jax.nn.sigmoid(z)                      # SiLU
    z = jnp.dot(z.astype(jnp.bfloat16), w2_ref[...],
                preferred_element_type=jnp.float32) + b2_ref[...]
    o_ref[0] = x + z                               # fused residual


def conv_module_residual(x, p, kernel_size, t_valid):
    # TODO(synk): for very long T, tile the time axis with a (K-1) halo instead
    # of one whole sequence per grid step.
    B, Tp, D = x.shape
    K = kernel_size
    left = (K - 1) // 2
    Tscr = _round_up(Tp + K - 1, 8)
    blk = pl.BlockSpec((1, Tp, D), lambda b: (b, 0, 0))
    const = lambda b: (0, 0)
    vec = pl.BlockSpec((1, D), const)
    mat = pl.BlockSpec((D, D), const)
    return pl.pallas_call(
        functools.partial(_conv_module_kernel, K=K, left=left, T_valid=t_valid),
        out_shape=jax.ShapeDtypeStruct((B, Tp, D), jnp.float32),
        grid=(B,),
        in_specs=[blk, vec, vec,
                  pl.BlockSpec((D, 2 * D), const), pl.BlockSpec((1, 2 * D), const),
                  pl.BlockSpec((K, D), const), vec, vec, vec, mat, vec],
        out_specs=blk,
        scratch_shapes=[pltpu.VMEM((Tscr, D), jnp.float32)],
        compiler_params=_cparams(1),
    )(x, p["ln_g"], p["ln_b"], p["pw1_w"], p["pw1_b"], p["dw_w"], p["dw_b"],
      p["bn_scale"], p["bn_shift"], p["pw2_w"], p["pw2_b"])


# ----------------------------------------------------------------------------
# JAX glue (im2col, length bookkeeping, positional encoding, block wiring)
# ----------------------------------------------------------------------------
def conv1d_strided(x, w, b, kernel_size, stride):
    """Strided valid Conv1d (channels-last) as im2col + tiled Pallas matmul.
    im2col taps use strided lax slices (no gathers)."""
    B, M, Cin = x.shape
    K = kernel_size
    T_out = (M - K) // stride + 1
    taps = [jax.lax.slice(x, (0, k, 0),
                          (B, k + (T_out - 1) * stride + 1, Cin),
                          (1, stride, 1)) for k in range(K)]
    frames = jnp.stack(taps, axis=2)               # [B, T_out, K, Cin]
    y = linear(frames.reshape(B * T_out, K * Cin), w, b)
    return y.reshape(B, T_out, -1)


def calc_data_len(result_len, pad_len, data_len, kernel_size, stride):
    inp_len = data_len + pad_len
    convolved_pad_mask = pad_len >= kernel_size
    unconvolved = (inp_len - kernel_size) % stride
    undiscarded_pad_mask = unconvolved < pad_len
    convolved = pad_len - unconvolved
    new_pad_len = (convolved - kernel_size) // stride + 1
    new_pad_len = jnp.where(convolved_pad_mask & undiscarded_pad_mask, new_pad_len, 0)
    return result_len - new_pad_len


def positional_encoding(T, D):
    pos = jnp.arange(T, dtype=jnp.float32)[:, None]
    feat = jnp.arange(D // 2, dtype=jnp.float32)[None, :]
    denom = jnp.power(10000.0, 2.0 * feat / D)
    pe = jnp.zeros((T, D), dtype=jnp.float32)
    pe = pe.at[:, 0::2].set(jnp.sin(pos / denom))
    pe = pe.at[:, 1::2].set(jnp.cos(pos / denom))
    return pe


def conformer_block(x, lengths, pe, p, cfg, t_valid):
    B, Tp, D = x.shape
    rs = cfg.res_scaling
    out = ffn_residual(x.reshape(B * Tp, D), p["ff1"], (p["ln_g"], p["ln_b"]),
                       rs, final_ln=False).reshape(B, Tp, D)
    # MHSA module: LN + pos-enc + fused QKV projection (bf16 handoff), then
    # (B, H)-gridded attention with fused residual (lengths via scalar prefetch).
    q, k, v = qkv_project(out, pe, p["mhsa"])
    out = attention_residual(q, k, v, out, lengths, cfg.h)
    out = conv_module_residual(out, p["conv"], cfg.kernel_size, t_valid)
    out = ffn_residual(out.reshape(B * Tp, D), p["ff2"], (p["ln_g"], p["ln_b"]),
                       rs, final_ln=True).reshape(B, Tp, D)
    return out


def conformer_encoder(x, mask, params, cfg):
    """x: [B, M, in_features]; mask: [B, M] bool (True = not padding)."""
    B, M, _ = x.shape
    D = cfg.d_model
    lengths = jnp.sum(mask.astype(jnp.int32), axis=-1)

    # --- ConformerPreNet: strided Conv1d sub-sampling + Linear ---
    out = x
    for conv_p in params["prenet"]["convs"]:
        cur_len = out.shape[1]
        pad_len = cur_len - lengths
        out = conv1d_strided(out, conv_p["w"], conv_p["b"],
                             cfg.ss_kernel_size, cfg.ss_stride)
        lengths = calc_data_len(out.shape[1], pad_len, lengths,
                                cfg.ss_kernel_size, cfg.ss_stride)
    T = out.shape[1]
    out = linear(out.reshape(B * T, D), params["prenet"]["fc_w"],
                 params["prenet"]["fc_b"]).reshape(B, T, D)

    # Pad the time axis ONCE to a multiple of 8; every conformer block then
    # runs on [B, T_pad, D] with no per-kernel pad/slice round-trips.  Rows
    # >= T are junk that never contaminates valid rows (masked as attention
    # keys by lengths, zeroed before the depthwise conv) and are sliced off
    # at the end.  Mask is built from the new lengths against the static
    # prenet length T (torch uses lengths.max(), which equals T when at least
    # one sequence is unpadded) -- the whole encoder stays jittable.
    T_pad = _round_up(T, 8)
    if T_pad != T:
        out = jnp.pad(out, ((0, 0), (0, T_pad - T), (0, 0)))
    lengths = lengths.astype(jnp.int32)
    pe = positional_encoding(T_pad, D)             # single [T_pad, D], shared
    for bp in params["blocks"]:
        out = conformer_block(out, lengths, pe, bp, cfg, T)
    return out[:, :T, :], lengths


class ConformerConfig(NamedTuple):
    d_model: int
    n_conf_layers: int
    ff_expansion_factor: int
    h: int
    kernel_size: int
    ss_kernel_size: int
    ss_stride: int
    ss_num_conv_layers: int
    in_features: int
    res_scaling: float
    p_dropout: float


# ----------------------------------------------------------------------------
# Deterministic parameter init (synthetic; shapes follow the module __init__)
# ----------------------------------------------------------------------------
def init_params(key, cfg):
    D, F, e = cfg.d_model, cfg.in_features, cfg.ff_expansion_factor
    Kss, K = cfg.ss_kernel_size, cfg.kernel_size
    keys = iter(jax.random.split(key, 1024))

    def w(shape, scale=0.02):          # matmul weights stored in bf16
        return (scale * jax.random.normal(next(keys), shape, jnp.float32)
                ).astype(jnp.bfloat16)

    def wf32(shape, scale=0.02):
        return scale * jax.random.normal(next(keys), shape, jnp.float32)

    zeros = lambda s: jnp.zeros(s, jnp.float32)
    ones = lambda s: jnp.ones(s, jnp.float32)

    prenet = {
        "convs": [{"w": w((Kss * (F if i == 0 else D), D)), "b": zeros((1, D))}
                  for i in range(cfg.ss_num_conv_layers)],
        "fc_w": w((D, D)), "fc_b": zeros((1, D)),
    }

    def ff_params():
        return {"ln_g": ones((1, D)), "ln_b": zeros((1, D)),
                "w1": w((D, e * D)), "b1": zeros((1, e * D)),
                "w2": w((e * D, D)), "b2": zeros((1, D))}

    blocks = []
    for _ in range(cfg.n_conf_layers):
        bn_gamma, bn_beta = ones((1, D)), zeros((1, D))
        bn_mean, bn_var = zeros((1, D)), ones((1, D))       # eval running stats
        inv_std = 1.0 / jnp.sqrt(bn_var + 1e-5)
        blocks.append({
            "ff1": ff_params(),
            "mhsa": {"ln_g": ones((1, D)), "ln_b": zeros((1, D)),
                     "wqkv": w((D, 3 * D)), "bqkv": zeros((1, 3 * D))},
            "conv": {"ln_g": ones((1, D)), "ln_b": zeros((1, D)),
                     "pw1_w": w((D, 2 * D)), "pw1_b": zeros((1, 2 * D)),  # GLU
                     "dw_w": wf32((K, D)), "dw_b": zeros((1, D)),
                     "bn_scale": bn_gamma * inv_std,
                     "bn_shift": bn_beta - bn_mean * bn_gamma * inv_std,
                     "pw2_w": w((D, D)), "pw2_b": zeros((1, D))},
            "ff2": ff_params(),
            "ln_g": ones((1, D)), "ln_b": zeros((1, D)),
        })
    return {"prenet": prenet, "blocks": blocks}


# ----------------------------------------------------------------------------
# Demo
# ----------------------------------------------------------------------------
if __name__ == "__main__":
    cfg = ConformerConfig(
        d_model=256,            # multiple of 128 -> lane-dense tiles
        n_conf_layers=2,
        ff_expansion_factor=2,
        h=2,                    # dk = 128 -> lane-aligned per-head blocks
        kernel_size=7,
        ss_kernel_size=3,
        ss_stride=2,
        ss_num_conv_layers=2,
        in_features=80,
        res_scaling=0.5,
        p_dropout=0.1)          # dropout unused: eval-mode forward

    B, M = 2, 32
    key = jax.random.PRNGKey(0)
    k_x, k_p = jax.random.split(key)
    x = jax.random.normal(k_x, (B, M, cfg.in_features), dtype=jnp.float32)
    lengths_in = jnp.array([32, 20], dtype=jnp.int32)
    mask = jnp.arange(M)[None, :] < lengths_in[:, None]   # [B, M] bool

    params = init_params(k_p, cfg)
    encode = jax.jit(conformer_encoder, static_argnums=(3,))
    out, lengths = encode(x, mask, params, cfg)
    out, lengths = jax.block_until_ready((out, lengths))

    assert out.shape == (B, 7, cfg.d_model), out.shape
    assert lengths.shape == (B,)
    assert bool(jnp.all(jnp.isfinite(out)))
    print("KERNEL_OK")
</pallas_src>

<mosaic_0001>
module attributes {stable_mosaic.version = 11 : i64} {
  func.func @_linear_kernel(%arg0: i32, %arg1: memref<32x240xf32, #tpu.memory_space<vmem>>, %arg2: memref<240x256xbf16, #tpu.memory_space<vmem>>, %arg3: memref<1x256xf32, #tpu.memory_space<vmem>>, %arg4: memref<32x256xf32, #tpu.memory_space<vmem>>) attributes {dimension_semantics = [#tpu.dimension_semantics<parallel>], iteration_bounds = array<i64: 1>, scalar_prefetch = 0 : i64, scratch_operands = 0 : i64, tpu.core_type = #tpu.core_type<tc>, window_params = [{transform_indices = @transform_0, window_bounds = array<i64: 32, 240>}, {pipeline_mode = #tpu.pipeline_mode<synchronous>, transform_indices = @transform_1, window_bounds = array<i64: 240, 256>}, {pipeline_mode = #tpu.pipeline_mode<synchronous>, transform_indices = @transform_2, window_bounds = array<i64: 1, 256>}, {transform_indices = @transform_3, window_bounds = array<i64: 32, 256>}]} {
    %c0 = arith.constant 0 : index
    %c0_0 = arith.constant 0 : index
    %0 = vector.load %arg1[%c0, %c0_0] : memref<32x240xf32, #tpu.memory_space<vmem>>, vector<32x240xf32>
    %1 = arith.truncf %0 : vector<32x240xf32> to vector<32x240xbf16>
    %c0_1 = arith.constant 0 : index
    %c0_2 = arith.constant 0 : index
    %2 = vector.load %arg2[%c0_1, %c0_2] : memref<240x256xbf16, #tpu.memory_space<vmem>>, vector<240x256xbf16>
    %cst = arith.constant dense<0.000000e+00> : vector<32x256xf32>
    %3 = tpu.matmul %1, %2, %cst {dimension_numbers = #tpu.dot_dimension_numbers<[1], [0], [0], [1], [0, 0, 1, 1], [], []>} : vector<32x240xbf16>, vector<240x256xbf16>, vector<32x256xf32> -> vector<32x256xf32>
    %c0_3 = arith.constant 0 : index
    %c0_4 = arith.constant 0 : index
    %4 = vector.load %arg3[%c0_3, %c0_4] : memref<1x256xf32, #tpu.memory_space<vmem>>, vector<1x256xf32>
    %5 = vector.broadcast %4 : vector<1x256xf32> to vector<32x256xf32>
    %6 = arith.addf %3, %5 : vector<32x256xf32>
    %c0_5 = arith.constant 0 : index
    %c0_6 = arith.constant 0 : index
    %7 = vector.load %arg4[%c0_5, %c0_6] : memref<32x256xf32, #tpu.memory_space<vmem>>, vector<32x256xf32>
    tpu.vector_store %arg4[%c0_5, %c0_6], %6 {strides = array<i32>} : memref<32x256xf32, #tpu.memory_space<vmem>>, vector<32x256xf32>,
    return
  }
  func.func @transform_0(%arg0: i32) -> (i32, i32) {
    %c0_i32 = arith.constant 0 : i32
    %c0_i32_0 = arith.constant 0 : i32
    return %arg0, %c0_i32 : i32, i32
  }
  func.func @transform_1(%arg0: i32) -> (i32, i32) {
    %c0_i32 = arith.constant 0 : i32
    %c0_i32_0 = arith.constant 0 : i32
    %c0_i32_1 = arith.constant 0 : i32
    return %c0_i32, %c0_i32_0 : i32, i32
  }
  func.func @transform_2(%arg0: i32) -> (i32, i32) {
    %c0_i32 = arith.constant 0 : i32
    %c0_i32_0 = arith.constant 0 : i32
    %c0_i32_1 = arith.constant 0 : i32
    return %c0_i32, %c0_i32_0 : i32, i32
  }
  func.func @transform_3(%arg0: i32) -> (i32, i32) {
    %c0_i32 = arith.constant 0 : i32
    %c0_i32_0 = arith.constant 0 : i32
    return %arg0, %c0_i32 : i32, i32
  }
}

module attributes {stable_mosaic.version = 11 : i64} {
  func.func @_linear_kernel(%arg0: i32, %arg1: memref<16x256xf32, #tpu.memory_space<vmem>>, %arg2: memref<256x256xbf16, #tpu.memory_space<vmem>>, %arg3: memref<1x256xf32, #tpu.memory_space<vmem>>, %arg4: memref<16x256xf32, #tpu.memory_space<vmem>>) attributes {dimension_semantics = [#tpu.dimension_semantics<parallel>], iteration_bounds = array<i64: 1>, scalar_prefetch = 0 : i64, scratch_operands = 0 : i64, tpu.core_type = #tpu.core_type<tc>, window_params = [{transform_indices = @transform_0, window_bounds = array<i64: 16, 256>}, {pipeline_mode = #tpu.pipeline_mode<synchronous>, transform_indices = @transform_1, window_bounds = array<i64: 256, 256>}, {pipeline_mode = #tpu.pipeline_mode<synchronous>, transform_indices = @transform_2, window_bounds = array<i64: 1, 256>}, {transform_indices = @transform_3, window_bounds = array<i64: 16, 256>}]} {
    %c0 = arith.constant 0 : index
    %c0_0 = arith.constant 0 : index
    %0 = vector.load %arg1[%c0, %c0_0] : memref<16x256xf32, #tpu.memory_space<vmem>>, vector<16x256xf32>
    %1 = arith.truncf %0 : vector<16x256xf32> to vector<16x256xbf16>
    %c0_1 = arith.constant 0 : index
    %c0_2 = arith.constant 0 : index
    %2 = vector.load %arg2[%c0_1, %c0_2] : memref<256x256xbf16, #tpu.memory_space<vmem>>, vector<256x256xbf16>
    %cst = arith.constant dense<0.000000e+00> : vector<16x256xf32>
    %3 = tpu.matmul %1, %2, %cst {dimension_numbers = #tpu.dot_dimension_numbers<[1], [0], [0], [1], [0, 0, 1, 1], [], []>} : vector<16x256xbf16>, vector<256x256xbf16>, vector<16x256xf32> -> vector<16x256xf32>
    %c0_3 = arith.constant 0 : index
    %c0_4 = arith.constant 0 : index
    %4 = vector.load %arg3[%c0_3, %c0_4] : memref<1x256xf32, #tpu.memory_space<vmem>>, vector<1x256xf32>
    %5 = vector.broadcast %4 : vector<1x256xf32> to vector<16x256xf32>
    %6 = arith.addf %3, %5 : vector<16x256xf32>
    %c0_5 = arith.constant 0 : index
    %c0_6 = arith.constant 0 : index
    %7 = vector.load %arg4[%c0_5, %c0_6] : memref<16x256xf32, #tpu.memory_space<vmem>>, vector<16x256xf32>
    tpu.vector_store %arg4[%c0_5, %c0_6], %6 {strides = array<i32>} : memref<16x256xf32, #tpu.memory_space<vmem>>, vector<16x256xf32>,
    return
  }
  func.func @transform_0(%arg0: i32) -> (i32, i32) {
    %c0_i32 = arith.constant 0 : i32
    %c0_i32_0 = arith.constant 0 : i32
    return %arg0, %c0_i32 : i32, i32
  }
  func.func @transform_1(%arg0: i32) -> (i32, i32) {
    %c0_i32 = arith.constant 0 : i32
    %c0_i32_0 = arith.constant 0 : i32
    %c0_i32_1 = arith.constant 0 : i32
    return %c0_i32, %c0_i32_0 : i32, i32
  }
  func.func @transform_2(%arg0: i32) -> (i32, i32) {
    %c0_i32 = arith.constant 0 : i32
    %c0_i32_0 = arith.constant 0 : i32
    %c0_i32_1 = arith.constant 0 : i32
    return %c0_i32, %c0_i32_0 : i32, i32
  }
  func.func @transform_3(%arg0: i32) -> (i32, i32) {
    %c0_i32 = arith.constant 0 : i32
    %c0_i32_0 = arith.constant 0 : i32
    return %arg0, %c0_i32 : i32, i32
  }
}

module attributes {stable_mosaic.version = 11 : i64} {
  func.func @_ffn_kernel(%arg0: i32, %arg1: memref<16x256xf32, #tpu.memory_space<vmem>>, %arg2: memref<1x256xf32, #tpu.memory_space<vmem>>, %arg3: memref<1x256xf32, #tpu.memory_space<vmem>>, %arg4: memref<256x512xbf16, #tpu.memory_space<vmem>>, %arg5: memref<1x512xf32, #tpu.memory_space<vmem>>, %arg6: memref<512x256xbf16, #tpu.memory_space<vmem>>, %arg7: memref<1x256xf32, #tpu.memory_space<vmem>>, %arg8: memref<1x256xf32, #tpu.memory_space<vmem>>, %arg9: memref<1x256xf32, #tpu.memory_space<vmem>>, %arg10: memref<16x256xf32, #tpu.memory_space<vmem>>) attributes {dimension_semantics = [#tpu.dimension_semantics<parallel>], iteration_bounds = array<i64: 1>, scalar_prefetch = 0 : i64, scratch_operands = 0 : i64, tpu.core_type = #tpu.core_type<tc>, window_params = [{transform_indices = @transform_0, window_bounds = array<i64: 16, 256>}, {pipeline_mode = #tpu.pipeline_mode<synchronous>, transform_indices = @transform_1, window_bounds = array<i64: 1, 256>}, {pipeline_mode = #tpu.pipeline_mode<synchronous>, transform_indices = @transform_2, window_bounds = array<i64: 1, 256>}, {pipeline_mode = #tpu.pipeline_mode<synchronous>, transform_indices = @transform_3, window_bounds = array<i64: 256, 512>}, {pipeline_mode = #tpu.pipeline_mode<synchronous>, transform_indices = @transform_4, window_bounds = array<i64: 1, 512>}, {pipeline_mode = #tpu.pipeline_mode<synchronous>, transform_indices = @transform_5, window_bounds = array<i64: 512, 256>}, {pipeline_mode = #tpu.pipeline_mode<synchronous>, transform_indices = @transform_6, window_bounds = array<i64: 1, 256>}, {pipeline_mode = #tpu.pipeline_mode<synchronous>, transform_indices = @transform_7, window_bounds = array<i64: 1, 256>}, {pipeline_mode = #tpu.pipeline_mode<synchronous>, transform_indices = @transform_8, window_bounds = array<i64: 1, 256>}, {transform_indices = @transform_9, window_bounds = array<i64: 16, 256>}]} {
    %c0 = arith.constant 0 : index
    %c0_0 = arith.constant 0 : index
    %0 = vector.load %arg1[%c0, %c0_0] : memref<16x256xf32, #tpu.memory_space<vmem>>, vector<16x256xf32>
    %c0_1 = arith.constant 0 : index
    %c0_2 = arith.constant 0 : index
    %1 = vector.load %arg2[%c0_1, %c0_2] : memref<1x256xf32, #tpu.memory_space<vmem>>, vector<1x256xf32>
    %c0_3 = arith.constant 0 : index
    %c0_4 = arith.constant 0 : index
    %2 = vector.load %arg3[%c0_3, %c0_4] : memref<1x256xf32, #tpu.memory_space<vmem>>, vector<1x256xf32>
    %cst = arith.constant dense<0.000000e+00> : vector<16xf32>
    %3 = vector.multi_reduction <add>, %0, %cst [1] : vector<16x256xf32> to vector<16xf32>
    %4 = vector.shape_cast %3 : vector<16xf32> to vector<16x1xf32>
    %cst_5 = arith.constant 2.560000e+02 : f32
    %5 = vector.broadcast %cst_5 : f32 to vector<16x1xf32>
    %6 = arith.divf %4, %5 : vector<16x1xf32>
    %7 = vector.broadcast %6 : vector<16x1xf32> to vector<16x256xf32>
    %8 = arith.subf %0, %7 : vector<16x256xf32>
    %9 = arith.mulf %8, %8 : vector<16x256xf32>
    %cst_6 = arith.constant dense<0.000000e+00> : vector<16xf32>
    %10 = vector.multi_reduction <add>, %9, %cst_6 [1] : vector<16x256xf32> to vector<16xf32>
    %11 = vector.shape_cast %10 : vector<16xf32> to vector<16x1xf32>
    %cst_7 = arith.constant 2.560000e+02 : f32
    %12 = vector.broadcast %cst_7 : f32 to vector<16x1xf32>
    %13 = arith.divf %11, %12 : vector<16x1xf32>
    %14 = vector.broadcast %6 : vector<16x1xf32> to vector<16x256xf32>
    %15 = arith.subf %0, %14 : vector<16x256xf32>
    %cst_8 = arith.constant 9.99999974E-6 : f32
    %16 = vector.broadcast %cst_8 : f32 to vector<16x1xf32>
    %17 = arith.addf %13, %16 : vector<16x1xf32>
    %18 = math.rsqrt %17 : vector<16x1xf32>
    %19 = vector.broadcast %18 : vector<16x1xf32> to vector<16x256xf32>
    %20 = arith.mulf %15, %19 : vector<16x256xf32>
    %21 = vector.broadcast %1 : vector<1x256xf32> to vector<16x256xf32>
    %22 = arith.mulf %20, %21 : vector<16x256xf32>
    %23 = vector.broadcast %2 : vector<1x256xf32> to vector<16x256xf32>
    %24 = arith.addf %22, %23 : vector<16x256xf32>
    %25 = arith.truncf %24 : vector<16x256xf32> to vector<16x256xbf16>
    %c0_9 = arith.constant 0 : index
    %c0_10 = arith.constant 0 : index
    %26 = vector.load %arg4[%c0_9, %c0_10] : memref<256x512xbf16, #tpu.memory_space<vmem>>, vector<256x512xbf16>
    %cst_11 = arith.constant dense<0.000000e+00> : vector<16x512xf32>
    %27 = tpu.matmul %25, %26, %cst_11 {dimension_numbers = #tpu.dot_dimension_numbers<[1], [0], [0], [1], [0, 0, 1, 1], [], []>} : vector<16x256xbf16>, vector<256x512xbf16>, vector<16x512xf32> -> vector<16x512xf32>
    %c0_12 = arith.constant 0 : index
    %c0_13 = arith.constant 0 : index
    %28 = vector.load %arg5[%c0_12, %c0_13] : memref<1x512xf32, #tpu.memory_space<vmem>>, vector<1x512xf32>
    %29 = vector.broadcast %28 : vector<1x512xf32> to vector<16x512xf32>
    %30 = arith.addf %27, %29 : vector<16x512xf32>
    %31 = arith.negf %30 : vector<16x512xf32>
    %32 = math.exp %31 : vector<16x512xf32>
    %cst_14 = arith.constant 1.000000e+00 : f32
    %33 = vector.broadcast %cst_14 : f32 to vector<16x512xf32>
    %34 = arith.addf %33, %32 : vector<16x512xf32>
    %35 = arith.divf %33, %34 : vector<16x512xf32>
    %36 = arith.mulf %30, %35 : vector<16x512xf32>
    %37 = arith.truncf %36 : vector<16x512xf32> to vector<16x512xbf16>
    %c0_15 = arith.constant 0 : index
    %c0_16 = arith.constant 0 : index
    %38 = vector.load %arg6[%c0_15, %c0_16] : memref<512x256xbf16, #tpu.memory_space<vmem>>, vector<512x256xbf16>
    %cst_17 = arith.constant dense<0.000000e+00> : vector<16x256xf32>
    %39 = tpu.matmul %37, %38, %cst_17 {dimension_numbers = #tpu.dot_dimension_numbers<[1], [0], [0], [1], [0, 0, 1, 1], [], []>} : vector<16x512xbf16>, vector<512x256xbf16>, vector<16x256xf32> -> vector<16x256xf32>
    %c0_18 = arith.constant 0 : index
    %c0_19 = arith.constant 0 : index
    %40 = vector.load %arg7[%c0_18, %c0_19] : memref<1x256xf32, #tpu.memory_space<vmem>>, vector<1x256xf32>
    %41 = vector.broadcast %40 : vector<1x256xf32> to vector<16x256xf32>
    %42 = arith.addf %39, %41 : vector<16x256xf32>
    %cst_20 = arith.constant 5.000000e-01 : f32
    %43 = vector.broadcast %cst_20 : f32 to vector<16x256xf32>
    %44 = arith.mulf %43, %42 : vector<16x256xf32>
    %45 = arith.addf %0, %44 : vector<16x256xf32>
    %c0_21 = arith.constant 0 : index
    %c0_22 = arith.constant 0 : index
    %46 = vector.load %arg10[%c0_21, %c0_22] : memref<16x256xf32, #tpu.memory_space<vmem>>, vector<16x256xf32>
    tpu.vector_store %arg10[%c0_21, %c0_22], %45 {strides = array<i32>} : memref<16x256xf32, #tpu.memory_space<vmem>>, vector<16x256xf32>,
    return
  }
  func.func @transform_0(%arg0: i32) -> (i32, i32) {
    %c0_i32 = arith.constant 0 : i32
    %c0_i32_0 = arith.constant 0 : i32
    return %arg0, %c0_i32 : i32, i32
  }
  func.func @transform_1(%arg0: i32) -> (i32, i32) {
    %c0_i32 = arith.constant 0 : i32
    %c0_i32_0 = arith.constant 0 : i32
    %c0_i32_1 = arith.constant 0 : i32
    return %c0_i32, %c0_i32_0 : i32, i32
  }
  func.func @transform_2(%arg0: i32) -> (i32, i32) {
    %c0_i32 = arith.constant 0 : i32
    %c0_i32_0 = arith.constant 0 : i32
    %c0_i32_1 = arith.constant 0 : i32
    return %c0_i32, %c0_i32_0 : i32, i32
  }
  func.func @transform_3(%arg0: i32) -> (i32, i32) {
    %c0_i32 = arith.constant 0 : i32
    %c0_i32_0 = arith.constant 0 : i32
    %c0_i32_1 = arith.constant 0 : i32
    return %c0_i32, %c0_i32_0 : i32, i32
  }
  func.func @transform_4(%arg0: i32) -> (i32, i32) {
    %c0_i32 = arith.constant 0 : i32
    %c0_i32_0 = arith.constant 0 : i32
    %c0_i32_1 = arith.constant 0 : i32
    return %c0_i32, %c0_i32_0 : i32, i32
  }
  func.func @transform_5(%arg0: i32) -> (i32, i32) {
    %c0_i32 = arith.constant 0 : i32
    %c0_i32_0 = arith.constant 0 : i32
    %c0_i32_1 = arith.constant 0 : i32
    return %c0_i32, %c0_i32_0 : i32, i32
  }
  func.func @transform_6(%arg0: i32) -> (i32, i32) {
    %c0_i32 = arith.constant 0 : i32
    %c0_i32_0 = arith.constant 0 : i32
    %c0_i32_1 = arith.constant 0 : i32
    return %c0_i32, %c0_i32_0 : i32, i32
  }
  func.func @transform_7(%arg0: i32) -> (i32, i32) {
    %c0_i32 = arith.constant 0 : i32
    %c0_i32_0 = arith.constant 0 : i32
    %c0_i32_1 = arith.constant 0 : i32
    return %c0_i32, %c0_i32_0 : i32, i32
  }
  func.func @transform_8(%arg0: i32) -> (i32, i32) {
    %c0_i32 = arith.constant 0 : i32
    %c0_i32_0 = arith.constant 0 : i32
    %c0_i32_1 = arith.constant 0 : i32
    return %c0_i32, %c0_i32_0 : i32, i32
  }
  func.func @transform_9(%arg0: i32) -> (i32, i32) {
    %c0_i32 = arith.constant 0 : i32
    %c0_i32_0 = arith.constant 0 : i32
    return %arg0, %c0_i32 : i32, i32
  }
}

module attributes {stable_mosaic.version = 11 : i64} {
  func.func @_linear_kernel(%arg0: i32, %arg1: memref<16x768xf32, #tpu.memory_space<vmem>>, %arg2: memref<768x256xbf16, #tpu.memory_space<vmem>>, %arg3: memref<1x256xf32, #tpu.memory_space<vmem>>, %arg4: memref<16x256xf32, #tpu.memory_space<vmem>>) attributes {dimension_semantics = [#tpu.dimension_semantics<parallel>], iteration_bounds = array<i64: 1>, scalar_prefetch = 0 : i64, scratch_operands = 0 : i64, tpu.core_type = #tpu.core_type<tc>, window_params = [{transform_indices = @transform_0, window_bounds = array<i64: 16, 768>}, {pipeline_mode = #tpu.pipeline_mode<synchronous>, transform_indices = @transform_1, window_bounds = array<i64: 768, 256>}, {pipeline_mode = #tpu.pipeline_mode<synchronous>, transform_indices = @transform_2, window_bounds = array<i64: 1, 256>}, {transform_indices = @transform_3, window_bounds = array<i64: 16, 256>}]} {
    %c0 = arith.constant 0 : index
    %c0_0 = arith.constant 0 : index
    %0 = vector.load %arg1[%c0, %c0_0] : memref<16x768xf32, #tpu.memory_space<vmem>>, vector<16x768xf32>
    %1 = arith.truncf %0 : vector<16x768xf32> to vector<16x768xbf16>
    %c0_1 = arith.constant 0 : index
    %c0_2 = arith.constant 0 : index
    %2 = vector.load %arg2[%c0_1, %c0_2] : memref<768x256xbf16, #tpu.memory_space<vmem>>, vector<768x256xbf16>
    %cst = arith.constant dense<0.000000e+00> : vector<16x256xf32>
    %3 = tpu.matmul %1, %2, %cst {dimension_numbers = #tpu.dot_dimension_numbers<[1], [0], [0], [1], [0, 0, 1, 1], [], []>} : vector<16x768xbf16>, vector<768x256xbf16>, vector<16x256xf32> -> vector<16x256xf32>
    %c0_3 = arith.constant 0 : index
    %c0_4 = arith.constant 0 : index
    %4 = vector.load %arg3[%c0_3, %c0_4] : memref<1x256xf32, #tpu.memory_space<vmem>>, vector<1x256xf32>
    %5 = vector.broadcast %4 : vector<1x256xf32> to vector<16x256xf32>
    %6 = arith.addf %3, %5 : vector<16x256xf32>
    %c0_5 = arith.constant 0 : index
    %c0_6 = arith.constant 0 : index
    %7 = vector.load %arg4[%c0_5, %c0_6] : memref<16x256xf32, #tpu.memory_space<vmem>>, vector<16x256xf32>
    tpu.vector_store %arg4[%c0_5, %c0_6], %6 {strides = array<i32>} : memref<16x256xf32, #tpu.memory_space<vmem>>, vector<16x256xf32>,
    return
  }
  func.func @transform_0(%arg0: i32) -> (i32, i32) {
    %c0_i32 = arith.constant 0 : i32
    %c0_i32_0 = arith.constant 0 : i32
    return %arg0, %c0_i32 : i32, i32
  }
  func.func @transform_1(%arg0: i32) -> (i32, i32) {
    %c0_i32 = arith.constant 0 : i32
    %c0_i32_0 = arith.constant 0 : i32
    %c0_i32_1 = arith.constant 0 : i32
    return %c0_i32, %c0_i32_0 : i32, i32
  }
  func.func @transform_2(%arg0: i32) -> (i32, i32) {
    %c0_i32 = arith.constant 0 : i32
    %c0_i32_0 = arith.constant 0 : i32
    %c0_i32_1 = arith.constant 0 : i32
    return %c0_i32, %c0_i32_0 : i32, i32
  }
  func.func @transform_3(%arg0: i32) -> (i32, i32) {
    %c0_i32 = arith.constant 0 : i32
    %c0_i32_0 = arith.constant 0 : i32
    return %arg0, %c0_i32 : i32, i32
  }
}

module attributes {stable_mosaic.version = 11 : i64} {
  func.func @_qkv_kernel(%arg0: i32, %arg1: i32, %arg2: memref<1x8x256xf32, #tpu.memory_space<vmem>>, %arg3: memref<8x256xf32, #tpu.memory_space<vmem>>, %arg4: memref<1x256xf32, #tpu.memory_space<vmem>>, %arg5: memref<1x256xf32, #tpu.memory_space<vmem>>, %arg6: memref<256x768xbf16, #tpu.memory_space<vmem>>, %arg7: memref<1x768xf32, #tpu.memory_space<vmem>>, %arg8: memref<1x8x256xbf16, #tpu.memory_space<vmem>>, %arg9: memref<1x8x256xbf16, #tpu.memory_space<vmem>>, %arg10: memref<1x8x256xbf16, #tpu.memory_space<vmem>>) attributes {dimension_semantics = [#tpu.dimension_semantics<parallel>, #tpu.dimension_semantics<parallel>], iteration_bounds = array<i64: 2, 1>, scalar_prefetch = 0 : i64, scratch_operands = 0 : i64, tpu.core_type = #tpu.core_type<tc>, window_params = [{transform_indices = @transform_0, window_bounds = array<i64: 1, 8, 256>}, {transform_indices = @transform_1, window_bounds = array<i64: 8, 256>}, {pipeline_mode = #tpu.pipeline_mode<synchronous>, transform_indices = @transform_2, window_bounds = array<i64: 1, 256>}, {pipeline_mode = #tpu.pipeline_mode<synchronous>, transform_indices = @transform_3, window_bounds = array<i64: 1, 256>}, {pipeline_mode = #tpu.pipeline_mode<synchronous>, transform_indices = @transform_4, window_bounds = array<i64: 256, 768>}, {pipeline_mode = #tpu.pipeline_mode<synchronous>, transform_indices = @transform_5, window_bounds = array<i64: 1, 768>}, {transform_indices = @transform_6, window_bounds = array<i64: 1, 8, 256>}, {transform_indices = @transform_7, window_bounds = array<i64: 1, 8, 256>}, {transform_indices = @transform_8, window_bounds = array<i64: 1, 8, 256>}]} {
    %c0 = arith.constant 0 : index
    %c0_0 = arith.constant 0 : index
    %c0_1 = arith.constant 0 : index
    %0 = vector.load %arg2[%c0, %c0_0, %c0_1] : memref<1x8x256xf32, #tpu.memory_space<vmem>>, vector<1x8x256xf32>
    %1 = vector.shape_cast %0 : vector<1x8x256xf32> to vector<8x256xf32>
    %c0_2 = arith.constant 0 : index
    %c0_3 = arith.constant 0 : index
    %2 = vector.load %arg4[%c0_2, %c0_3] : memref<1x256xf32, #tpu.memory_space<vmem>>, vector<1x256xf32>
    %c0_4 = arith.constant 0 : index
    %c0_5 = arith.constant 0 : index
    %3 = vector.load %arg5[%c0_4, %c0_5] : memref<1x256xf32, #tpu.memory_space<vmem>>, vector<1x256xf32>
    %cst = arith.constant dense<0.000000e+00> : vector<8xf32>
    %4 = vector.multi_reduction <add>, %1, %cst [1] : vector<8x256xf32> to vector<8xf32>
    %5 = vector.shape_cast %4 : vector<8xf32> to vector<8x1xf32>
    %cst_6 = arith.constant 2.560000e+02 : f32
    %6 = vector.broadcast %cst_6 : f32 to vector<8x1xf32>
    %7 = arith.divf %5, %6 : vector<8x1xf32>
    %8 = vector.broadcast %7 : vector<8x1xf32> to vector<8x256xf32>
    %9 = arith.subf %1, %8 : vector<8x256xf32>
    %10 = arith.mulf %9, %9 : vector<8x256xf32>
    %cst_7 = arith.constant dense<0.000000e+00> : vector<8xf32>
    %11 = vector.multi_reduction <add>, %10, %cst_7 [1] : vector<8x256xf32> to vector<8xf32>
    %12 = vector.shape_cast %11 : vector<8xf32> to vector<8x1xf32>
    %cst_8 = arith.constant 2.560000e+02 : f32
    %13 = vector.broadcast %cst_8 : f32 to vector<8x1xf32>
    %14 = arith.divf %12, %13 : vector<8x1xf32>
    %15 = vector.broadcast %7 : vector<8x1xf32> to vector<8x256xf32>
    %16 = arith.subf %1, %15 : vector<8x256xf32>
    %cst_9 = arith.constant 9.99999974E-6 : f32
    %17 = vector.broadcast %cst_9 : f32 to vector<8x1xf32>
    %18 = arith.addf %14, %17 : vector<8x1xf32>
    %19 = math.rsqrt %18 : vector<8x1xf32>
    %20 = vector.broadcast %19 : vector<8x1xf32> to vector<8x256xf32>
    %21 = arith.mulf %16, %20 : vector<8x256xf32>
    %22 = vector.broadcast %2 : vector<1x256xf32> to vector<8x256xf32>
    %23 = arith.mulf %21, %22 : vector<8x256xf32>
    %24 = vector.broadcast %3 : vector<1x256xf32> to vector<8x256xf32>
    %25 = arith.addf %23, %24 : vector<8x256xf32>
    %c0_10 = arith.constant 0 : index
    %c0_11 = arith.constant 0 : index
    %26 = vector.load %arg3[%c0_10, %c0_11] : memref<8x256xf32, #tpu.memory_space<vmem>>, vector<8x256xf32>
    %27 = arith.addf %25, %26 : vector<8x256xf32>
    %28 = arith.truncf %27 : vector<8x256xf32> to vector<8x256xbf16>
    %c0_12 = arith.constant 0 : index
    %c0_13 = arith.constant 0 : index
    %29 = vector.load %arg6[%c0_12, %c0_13] : memref<256x768xbf16, #tpu.memory_space<vmem>>, vector<256x768xbf16>
    %cst_14 = arith.constant dense<0.000000e+00> : vector<8x768xf32>
    %30 = tpu.matmul %28, %29, %cst_14 {dimension_numbers = #tpu.dot_dimension_numbers<[1], [0], [0], [1], [0, 0, 1, 1], [], []>} : vector<8x256xbf16>, vector<256x768xbf16>, vector<8x768xf32> -> vector<8x768xf32>
    %c0_15 = arith.constant 0 : index
    %c0_16 = arith.constant 0 : index
    %31 = vector.load %arg7[%c0_15, %c0_16] : memref<1x768xf32, #tpu.memory_space<vmem>>, vector<1x768xf32>
    %32 = vector.broadcast %31 : vector<1x768xf32> to vector<8x768xf32>
    %33 = arith.addf %30, %32 : vector<8x768xf32>
    %34 = vector.extract_strided_slice %33 {offsets = [0, 0], sizes = [8, 256], strides = [1, 1]} : vector<8x768xf32> to vector<8x256xf32>
    %35 = arith.truncf %34 : vector<8x256xf32> to vector<8x256xbf16>
    %c0_17 = arith.constant 0 : index
    %c0_18 = arith.constant 0 : index
    %c0_19 = arith.constant 0 : index
    %36 = vector.load %arg8[%c0_17, %c0_18, %c0_19] : memref<1x8x256xbf16, #tpu.memory_space<vmem>>, vector<1x8x256xbf16>
    %37 = vector.shape_cast %36 : vector<1x8x256xbf16> to vector<8x256xbf16>
    %38 = vector.shape_cast %35 : vector<8x256xbf16> to vector<1x8x256xbf16>
    tpu.vector_store %arg8[%c0_17, %c0_18, %c0_19], %38 {strides = array<i32>} : memref<1x8x256xbf16, #tpu.memory_space<vmem>>, vector<1x8x256xbf16>,
    %39 = vector.extract_strided_slice %33 {offsets = [0, 256], sizes = [8, 256], strides = [1, 1]} : vector<8x768xf32> to vector<8x256xf32>
    %40 = arith.truncf %39 : vector<8x256xf32> to vector<8x256xbf16>
    %c0_20 = arith.constant 0 : index
    %c0_21 = arith.constant 0 : index
    %c0_22 = arith.constant 0 : index
    %41 = vector.load %arg9[%c0_20, %c0_21, %c0_22] : memref<1x8x256xbf16, #tpu.memory_space<vmem>>, vector<1x8x256xbf16>
    %42 = vector.shape_cast %41 : vector<1x8x256xbf16> to vector<8x256xbf16>
    %43 = vector.shape_cast %40 : vector<8x256xbf16> to vector<1x8x256xbf16>
    tpu.vector_store %arg9[%c0_20, %c0_21, %c0_22], %43 {strides = array<i32>} : memref<1x8x256xbf16, #tpu.memory_space<vmem>>, vector<1x8x256xbf16>,
    %44 = vector.extract_strided_slice %33 {offsets = [0, 512], sizes = [8, 256], strides = [1, 1]} : vector<8x768xf32> to vector<8x256xf32>
    %45 = arith.truncf %44 : vector<8x256xf32> to vector<8x256xbf16>
    %c0_23 = arith.constant 0 : index
    %c0_24 = arith.constant 0 : index
    %c0_25 = arith.constant 0 : index
    %46 = vector.load %arg10[%c0_23, %c0_24, %c0_25] : memref<1x8x256xbf16, #tpu.memory_space<vmem>>, vector<1x8x256xbf16>
    %47 = vector.shape_cast %46 : vector<1x8x256xbf16> to vector<8x256xbf16>
    %48 = vector.shape_cast %45 : vector<8x256xbf16> to vector<1x8x256xbf16>
    tpu.vector_store %arg10[%c0_23, %c0_24, %c0_25], %48 {strides = array<i32>} : memref<1x8x256xbf16, #tpu.memory_space<vmem>>, vector<1x8x256xbf16>,
    return
  }
  func.func @transform_0(%arg0: i32, %arg1: i32) -> (i32, i32, i32) {
    %c0_i32 = arith.constant 0 : i32
    %c0_i32_0 = arith.constant 0 : i32
    return %arg0, %arg1, %c0_i32 : i32, i32, i32
  }
  func.func @transform_1(%arg0: i32, %arg1: i32) -> (i32, i32) {
    %c0_i32 = arith.constant 0 : i32
    %c0_i32_0 = arith.constant 0 : i32
    return %arg1, %c0_i32 : i32, i32
  }
  func.func @transform_2(%arg0: i32, %arg1: i32) -> (i32, i32) {
    %c0_i32 = arith.constant 0 : i32
    %c0_i32_0 = arith.constant 0 : i32
    %c0_i32_1 = arith.constant 0 : i32
    return %c0_i32, %c0_i32_0 : i32, i32
  }
  func.func @transform_3(%arg0: i32, %arg1: i32) -> (i32, i32) {
    %c0_i32 = arith.constant 0 : i32
    %c0_i32_0 = arith.constant 0 : i32
    %c0_i32_1 = arith.constant 0 : i32
    return %c0_i32, %c0_i32_0 : i32, i32
  }
  func.func @transform_4(%arg0: i32, %arg1: i32) -> (i32, i32) {
    %c0_i32 = arith.constant 0 : i32
    %c0_i32_0 = arith.constant 0 : i32
    %c0_i32_1 = arith.constant 0 : i32
    return %c0_i32, %c0_i32_0 : i32, i32
  }
  func.func @transform_5(%arg0: i32, %arg1: i32) -> (i32, i32) {
    %c0_i32 = arith.constant 0 : i32
    %c0_i32_0 = arith.constant 0 : i32
    %c0_i32_1 = arith.constant 0 : i32
    return %c0_i32, %c0_i32_0 : i32, i32
  }
  func.func @transform_6(%arg0: i32, %arg1: i32) -> (i32, i32, i32) {
    %c0_i32 = arith.constant 0 : i32
    %c0_i32_0 = arith.constant 0 : i32
    return %arg0, %arg1, %c0_i32 : i32, i32, i32
  }
  func.func @transform_7(%arg0: i32, %arg1: i32) -> (i32, i32, i32) {
    %c0_i32 = arith.constant 0 : i32
    %c0_i32_0 = arith.constant 0 : i32
    return %arg0, %arg1, %c0_i32 : i32, i32, i32
  }
  func.func @transform_8(%arg0: i32, %arg1: i32) -> (i32, i32, i32) {
    %c0_i32 = arith.constant 0 : i32
    %c0_i32_0 = arith.constant 0 : i32
    return %arg0, %arg1, %c0_i32 : i32, i32, i32
  }
}

module attributes {stable_mosaic.version = 11 : i64} {
  func.func @_attn_kernel(%arg0: i32, %arg1: i32, %arg2: memref<2xi32, #tpu.memory_space<smem>>, %arg3: memref<1x8x128xbf16, #tpu.memory_space<vmem>>, %arg4: memref<1x8x128xbf16, #tpu.memory_space<vmem>>, %arg5: memref<1x8x128xbf16, #tpu.memory_space<vmem>>, %arg6: memref<1x8x128xf32, #tpu.memory_space<vmem>>, %arg7: memref<1x8x128xf32, #tpu.memory_space<vmem>>) attributes {dimension_semantics = [#tpu.dimension_semantics<parallel>, #tpu.dimension_semantics<parallel>], iteration_bounds = array<i64: 2, 2>, scalar_prefetch = 1 : i64, scratch_operands = 0 : i64, tpu.core_type = #tpu.core_type<tc>, window_params = [{transform_indices = @transform_0, window_bounds = array<i64: 1, 8, 128>}, {transform_indices = @transform_1, window_bounds = array<i64: 1, 8, 128>}, {transform_indices = @transform_2, window_bounds = array<i64: 1, 8, 128>}, {transform_indices = @transform_3, window_bounds = array<i64: 1, 8, 128>}, {transform_indices = @transform_4, window_bounds = array<i64: 1, 8, 128>}]} {
    %0 = arith.index_cast %arg0 : i32 to index
    %1 = memref.load %arg2[%0] : memref<2xi32, #tpu.memory_space<smem>>
    %c0 = arith.constant 0 : index
    %c0_0 = arith.constant 0 : index
    %c0_1 = arith.constant 0 : index
    %2 = vector.load %arg3[%c0, %c0_0, %c0_1] : memref<1x8x128xbf16, #tpu.memory_space<vmem>>, vector<1x8x128xbf16>
    %3 = vector.shape_cast %2 : vector<1x8x128xbf16> to vector<8x128xbf16>
    %c0_2 = arith.constant 0 : index
    %c0_3 = arith.constant 0 : index
    %c0_4 = arith.constant 0 : index
    %4 = vector.load %arg4[%c0_2, %c0_3, %c0_4] : memref<1x8x128xbf16, #tpu.memory_space<vmem>>, vector<1x8x128xbf16>
    %5 = vector.shape_cast %4 : vector<1x8x128xbf16> to vector<8x128xbf16>
    %c0_5 = arith.constant 0 : index
    %c0_6 = arith.constant 0 : index
    %c0_7 = arith.constant 0 : index
    %6 = vector.load %arg5[%c0_5, %c0_6, %c0_7] : memref<1x8x128xbf16, #tpu.memory_space<vmem>>, vector<1x8x128xbf16>
    %7 = vector.shape_cast %6 : vector<1x8x128xbf16> to vector<8x128xbf16>
    %cst = arith.constant dense<0.000000e+00> : vector<8x8xf32>
    %8 = tpu.matmul %3, %5, %cst {dimension_numbers = #tpu.dot_dimension_numbers<[1], [1], [0], [0], [0, 0, 1, 0], [], []>} : vector<8x128xbf16>, vector<8x128xbf16>, vector<8x8xf32> -> vector<8x8xf32>
    %cst_8 = arith.constant 0.0883883461 : f32
    %9 = vector.broadcast %cst_8 : f32 to vector<8x8xf32>
    %10 = arith.mulf %8, %9 : vector<8x8xf32>
    %11 = tpu.iota {dimensions = array<i32: 0>} : vector<8x8xi32>
    %12 = tpu.iota {dimensions = array<i32: 1>} : vector<8x8xi32>
    %13 = vector.broadcast %1 : i32 to vector<8x8xi32>
    %14 = arith.cmpi slt, %11, %13 : vector<8x8xi32>
    %15 = vector.broadcast %1 : i32 to vector<8x8xi32>
    %16 = arith.cmpi slt, %12, %15 : vector<8x8xi32>
    %17 = arith.andi %14, %16 : vector<8x8xi1>
    %cst_9 = arith.constant -9.99999986E+14 : f32
    %18 = vector.broadcast %cst_9 : f32 to vector<8x8xf32>
    %19 = arith.select %17, %10, %18 : vector<8x8xi1>, vector<8x8xf32>
    %cst_10 = arith.constant dense<0xFF800000> : vector<8xf32>
    %20 = vector.multi_reduction <maximumf>, %19, %cst_10 [1] : vector<8x8xf32> to vector<8xf32>
    %21 = vector.shape_cast %20 : vector<8xf32> to vector<8x1xf32>
    %22 = vector.broadcast %21 : vector<8x1xf32> to vector<8x8xf32>
    %23 = arith.subf %19, %22 : vector<8x8xf32>
    %24 = math.exp %23 : vector<8x8xf32>
    %cst_11 = arith.constant dense<0.000000e+00> : vector<8xf32>
    %25 = vector.multi_reduction <add>, %24, %cst_11 [1] : vector<8x8xf32> to vector<8xf32>
    %26 = vector.shape_cast %25 : vector<8xf32> to vector<8x1xf32>
    %cst_12 = arith.constant 1.000000e+00 : f32
    %27 = vector.broadcast %cst_12 : f32 to vector<8x1xf32>
    %28 = arith.divf %27, %26 : vector<8x1xf32>
    %29 = vector.broadcast %28 : vector<8x1xf32> to vector<8x8xf32>
    %30 = arith.mulf %24, %29 : vector<8x8xf32>
    %31 = arith.truncf %30 : vector<8x8xf32> to vector<8x8xbf16>
    %cst_13 = arith.constant dense<0.000000e+00> : vector<8x128xf32>
    %32 = tpu.matmul %31, %7, %cst_13 {dimension_numbers = #tpu.dot_dimension_numbers<[1], [0], [0], [1], [0, 0, 1, 1], [], []>} : vector<8x8xbf16>, vector<8x128xbf16>, vector<8x128xf32> -> vector<8x128xf32>
    %c0_14 = arith.constant 0 : index
    %c0_15 = arith.constant 0 : index
    %c0_16 = arith.constant 0 : index
    %33 = vector.load %arg6[%c0_14, %c0_15, %c0_16] : memref<1x8x128xf32, #tpu.memory_space<vmem>>, vector<1x8x128xf32>
    %34 = vector.shape_cast %33 : vector<1x8x128xf32> to vector<8x128xf32>
    %35 = arith.addf %34, %32 : vector<8x128xf32>
    %c0_17 = arith.constant 0 : index
    %c0_18 = arith.constant 0 : index
    %c0_19 = arith.constant 0 : index
    %36 = vector.load %arg7[%c0_17, %c0_18, %c0_19] : memref<1x8x128xf32, #tpu.memory_space<vmem>>, vector<1x8x128xf32>
    %37 = vector.shape_cast %36 : vector<1x8x128xf32> to vector<8x128xf32>
    %38 = vector.shape_cast %35 : vector<8x128xf32> to vector<1x8x128xf32>
    tpu.vector_store %arg7[%c0_17, %c0_18, %c0_19], %38 {strides = array<i32>} : memref<1x8x128xf32, #tpu.memory_space<vmem>>, vector<1x8x128xf32>,
    return
  }
  func.func @transform_0(%arg0: i32, %arg1: i32, %arg2: memref<2xi32, #tpu.memory_space<smem>>) -> (i32, i32, i32) {
    %c0_i32 = arith.constant 0 : i32
    %c0_i32_0 = arith.constant 0 : i32
    return %arg0, %c0_i32, %arg1 : i32, i32, i32
  }
  func.func @transform_1(%arg0: i32, %arg1: i32, %arg2: memref<2xi32, #tpu.memory_space<smem>>) -> (i32, i32, i32) {
    %c0_i32 = arith.constant 0 : i32
    %c0_i32_0 = arith.constant 0 : i32
    return %arg0, %c0_i32, %arg1 : i32, i32, i32
  }
  func.func @transform_2(%arg0: i32, %arg1: i32, %arg2: memref<2xi32, #tpu.memory_space<smem>>) -> (i32, i32, i32) {
    %c0_i32 = arith.constant 0 : i32
    %c0_i32_0 = arith.constant 0 : i32
    return %arg0, %c0_i32, %arg1 : i32, i32, i32
  }
  func.func @transform_3(%arg0: i32, %arg1: i32, %arg2: memref<2xi32, #tpu.memory_space<smem>>) -> (i32, i32, i32) {
    %c0_i32 = arith.constant 0 : i32
    %c0_i32_0 = arith.constant 0 : i32
    return %arg0, %c0_i32, %arg1 : i32, i32, i32
  }
  func.func @transform_4(%arg0: i32, %arg1: i32, %arg2: memref<2xi32, #tpu.memory_space<smem>>) -> (i32, i32, i32) {
    %c0_i32 = arith.constant 0 : i32
    %c0_i32_0 = arith.constant 0 : i32
    return %arg0, %c0_i32, %arg1 : i32, i32, i32
  }
}

module attributes {stable_mosaic.version = 11 : i64} {
  func.func @_conv_module_kernel(%arg0: i32, %arg1: memref<1x8x256xf32, #tpu.memory_space<vmem>>, %arg2: memref<1x256xf32, #tpu.memory_space<vmem>>, %arg3: memref<1x256xf32, #tpu.memory_space<vmem>>, %arg4: memref<256x512xbf16, #tpu.memory_space<vmem>>, %arg5: memref<1x512xf32, #tpu.memory_space<vmem>>, %arg6: memref<7x256xf32, #tpu.memory_space<vmem>>, %arg7: memref<1x256xf32, #tpu.memory_space<vmem>>, %arg8: memref<1x256xf32, #tpu.memory_space<vmem>>, %arg9: memref<1x256xf32, #tpu.memory_space<vmem>>, %arg10: memref<256x256xbf16, #tpu.memory_space<vmem>>, %arg11: memref<1x256xf32, #tpu.memory_space<vmem>>, %arg12: memref<1x8x256xf32, #tpu.memory_space<vmem>>, %arg13: memref<16x256xf32, #tpu.memory_space<vmem>>) attributes {dimension_semantics = [#tpu.dimension_semantics<parallel>], iteration_bounds = array<i64: 2>, scalar_prefetch = 0 : i64, scratch_operands = 1 : i64, tpu.core_type = #tpu.core_type<tc>, window_params = [{transform_indices = @transform_0, window_bounds = array<i64: 1, 8, 256>}, {pipeline_mode = #tpu.pipeline_mode<synchronous>, transform_indices = @transform_1, window_bounds = array<i64: 1, 256>}, {pipeline_mode = #tpu.pipeline_mode<synchronous>, transform_indices = @transform_2, window_bounds = array<i64: 1, 256>}, {pipeline_mode = #tpu.pipeline_mode<synchronous>, transform_indices = @transform_3, window_bounds = array<i64: 256, 512>}, {pipeline_mode = #tpu.pipeline_mode<synchronous>, transform_indices = @transform_4, window_bounds = array<i64: 1, 512>}, {pipeline_mode = #tpu.pipeline_mode<synchronous>, transform_indices = @transform_5, window_bounds = array<i64: 7, 256>}, {pipeline_mode = #tpu.pipeline_mode<synchronous>, transform_indices = @transform_6, window_bounds = array<i64: 1, 256>}, {pipeline_mode = #tpu.pipeline_mode<synchronous>, transform_indices = @transform_7, window_bounds = array<i64: 1, 256>}, {pipeline_mode = #tpu.pipeline_mode<synchronous>, transform_indices = @transform_8, window_bounds = array<i64: 1, 256>}, {pipeline_mode = #tpu.pipeline_mode<synchronous>, transform_indices = @transform_9, window_bounds = array<i64: 256, 256>}, {pipeline_mode = #tpu.pipeline_mode<synchronous>, transform_indices = @transform_10, window_bounds = array<i64: 1, 256>}, {transform_indices = @transform_11, window_bounds = array<i64: 1, 8, 256>}]} {
    %c0 = arith.constant 0 : index
    %c0_0 = arith.constant 0 : index
    %c0_1 = arith.constant 0 : index
    %0 = vector.load %arg1[%c0, %c0_0, %c0_1] : memref<1x8x256xf32, #tpu.memory_space<vmem>>, vector<1x8x256xf32>
    %1 = vector.shape_cast %0 : vector<1x8x256xf32> to vector<8x256xf32>
    %c0_2 = arith.constant 0 : index
    %c0_3 = arith.constant 0 : index
    %2 = vector.load %arg2[%c0_2, %c0_3] : memref<1x256xf32, #tpu.memory_space<vmem>>, vector<1x256xf32>
    %c0_4 = arith.constant 0 : index
    %c0_5 = arith.constant 0 : index
    %3 = vector.load %arg3[%c0_4, %c0_5] : memref<1x256xf32, #tpu.memory_space<vmem>>, vector<1x256xf32>
    %cst = arith.constant dense<0.000000e+00> : vector<8xf32>
    %4 = vector.multi_reduction <add>, %1, %cst [1] : vector<8x256xf32> to vector<8xf32>
    %5 = vector.shape_cast %4 : vector<8xf32> to vector<8x1xf32>
    %cst_6 = arith.constant 2.560000e+02 : f32
    %6 = vector.broadcast %cst_6 : f32 to vector<8x1xf32>
    %7 = arith.divf %5, %6 : vector<8x1xf32>
    %8 = vector.broadcast %7 : vector<8x1xf32> to vector<8x256xf32>
    %9 = arith.subf %1, %8 : vector<8x256xf32>
    %10 = arith.mulf %9, %9 : vector<8x256xf32>
    %cst_7 = arith.constant dense<0.000000e+00> : vector<8xf32>
    %11 = vector.multi_reduction <add>, %10, %cst_7 [1] : vector<8x256xf32> to vector<8xf32>
    %12 = vector.shape_cast %11 : vector<8xf32> to vector<8x1xf32>
    %cst_8 = arith.constant 2.560000e+02 : f32
    %13 = vector.broadcast %cst_8 : f32 to vector<8x1xf32>
    %14 = arith.divf %12, %13 : vector<8x1xf32>
    %15 = vector.broadcast %7 : vector<8x1xf32> to vector<8x256xf32>
    %16 = arith.subf %1, %15 : vector<8x256xf32>
    %cst_9 = arith.constant 9.99999974E-6 : f32
    %17 = vector.broadcast %cst_9 : f32 to vector<8x1xf32>
    %18 = arith.addf %14, %17 : vector<8x1xf32>
    %19 = math.rsqrt %18 : vector<8x1xf32>
    %20 = vector.broadcast %19 : vector<8x1xf32> to vector<8x256xf32>
    %21 = arith.mulf %16, %20 : vector<8x256xf32>
    %22 = vector.broadcast %2 : vector<1x256xf32> to vector<8x256xf32>
    %23 = arith.mulf %21, %22 : vector<8x256xf32>
    %24 = vector.broadcast %3 : vector<1x256xf32> to vector<8x256xf32>
    %25 = arith.addf %23, %24 : vector<8x256xf32>
    %26 = arith.truncf %25 : vector<8x256xf32> to vector<8x256xbf16>
    %c0_10 = arith.constant 0 : index
    %c0_11 = arith.constant 0 : index
    %27 = vector.load %arg4[%c0_10, %c0_11] : memref<256x512xbf16, #tpu.memory_space<vmem>>, vector<256x512xbf16>
    %cst_12 = arith.constant dense<0.000000e+00> : vector<8x512xf32>
    %28 = tpu.matmul %26, %27, %cst_12 {dimension_numbers = #tpu.dot_dimension_numbers<[1], [0], [0], [1], [0, 0, 1, 1], [], []>} : vector<8x256xbf16>, vector<256x512xbf16>, vector<8x512xf32> -> vector<8x512xf32>
    %c0_13 = arith.constant 0 : index
    %c0_14 = arith.constant 0 : index
    %29 = vector.load %arg5[%c0_13, %c0_14] : memref<1x512xf32, #tpu.memory_space<vmem>>, vector<1x512xf32>
    %30 = vector.broadcast %29 : vector<1x512xf32> to vector<8x512xf32>
    %31 = arith.addf %28, %30 : vector<8x512xf32>
    %32 = vector.extract_strided_slice %31 {offsets = [0, 0], sizes = [8, 256], strides = [1, 1]} : vector<8x512xf32> to vector<8x256xf32>
    %33 = vector.extract_strided_slice %31 {offsets = [0, 256], sizes = [8, 256], strides = [1, 1]} : vector<8x512xf32> to vector<8x256xf32>
    %34 = arith.negf %33 : vector<8x256xf32>
    %35 = math.exp %34 : vector<8x256xf32>
    %cst_15 = arith.constant 1.000000e+00 : f32
    %36 = vector.broadcast %cst_15 : f32 to vector<8x256xf32>
    %37 = arith.addf %36, %35 : vector<8x256xf32>
    %38 = arith.divf %36, %37 : vector<8x256xf32>
    %39 = arith.mulf %32, %38 : vector<8x256xf32>
    %40 = tpu.iota {dimensions = array<i32: 0>} : vector<8x1xi32>
    %c7_i32 = arith.constant 7 : i32
    %41 = vector.broadcast %c7_i32 : i32 to vector<8x1xi32>
    %42 = arith.cmpi slt, %40, %41 : vector<8x1xi32>
    %cst_16 = arith.constant 0.000000e+00 : f32
    %43 = vector.shape_cast %42 : vector<8x1xi1> to vector<8x1xi1>
    %44 = vector.broadcast %43 : vector<8x1xi1> to vector<8x256xi1>
    %45 = vector.broadcast %cst_16 : f32 to vector<8x256xf32>
    %46 = arith.select %44, %39, %45 : vector<8x256xi1>, vector<8x256xf32>
    %c0_17 = arith.constant 0 : index
    %c0_18 = arith.constant 0 : index
    %47 = vector.load %arg13[%c0_17, %c0_18] : memref<16x256xf32, #tpu.memory_space<vmem>>, vector<8x256xf32>
    tpu.vector_store %arg13[%c0_17, %c0_18], %46 {strides = array<i32>} : memref<16x256xf32, #tpu.memory_space<vmem>>, vector<8x256xf32>,
    %cst_19 = arith.constant 0.000000e+00 : f32
    %48 = vector.broadcast %cst_19 : f32 to vector<8x256xf32>
    %c8 = arith.constant 8 : index
    %c0_20 = arith.constant 0 : index
    %49 = vector.load %arg13[%c8, %c0_20] : memref<16x256xf32, #tpu.memory_space<vmem>>, vector<8x256xf32>
    tpu.vector_store %arg13[%c8, %c0_20], %48 {strides = array<i32>} : memref<16x256xf32, #tpu.memory_space<vmem>>, vector<8x256xf32>,
    %c0_21 = arith.constant 0 : index
    %c0_22 = arith.constant 0 : index
    %50 = vector.load %arg13[%c0_21, %c0_22] : memref<16x256xf32, #tpu.memory_space<vmem>>, vector<16x256xf32>
    %c0_23 = arith.constant 0 : index
    %c0_24 = arith.constant 0 : index
    %51 = vector.load %arg6[%c0_23, %c0_24] : memref<7x256xf32, #tpu.memory_space<vmem>>, vector<7x256xf32>
    %cst_25 = arith.constant 0.000000e+00 : f32
    %52 = vector.broadcast %cst_25 : f32 to vector<16x256xf32>
    %c3_i32 = arith.constant 3 : i32
    %53 = tpu.dynamic_rotate %50 by %c3_i32 dim 0 : vector<16x256xf32>, i32 -> vector<16x256xf32>
    %54 = vector.extract_strided_slice %51 {offsets = [0, 0], sizes = [1, 256], strides = [1, 1]} : vector<7x256xf32> to vector<1x256xf32>
    %55 = vector.broadcast %54 : vector<1x256xf32> to vector<16x256xf32>
    %56 = arith.mulf %53, %55 : vector<16x256xf32>
    %57 = arith.addf %52, %56 : vector<16x256xf32>
    %c2_i32 = arith.constant 2 : i32
    %58 = tpu.dynamic_rotate %50 by %c2_i32 dim 0 : vector<16x256xf32>, i32 -> vector<16x256xf32>
    %59 = vector.extract_strided_slice %51 {offsets = [1, 0], sizes = [1, 256], strides = [1, 1]} : vector<7x256xf32> to vector<1x256xf32>
    %60 = vector.broadcast %59 : vector<1x256xf32> to vector<16x256xf32>
    %61 = arith.mulf %58, %60 : vector<16x256xf32>
    %62 = arith.addf %57, %61 : vector<16x256xf32>
    %c1_i32 = arith.constant 1 : i32
    %63 = tpu.dynamic_rotate %50 by %c1_i32 dim 0 : vector<16x256xf32>, i32 -> vector<16x256xf32>
    %64 = vector.extract_strided_slice %51 {offsets = [2, 0], sizes = [1, 256], strides = [1, 1]} : vector<7x256xf32> to vector<1x256xf32>
    %65 = vector.broadcast %64 : vector<1x256xf32> to vector<16x256xf32>
    %66 = arith.mulf %63, %65 : vector<16x256xf32>
    %67 = arith.addf %62, %66 : vector<16x256xf32>
    %c0_i32 = arith.constant 0 : i32
    %68 = tpu.dynamic_rotate %50 by %c0_i32 dim 0 : vector<16x256xf32>, i32 -> vector<16x256xf32>
    %69 = vector.extract_strided_slice %51 {offsets = [3, 0], sizes = [1, 256], strides = [1, 1]} : vector<7x256xf32> to vector<1x256xf32>
    %70 = vector.broadcast %69 : vector<1x256xf32> to vector<16x256xf32>
    %71 = arith.mulf %68, %70 : vector<16x256xf32>
    %72 = arith.addf %67, %71 : vector<16x256xf32>
    %c15_i32 = arith.constant 15 : i32
    %73 = tpu.dynamic_rotate %50 by %c15_i32 dim 0 : vector<16x256xf32>, i32 -> vector<16x256xf32>
    %74 = vector.extract_strided_slice %51 {offsets = [4, 0], sizes = [1, 256], strides = [1, 1]} : vector<7x256xf32> to vector<1x256xf32>
    %75 = vector.broadcast %74 : vector<1x256xf32> to vector<16x256xf32>
    %76 = arith.mulf %73, %75 : vector<16x256xf32>
    %77 = arith.addf %72, %76 : vector<16x256xf32>
    %c14_i32 = arith.constant 14 : i32
    %78 = tpu.dynamic_rotate %50 by %c14_i32 dim 0 : vector<16x256xf32>, i32 -> vector<16x256xf32>
    %79 = vector.extract_strided_slice %51 {offsets = [5, 0], sizes = [1, 256], strides = [1, 1]} : vector<7x256xf32> to vector<1x256xf32>
    %80 = vector.broadcast %79 : vector<1x256xf32> to vector<16x256xf32>
    %81 = arith.mulf %78, %80 : vector<16x256xf32>
    %82 = arith.addf %77, %81 : vector<16x256xf32>
    %c13_i32 = arith.constant 13 : i32
    %83 = tpu.dynamic_rotate %50 by %c13_i32 dim 0 : vector<16x256xf32>, i32 -> vector<16x256xf32>
    %84 = vector.extract_strided_slice %51 {offsets = [6, 0], sizes = [1, 256], strides = [1, 1]} : vector<7x256xf32> to vector<1x256xf32>
    %85 = vector.broadcast %84 : vector<1x256xf32> to vector<16x256xf32>
    %86 = arith.mulf %83, %85 : vector<16x256xf32>
    %87 = arith.addf %82, %86 : vector<16x256xf32>
    %88 = vector.extract_strided_slice %87 {offsets = [0, 0], sizes = [8, 256], strides = [1, 1]} : vector<16x256xf32> to vector<8x256xf32>
    %c0_26 = arith.constant 0 : index
    %c0_27 = arith.constant 0 : index
    %89 = vector.load %arg7[%c0_26, %c0_27] : memref<1x256xf32, #tpu.memory_space<vmem>>, vector<1x256xf32>
    %90 = vector.broadcast %89 : vector<1x256xf32> to vector<8x256xf32>
    %91 = arith.addf %88, %90 : vector<8x256xf32>
    %c0_28 = arith.constant 0 : index
    %c0_29 = arith.constant 0 : index
    %92 = vector.load %arg8[%c0_28, %c0_29] : memref<1x256xf32, #tpu.memory_space<vmem>>, vector<1x256xf32>
    %93 = vector.broadcast %92 : vector<1x256xf32> to vector<8x256xf32>
    %94 = arith.mulf %91, %93 : vector<8x256xf32>
    %c0_30 = arith.constant 0 : index
    %c0_31 = arith.constant 0 : index
    %95 = vector.load %arg9[%c0_30, %c0_31] : memref<1x256xf32, #tpu.memory_space<vmem>>, vector<1x256xf32>
    %96 = vector.broadcast %95 : vector<1x256xf32> to vector<8x256xf32>
    %97 = arith.addf %94, %96 : vector<8x256xf32>
    %98 = arith.negf %97 : vector<8x256xf32>
    %99 = math.exp %98 : vector<8x256xf32>
    %cst_32 = arith.constant 1.000000e+00 : f32
    %100 = vector.broadcast %cst_32 : f32 to vector<8x256xf32>
    %101 = arith.addf %100, %99 : vector<8x256xf32>
    %102 = arith.divf %100, %101 : vector<8x256xf32>
    %103 = arith.mulf %97, %102 : vector<8x256xf32>
    %104 = arith.truncf %103 : vector<8x256xf32> to vector<8x256xbf16>
    %c0_33 = arith.constant 0 : index
    %c0_34 = arith.constant 0 : index
    %105 = vector.load %arg10[%c0_33, %c0_34] : memref<256x256xbf16, #tpu.memory_space<vmem>>, vector<256x256xbf16>
    %cst_35 = arith.constant dense<0.000000e+00> : vector<8x256xf32>
    %106 = tpu.matmul %104, %105, %cst_35 {dimension_numbers = #tpu.dot_dimension_numbers<[1], [0], [0], [1], [0, 0, 1, 1], [], []>} : vector<8x256xbf16>, vector<256x256xbf16>, vector<8x256xf32> -> vector<8x256xf32>
    %c0_36 = arith.constant 0 : index
    %c0_37 = arith.constant 0 : index
    %107 = vector.load %arg11[%c0_36, %c0_37] : memref<1x256xf32, #tpu.memory_space<vmem>>, vector<1x256xf32>
    %108 = vector.broadcast %107 : vector<1x256xf32> to vector<8x256xf32>
    %109 = arith.addf %106, %108 : vector<8x256xf32>
    %110 = arith.addf %1, %109 : vector<8x256xf32>
    %c0_38 = arith.constant 0 : index
    %c0_39 = arith.constant 0 : index
    %c0_40 = arith.constant 0 : index
    %111 = vector.load %arg12[%c0_38, %c0_39, %c0_40] : memref<1x8x256xf32, #tpu.memory_space<vmem>>, vector<1x8x256xf32>
    %112 = vector.shape_cast %111 : vector<1x8x256xf32> to vector<8x256xf32>
    %113 = vector.shape_cast %110 : vector<8x256xf32> to vector<1x8x256xf32>
    tpu.vector_store %arg12[%c0_38, %c0_39, %c0_40], %113 {strides = array<i32>} : memref<1x8x256xf32, #tpu.memory_space<vmem>>, vector<1x8x256xf32>,
    return
  }
  func.func @transform_0(%arg0: i32) -> (i32, i32, i32) {
    %c0_i32 = arith.constant 0 : i32
    %c0_i32_0 = arith.constant 0 : i32
    %c0_i32_1 = arith.constant 0 : i32
    return %arg0, %c0_i32, %c0_i32_0 : i32, i32, i32
  }
  func.func @transform_1(%arg0: i32) -> (i32, i32) {
    %c0_i32 = arith.constant 0 : i32
    %c0_i32_0 = arith.constant 0 : i32
    %c0_i32_1 = arith.constant 0 : i32
    return %c0_i32, %c0_i32_0 : i32, i32
  }
  func.func @transform_2(%arg0: i32) -> (i32, i32) {
    %c0_i32 = arith.constant 0 : i32
    %c0_i32_0 = arith.constant 0 : i32
    %c0_i32_1 = arith.constant 0 : i32
    return %c0_i32, %c0_i32_0 : i32, i32
  }
  func.func @transform_3(%arg0: i32) -> (i32, i32) {
    %c0_i32 = arith.constant 0 : i32
    %c0_i32_0 = arith.constant 0 : i32
    %c0_i32_1 = arith.constant 0 : i32
    return %c0_i32, %c0_i32_0 : i32, i32
  }
  func.func @transform_4(%arg0: i32) -> (i32, i32) {
    %c0_i32 = arith.constant 0 : i32
    %c0_i32_0 = arith.constant 0 : i32
    %c0_i32_1 = arith.constant 0 : i32
    return %c0_i32, %c0_i32_0 : i32, i32
  }
  func.func @transform_5(%arg0: i32) -> (i32, i32) {
    %c0_i32 = arith.constant 0 : i32
    %c0_i32_0 = arith.constant 0 : i32
    %c0_i32_1 = arith.constant 0 : i32
    return %c0_i32, %c0_i32_0 : i32, i32
  }
  func.func @transform_6(%arg0: i32) -> (i32, i32) {
    %c0_i32 = arith.constant 0 : i32
    %c0_i32_0 = arith.constant 0 : i32
    %c0_i32_1 = arith.constant 0 : i32
    return %c0_i32, %c0_i32_0 : i32, i32
  }
  func.func @transform_7(%arg0: i32) -> (i32, i32) {
    %c0_i32 = arith.constant 0 : i32
    %c0_i32_0 = arith.constant 0 : i32
    %c0_i32_1 = arith.constant 0 : i32
    return %c0_i32, %c0_i32_0 : i32, i32
  }
  func.func @transform_8(%arg0: i32) -> (i32, i32) {
    %c0_i32 = arith.constant 0 : i32
    %c0_i32_0 = arith.constant 0 : i32
    %c0_i32_1 = arith.constant 0 : i32
    return %c0_i32, %c0_i32_0 : i32, i32
  }
  func.func @transform_9(%arg0: i32) -> (i32, i32) {
    %c0_i32 = arith.constant 0 : i32
    %c0_i32_0 = arith.constant 0 : i32
    %c0_i32_1 = arith.constant 0 : i32
    return %c0_i32, %c0_i32_0 : i32, i32
  }
  func.func @transform_10(%arg0: i32) -> (i32, i32) {
    %c0_i32 = arith.constant 0 : i32
    %c0_i32_0 = arith.constant 0 : i32
    %c0_i32_1 = arith.constant 0 : i32
    return %c0_i32, %c0_i32_0 : i32, i32
  }
  func.func @transform_11(%arg0: i32) -> (i32, i32, i32) {
    %c0_i32 = arith.constant 0 : i32
    %c0_i32_0 = arith.constant 0 : i32
    %c0_i32_1 = arith.constant 0 : i32
    return %arg0, %c0_i32, %c0_i32_0 : i32, i32, i32
  }
}

module attributes {stable_mosaic.version = 11 : i64} {
  func.func @_ffn_kernel(%arg0: i32, %arg1: memref<16x256xf32, #tpu.memory_space<vmem>>, %arg2: memref<1x256xf32, #tpu.memory_space<vmem>>, %arg3: memref<1x256xf32, #tpu.memory_space<vmem>>, %arg4: memref<256x512xbf16, #tpu.memory_space<vmem>>, %arg5: memref<1x512xf32, #tpu.memory_space<vmem>>, %arg6: memref<512x256xbf16, #tpu.memory_space<vmem>>, %arg7: memref<1x256xf32, #tpu.memory_space<vmem>>, %arg8: memref<1x256xf32, #tpu.memory_space<vmem>>, %arg9: memref<1x256xf32, #tpu.memory_space<vmem>>, %arg10: memref<16x256xf32, #tpu.memory_space<vmem>>) attributes {dimension_semantics = [#tpu.dimension_semantics<parallel>], iteration_bounds = array<i64: 1>, scalar_prefetch = 0 : i64, scratch_operands = 0 : i64, tpu.core_type = #tpu.core_type<tc>, window_params = [{transform_indices = @transform_0, window_bounds = array<i64: 16, 256>}, {pipeline_mode = #tpu.pipeline_mode<synchronous>, transform_indices = @transform_1, window_bounds = array<i64: 1, 256>}, {pipeline_mode = #tpu.pipeline_mode<synchronous>, transform_indices = @transform_2, window_bounds = array<i64: 1, 256>}, {pipeline_mode = #tpu.pipeline_mode<synchronous>, transform_indices = @transform_3, window_bounds = array<i64: 256, 512>}, {pipeline_mode = #tpu.pipeline_mode<synchronous>, transform_indices = @transform_4, window_bounds = array<i64: 1, 512>}, {pipeline_mode = #tpu.pipeline_mode<synchronous>, transform_indices = @transform_5, window_bounds = array<i64: 512, 256>}, {pipeline_mode = #tpu.pipeline_mode<synchronous>, transform_indices = @transform_6, window_bounds = array<i64: 1, 256>}, {pipeline_mode = #tpu.pipeline_mode<synchronous>, transform_indices = @transform_7, window_bounds = array<i64: 1, 256>}, {pipeline_mode = #tpu.pipeline_mode<synchronous>, transform_indices = @transform_8, window_bounds = array<i64: 1, 256>}, {transform_indices = @transform_9, window_bounds = array<i64: 16, 256>}]} {
    %c0 = arith.constant 0 : index
    %c0_0 = arith.constant 0 : index
    %0 = vector.load %arg1[%c0, %c0_0] : memref<16x256xf32, #tpu.memory_space<vmem>>, vector<16x256xf32>
    %c0_1 = arith.constant 0 : index
    %c0_2 = arith.constant 0 : index
    %1 = vector.load %arg2[%c0_1, %c0_2] : memref<1x256xf32, #tpu.memory_space<vmem>>, vector<1x256xf32>
    %c0_3 = arith.constant 0 : index
    %c0_4 = arith.constant 0 : index
    %2 = vector.load %arg3[%c0_3, %c0_4] : memref<1x256xf32, #tpu.memory_space<vmem>>, vector<1x256xf32>
    %cst = arith.constant dense<0.000000e+00> : vector<16xf32>
    %3 = vector.multi_reduction <add>, %0, %cst [1] : vector<16x256xf32> to vector<16xf32>
    %4 = vector.shape_cast %3 : vector<16xf32> to vector<16x1xf32>
    %cst_5 = arith.constant 2.560000e+02 : f32
    %5 = vector.broadcast %cst_5 : f32 to vector<16x1xf32>
    %6 = arith.divf %4, %5 : vector<16x1xf32>
    %7 = vector.broadcast %6 : vector<16x1xf32> to vector<16x256xf32>
    %8 = arith.subf %0, %7 : vector<16x256xf32>
    %9 = arith.mulf %8, %8 : vector<16x256xf32>
    %cst_6 = arith.constant dense<0.000000e+00> : vector<16xf32>
    %10 = vector.multi_reduction <add>, %9, %cst_6 [1] : vector<16x256xf32> to vector<16xf32>
    %11 = vector.shape_cast %10 : vector<16xf32> to vector<16x1xf32>
    %cst_7 = arith.constant 2.560000e+02 : f32
    %12 = vector.broadcast %cst_7 : f32 to vector<16x1xf32>
    %13 = arith.divf %11, %12 : vector<16x1xf32>
    %14 = vector.broadcast %6 : vector<16x1xf32> to vector<16x256xf32>
    %15 = arith.subf %0, %14 : vector<16x256xf32>
    %cst_8 = arith.constant 9.99999974E-6 : f32
    %16 = vector.broadcast %cst_8 : f32 to vector<16x1xf32>
    %17 = arith.addf %13, %16 : vector<16x1xf32>
    %18 = math.rsqrt %17 : vector<16x1xf32>
    %19 = vector.broadcast %18 : vector<16x1xf32> to vector<16x256xf32>
    %20 = arith.mulf %15, %19 : vector<16x256xf32>
    %21 = vector.broadcast %1 : vector<1x256xf32> to vector<16x256xf32>
    %22 = arith.mulf %20, %21 : vector<16x256xf32>
    %23 = vector.broadcast %2 : vector<1x256xf32> to vector<16x256xf32>
    %24 = arith.addf %22, %23 : vector<16x256xf32>
    %25 = arith.truncf %24 : vector<16x256xf32> to vector<16x256xbf16>
    %c0_9 = arith.constant 0 : index
    %c0_10 = arith.constant 0 : index
    %26 = vector.load %arg4[%c0_9, %c0_10] : memref<256x512xbf16, #tpu.memory_space<vmem>>, vector<256x512xbf16>
    %cst_11 = arith.constant dense<0.000000e+00> : vector<16x512xf32>
    %27 = tpu.matmul %25, %26, %cst_11 {dimension_numbers = #tpu.dot_dimension_numbers<[1], [0], [0], [1], [0, 0, 1, 1], [], []>} : vector<16x256xbf16>, vector<256x512xbf16>, vector<16x512xf32> -> vector<16x512xf32>
    %c0_12 = arith.constant 0 : index
    %c0_13 = arith.constant 0 : index
    %28 = vector.load %arg5[%c0_12, %c0_13] : memref<1x512xf32, #tpu.memory_space<vmem>>, vector<1x512xf32>
    %29 = vector.broadcast %28 : vector<1x512xf32> to vector<16x512xf32>
    %30 = arith.addf %27, %29 : vector<16x512xf32>
    %31 = arith.negf %30 : vector<16x512xf32>
    %32 = math.exp %31 : vector<16x512xf32>
    %cst_14 = arith.constant 1.000000e+00 : f32
    %33 = vector.broadcast %cst_14 : f32 to vector<16x512xf32>
    %34 = arith.addf %33, %32 : vector<16x512xf32>
    %35 = arith.divf %33, %34 : vector<16x512xf32>
    %36 = arith.mulf %30, %35 : vector<16x512xf32>
    %37 = arith.truncf %36 : vector<16x512xf32> to vector<16x512xbf16>
    %c0_15 = arith.constant 0 : index
    %c0_16 = arith.constant 0 : index
    %38 = vector.load %arg6[%c0_15, %c0_16] : memref<512x256xbf16, #tpu.memory_space<vmem>>, vector<512x256xbf16>
    %cst_17 = arith.constant dense<0.000000e+00> : vector<16x256xf32>
    %39 = tpu.matmul %37, %38, %cst_17 {dimension_numbers = #tpu.dot_dimension_numbers<[1], [0], [0], [1], [0, 0, 1, 1], [], []>} : vector<16x512xbf16>, vector<512x256xbf16>, vector<16x256xf32> -> vector<16x256xf32>
    %c0_18 = arith.constant 0 : index
    %c0_19 = arith.constant 0 : index
    %40 = vector.load %arg7[%c0_18, %c0_19] : memref<1x256xf32, #tpu.memory_space<vmem>>, vector<1x256xf32>
    %41 = vector.broadcast %40 : vector<1x256xf32> to vector<16x256xf32>
    %42 = arith.addf %39, %41 : vector<16x256xf32>
    %cst_20 = arith.constant 5.000000e-01 : f32
    %43 = vector.broadcast %cst_20 : f32 to vector<16x256xf32>
    %44 = arith.mulf %43, %42 : vector<16x256xf32>
    %45 = arith.addf %0, %44 : vector<16x256xf32>
    %c0_21 = arith.constant 0 : index
    %c0_22 = arith.constant 0 : index
    %46 = vector.load %arg8[%c0_21, %c0_22] : memref<1x256xf32, #tpu.memory_space<vmem>>, vector<1x256xf32>
    %c0_23 = arith.constant 0 : index
    %c0_24 = arith.constant 0 : index
    %47 = vector.load %arg9[%c0_23, %c0_24] : memref<1x256xf32, #tpu.memory_space<vmem>>, vector<1x256xf32>
    %cst_25 = arith.constant dense<0.000000e+00> : vector<16xf32>
    %48 = vector.multi_reduction <add>, %45, %cst_25 [1] : vector<16x256xf32> to vector<16xf32>
    %49 = vector.shape_cast %48 : vector<16xf32> to vector<16x1xf32>
    %cst_26 = arith.constant 2.560000e+02 : f32
    %50 = vector.broadcast %cst_26 : f32 to vector<16x1xf32>
    %51 = arith.divf %49, %50 : vector<16x1xf32>
    %52 = vector.broadcast %51 : vector<16x1xf32> to vector<16x256xf32>
    %53 = arith.subf %45, %52 : vector<16x256xf32>
    %54 = arith.mulf %53, %53 : vector<16x256xf32>
    %cst_27 = arith.constant dense<0.000000e+00> : vector<16xf32>
    %55 = vector.multi_reduction <add>, %54, %cst_27 [1] : vector<16x256xf32> to vector<16xf32>
    %56 = vector.shape_cast %55 : vector<16xf32> to vector<16x1xf32>
    %cst_28 = arith.constant 2.560000e+02 : f32
    %57 = vector.broadcast %cst_28 : f32 to vector<16x1xf32>
    %58 = arith.divf %56, %57 : vector<16x1xf32>
    %59 = vector.broadcast %51 : vector<16x1xf32> to vector<16x256xf32>
    %60 = arith.subf %45, %59 : vector<16x256xf32>
    %cst_29 = arith.constant 9.99999974E-6 : f32
    %61 = vector.broadcast %cst_29 : f32 to vector<16x1xf32>
    %62 = arith.addf %58, %61 : vector<16x1xf32>
    %63 = math.rsqrt %62 : vector<16x1xf32>
    %64 = vector.broadcast %63 : vector<16x1xf32> to vector<16x256xf32>
    %65 = arith.mulf %60, %64 : vector<16x256xf32>
    %66 = vector.broadcast %46 : vector<1x256xf32> to vector<16x256xf32>
    %67 = arith.mulf %65, %66 : vector<16x256xf32>
    %68 = vector.broadcast %47 : vector<1x256xf32> to vector<16x256xf32>
    %69 = arith.addf %67, %68 : vector<16x256xf32>
    %c0_30 = arith.constant 0 : index
    %c0_31 = arith.constant 0 : index
    %70 = vector.load %arg10[%c0_30, %c0_31] : memref<16x256xf32, #tpu.memory_space<vmem>>, vector<16x256xf32>
    tpu.vector_store %arg10[%c0_30, %c0_31], %69 {strides = array<i32>} : memref<16x256xf32, #tpu.memory_space<vmem>>, vector<16x256xf32>,
    return
  }
  func.func @transform_0(%arg0: i32) -> (i32, i32) {
    %c0_i32 = arith.constant 0 : i32
    %c0_i32_0 = arith.constant 0 : i32
    return %arg0, %c0_i32 : i32, i32
  }
  func.func @transform_1(%arg0: i32) -> (i32, i32) {
    %c0_i32 = arith.constant 0 : i32
    %c0_i32_0 = arith.constant 0 : i32
    %c0_i32_1 = arith.constant 0 : i32
    return %c0_i32, %c0_i32_0 : i32, i32
  }
  func.func @transform_2(%arg0: i32) -> (i32, i32) {
    %c0_i32 = arith.constant 0 : i32
    %c0_i32_0 = arith.constant 0 : i32
    %c0_i32_1 = arith.constant 0 : i32
    return %c0_i32, %c0_i32_0 : i32, i32
  }
  func.func @transform_3(%arg0: i32) -> (i32, i32) {
    %c0_i32 = arith.constant 0 : i32
    %c0_i32_0 = arith.constant 0 : i32
    %c0_i32_1 = arith.constant 0 : i32
    return %c0_i32, %c0_i32_0 : i32, i32
  }
  func.func @transform_4(%arg0: i32) -> (i32, i32) {
    %c0_i32 = arith.constant 0 : i32
    %c0_i32_0 = arith.constant 0 : i32
    %c0_i32_1 = arith.constant 0 : i32
    return %c0_i32, %c0_i32_0 : i32, i32
  }
  func.func @transform_5(%arg0: i32) -> (i32, i32) {
    %c0_i32 = arith.constant 0 : i32
    %c0_i32_0 = arith.constant 0 : i32
    %c0_i32_1 = arith.constant 0 : i32
    return %c0_i32, %c0_i32_0 : i32, i32
  }
  func.func @transform_6(%arg0: i32) -> (i32, i32) {
    %c0_i32 = arith.constant 0 : i32
    %c0_i32_0 = arith.constant 0 : i32
    %c0_i32_1 = arith.constant 0 : i32
    return %c0_i32, %c0_i32_0 : i32, i32
  }
  func.func @transform_7(%arg0: i32) -> (i32, i32) {
    %c0_i32 = arith.constant 0 : i32
    %c0_i32_0 = arith.constant 0 : i32
    %c0_i32_1 = arith.constant 0 : i32
    return %c0_i32, %c0_i32_0 : i32, i32
  }
  func.func @transform_8(%arg0: i32) -> (i32, i32) {
    %c0_i32 = arith.constant 0 : i32
    %c0_i32_0 = arith.constant 0 : i32
    %c0_i32_1 = arith.constant 0 : i32
    return %c0_i32, %c0_i32_0 : i32, i32
  }
  func.func @transform_9(%arg0: i32) -> (i32, i32) {
    %c0_i32 = arith.constant 0 : i32
    %c0_i32_0 = arith.constant 0 : i32
    return %arg0, %c0_i32 : i32, i32
  }
}

</mosaic_0001>

<bundles_post_ra>
// kernel: conformer_encoder.13
= control target key start
LH: loop header
LB: loop body
LE: loop exit
PB: predicated region body
PF: predicated region fallthrough
CT: control target
= control target key end

     0   :  { %vm219_vm0 = vcmask 916480   ;;  %v59_v42 = vlaneseq  ;;  %s559_s1 = inlined_call_operand.vmem [shape: bf16[240,256], index: 1, kind: input, shape index: {}]   ;;  %s560_s0 = inlined_call_operand.vmem [shape: f32[32,240], index: 0, kind: input, shape index: {}]   ;;  %s561_s2 = inlined_call_operand.vmem [shape: f32[1,256], index: 2, kind: input, shape index: {}]   ;;  %s562_s3 = inlined_call_operand.vmem [shape: f32[32,256], index: 3, kind: output, shape index: {}]  }
   0x1   :  { %v353_v0 = vld [vmem:[%s559_s1 + $0x74] ss:$8 sps:$4 sm:$0xff]   ;;  %v355_v1 = vld [vmem:[%s559_s1 + $0x70] ss:$8 sps:$4 sm:$0xff]   ;;  %v356_v2 = vld [vmem:[%s559_s1 + $0x64] ss:$8 sps:$4 sm:$0xff]  }
   0x2   :  { %226 = vmatprep.subr.bf16.mxu0 %v353_v0  ;;  %323 = vmatprep.subr.bf16.mxu1 %v353_v0  ;;  %v358_v3 = vld [vmem:[%s559_s1 + $0x60] ss:$8 sps:$4 sm:$0xff]   ;;  %v359_v4 = vld [vmem:[%s559_s1 + $0x54] ss:$8 sps:$4 sm:$0xff]   ;;  %v361_v5 = vld [vmem:[%s559_s1 + $0x50] ss:$8 sps:$4 sm:$0xff]  }
   0x3   :  { %227 = vmatpush1.bf16.msra.mxu0 %v355_v1  ;;  %338 = vmatpush1.bf16.msra.mxu1 %v355_v1  ;;  %v362_v6 = vld [vmem:[%s559_s1 + $0x44] ss:$8 sps:$4 sm:$0xff]   ;;  %v364_v7 = vld [vmem:[%s559_s1 + $0x40] ss:$8 sps:$4 sm:$0xff]   ;;  %v365_v8 = vld [vmem:[%s559_s1 + $0x34] ss:$8 sps:$4 sm:$0xff]  }
   0x4   :  { %228 = vmatprep.subr.bf16.mxu0 %v356_v2  ;;  %324 = vmatprep.subr.bf16.mxu1 %v356_v2  ;;  %v367_v9 = vld [vmem:[%s559_s1 + $0x30] ss:$8 sps:$4 sm:$0xff]   ;;  %v368_v10 = vld [vmem:[%s559_s1 + $0x24] ss:$8 sps:$4 sm:$0xff]   ;;  %v370_v11 = vld [vmem:[%s559_s1 + $0x20] ss:$8 sps:$4 sm:$0xff]  }
   0x5   :  { %v371_v12 = vld [vmem:[%s559_s1 + $0x14] ss:$8 sps:$4 sm:$0xff]   ;;  %v16_v13 = vld [vmem:[%s560_s0 + $0x8] sm:$0xff]  ;;  %v373_v19 = vld [vmem:[%s559_s1 + $0x10] ss:$8 sps:$4 sm:$0xff]   ;;  %v60_v43 = vshrl.u32 %v59_v42, 7 }
   0x6   :  { %v18_v14 = vld [vmem:[%s560_s0 + $0x18] sm:$0xff]  ;;  %v20_v15 = vld [vmem:[%s560_s0 + $0x28] sm:$0xff]  ;;  %v15_v36 = vld [vmem:[%s560_s0] sm:$0xff] }
   0x7   :  { %229 = vmatpush1.bf16.msra.mxu0 %v358_v3  ;;  %339 = vmatpush1.bf16.msra.mxu1 %v358_v3  ;;  %v24_v16 = vpack.c.bf16 %v18_v14, %v16_v13  ;;  %v22_v17 = vld [vmem:[%s560_s0 + $0x38] sm:$0xff]  ;;  %v374_v20 = vld [vmem:[%s559_s1 + $0x4] ss:$8 sps:$4 sm:$0xff]   ;;  %v376_v21 = vld [vmem:[%s559_s1] ss:$8 sps:$4 sm:$0xff]   ;;  %v61_v44 = vsub.s32 0, %v60_v43 }
   0x8   :  { %230 = vmatprep.subr.bf16.mxu0 %v359_v4  ;;  %325 = vmatprep.subr.bf16.mxu1 %v359_v4  ;;  %v26_v18 = vpack.c.bf16 %v22_v17, %v20_v15  ;;  %v377_v22 = vld [vmem:[%s559_s1 + $0xe4] ss:$8 sps:$4 sm:$0xff]   ;;  %v379_v23 = vld [vmem:[%s559_s1 + $0xe0] ss:$8 sps:$4 sm:$0xff]   ;;  %v380_v24 = vld [vmem:[%s559_s1 + $0xd4] ss:$8 sps:$4 sm:$0xff]  }
   0x9   :  { %321 = vmatprep.mubr.msk.bf16.mxu0 %vm219_vm0, %v24_v16  ;;  %v382_v25 = vld [vmem:[%s559_s1 + $0xd0] ss:$8 sps:$4 sm:$0xff]   ;;  %v383_v26 = vld [vmem:[%s559_s1 + $0xc4] ss:$8 sps:$4 sm:$0xff]   ;;  %v385_v27 = vld [vmem:[%s559_s1 + $0xc0] ss:$8 sps:$4 sm:$0xff]  }
   0xa   :  { %322 = vmatprep.mubr.msk.bf16.mxu1 %vm219_vm0, %v26_v18  ;;  %v386_v28 = vld [vmem:[%s559_s1 + $0xb4] ss:$8 sps:$4 sm:$0xff]   ;;  %v388_v29 = vld [vmem:[%s559_s1 + $0xb0] ss:$8 sps:$4 sm:$0xff]   ;;  %v389_v30 = vld [vmem:[%s559_s1 + $0xa4] ss:$8 sps:$4 sm:$0xff]  }
   0xb   :  { %231 = vmatpush1.bf16.msra.mxu0 %v361_v5  ;;  %340 = vmatpush1.bf16.msra.mxu1 %v361_v5  ;;  %v391_v31 = vld [vmem:[%s559_s1 + $0xa0] ss:$8 sps:$4 sm:$0xff]   ;;  %v392_v32 = vld [vmem:[%s559_s1 + $0x94] ss:$8 sps:$4 sm:$0xff]   ;;  %v394_v33 = vld [vmem:[%s559_s1 + $0x90] ss:$8 sps:$4 sm:$0xff]  }
   0xc   :  { %232 = vmatprep.subr.bf16.mxu0 %v362_v6  ;;  %326 = vmatprep.subr.bf16.mxu1 %v362_v6  ;;  %v395_v34 = vld [vmem:[%s559_s1 + $0x84] ss:$8 sps:$4 sm:$0xff]   ;;  %v397_v35 = vld [vmem:[%s559_s1 + $0x80] ss:$8 sps:$4 sm:$0xff]   ;;  %v17_v37 = vld [vmem:[%s560_s0 + $0x10] sm:$0xff]  ;;  %v65_v46 = vsub.s32 1, %v60_v43 }
   0xd   :  { %v19_v38 = vld [vmem:[%s560_s0 + $0x20] sm:$0xff]  ;;  %v21_v39 = vld [vmem:[%s560_s0 + $0x30] sm:$0xff]  ;;  %v23_v40 = vpack.c.bf16 %v17_v37, %v15_v36 }
   0xe   :  { %v25_v41 = vpack.c.bf16 %v21_v39, %v19_v38  ;;  %v57_v45 = vld [vmem:[%s561_s2] sm:$0x3] }
   0xf   :  { %233 = vmatpush1.bf16.msra.mxu0 %v364_v7  ;;  %341 = vmatpush1.bf16.msra.mxu1 %v364_v7  ;;  %v62_v47 = vrot.slane %v57_v45, %v61_v44  ;;  %v66_v48 = vrot.slane %v57_v45, %v65_v46 }
  0x10   :  { %234 = vmatprep.subr.bf16.mxu0 %v365_v8  ;;  %327 = vmatprep.subr.bf16.mxu1 %v365_v8 }
  0x13   :  { %235 = vmatpush1.bf16.msra.mxu0 %v367_v9  ;;  %342 = vmatpush1.bf16.msra.mxu1 %v367_v9 }
  0x14   :  { %236 = vmatprep.subr.bf16.mxu0 %v368_v10  ;;  %328 = vmatprep.subr.bf16.mxu1 %v368_v10 }
  0x17   :  { %237 = vmatpush1.bf16.msra.mxu0 %v370_v11  ;;  %343 = vmatpush1.bf16.msra.mxu1 %v370_v11 }
  0x18   :  { %238 = vmatprep.subr.bf16.mxu0 %v371_v12  ;;  %329 = vmatprep.subr.bf16.mxu1 %v371_v12 }
  0x1b   :  { %239 = vmatpush1.bf16.msra.mxu0 %v373_v19  ;;  %344 = vmatpush1.bf16.msra.mxu1 %v373_v19 }
  0x1c   :  { %240 = vmatprep.subr.bf16.mxu0 %v374_v20  ;;  %330 = vmatprep.subr.bf16.mxu1 %v374_v20 }
  0x1f   :  { %241 = vmatpush1.bf16.msra.mxu0 %v376_v21  ;;  %345 = vmatpush1.bf16.msra.mxu1 %v376_v21 }
  0x20   :  { %244 = vmatprep.subr.bf16.mxu0 %v377_v22  ;;  %331 = vmatprep.subr.bf16.mxu1 %v377_v22 }
  0x23   :  { %245 = vmatpush2.bf16.msra.mxu0 %v379_v23  ;;  %346 = vmatpush2.bf16.msra.mxu1 %v379_v23 }
  0x24   :  { %246 = vmatprep.subr.bf16.mxu0 %v380_v24  ;;  %332 = vmatprep.subr.bf16.mxu1 %v380_v24 }
  0x27   :  { %247 = vmatpush2.bf16.msra.mxu0 %v382_v25  ;;  %347 = vmatpush2.bf16.msra.mxu1 %v382_v25 }
  0x28   :  { %248 = vmatprep.subr.bf16.mxu0 %v383_v26  ;;  %333 = vmatprep.subr.bf16.mxu1 %v383_v26 }
  0x2b   :  { %249 = vmatpush2.bf16.msra.mxu0 %v385_v27  ;;  %348 = vmatpush2.bf16.msra.mxu1 %v385_v27 }
  0x2c   :  { %250 = vmatprep.subr.bf16.mxu0 %v386_v28  ;;  %334 = vmatprep.subr.bf16.mxu1 %v386_v28 }
  0x2f   :  { %251 = vmatpush2.bf16.msra.mxu0 %v388_v29  ;;  %349 = vmatpush2.bf16.msra.mxu1 %v388_v29 }
  0x30   :  { %252 = vmatprep.subr.bf16.mxu0 %v389_v30  ;;  %335 = vmatprep.subr.bf16.mxu1 %v389_v30 }
  0x33   :  { %253 = vmatpush2.bf16.msra.mxu0 %v391_v31  ;;  %350 = vmatpush2.bf16.msra.mxu1 %v391_v31 }
  0x34   :  { %254 = vmatprep.subr.bf16.mxu0 %v392_v32  ;;  %336 = vmatprep.subr.bf16.mxu1 %v392_v32 }
  0x37   :  { %255 = vmatpush2.bf16.msra.mxu0 %v394_v33  ;;  %351 = vmatpush2.bf16.msra.mxu1 %v394_v33 }
  0x38   :  { %256 = vmatprep.subr.bf16.mxu0 %v395_v34  ;;  %337 = vmatprep.subr.bf16.mxu1 %v395_v34 }
  0x3b   :  { %257 = vmatpush2.bf16.msra.mxu0 %v397_v35  ;;  %352 = vmatpush2.bf16.msra.mxu1 %v397_v35 }
  0x3e   :  { %259 = vmatmul.mubr.bf16.vlgmr.msra.gmra.mxu0 %v23_v40  ;;  %269 = vmatmul.mubr.bf16.vlgmr.msra.gmra.mxu1 %v25_v41 }
  0xfe   :  { %v260_v49 = vpop.f32.mrf.mxu0  ;;  %v270_v50 = vpop.f32.mrf.mxu1 }
  0xff   :  { %v261_v51 = vadd.f32 %v260_v49, %v62_v47  ;;  %v271_v52 = vadd.f32 %v270_v50, %v62_v47 }
 0x100   :  { %v262_v53 = vpop.f32.mrf.mxu0  ;;  %v272_v54 = vpop.f32.mrf.mxu1 }
 0x101   :  { %279 = vst [vmem:[%s562_s3] sm:$0xff] %v261_v51  ;;  %283 = vst [vmem:[%s562_s3 + $0x20] sm:$0xff] %v271_v52  ;;  %v263_v55 = vadd.f32 %v262_v53, %v66_v48  ;;  %v273_v56 = vadd.f32 %v272_v54, %v66_v48 }
 0x102   :  { %v264_v57 = vpop.f32.mrf.mxu0  ;;  %v274_v58 = vpop.f32.mrf.mxu1 }
 0x103   :  { %280 = vst [vmem:[%s562_s3 + $0x8] sm:$0xff] %v263_v55  ;;  %284 = vst [vmem:[%s562_s3 + $0x28] sm:$0xff] %v273_v56  ;;  %v265_v59 = vadd.f32 %v264_v57, %v62_v47  ;;  %v275_v60 = vadd.f32 %v274_v58, %v62_v47 }
 0x104   :  { %v266_v61 = vpop.f32.mrf.mxu0  ;;  %v276_v62 = vpop.f32.mrf.mxu1 }
 0x105   :  { %281 = vst [vmem:[%s562_s3 + $0x10] sm:$0xff] %v265_v59  ;;  %285 = vst [vmem:[%s562_s3 + $0x30] sm:$0xff] %v275_v60  ;;  %v267_v63 = vadd.f32 %v266_v61, %v66_v48  ;;  %v277_v0 = vadd.f32 %v276_v62, %v66_v48 }
 0x107   :  { %282 = vst [vmem:[%s562_s3 + $0x18] sm:$0xff] %v267_v63  ;;  %286 = vst [vmem:[%s562_s3 + $0x38] sm:$0xff] %v277_v0 }

// kernel: conformer_encoder.15
= control target key start
LH: loop header
LB: loop body
LE: loop exit
PB: predicated region body
PF: predicated region fallthrough
CT: control target
= control target key end

     0   :  { %v54_v38 = vlaneseq  ;;  %s498_s1 = inlined_call_operand.vmem [shape: bf16[256,256], index: 1, kind: input, shape index: {}]   ;;  %s499_s0 = inlined_call_operand.vmem [shape: f32[16,256], index: 0, kind: input, shape index: {}]   ;;  %s500_s2 = inlined_call_operand.vmem [shape: f32[1,256], index: 2, kind: input, shape index: {}]   ;;  %s501_s3 = inlined_call_operand.vmem [shape: f32[16,256], index: 3, kind: output, shape index: {}]  }
   0x1   :  { %v307_v0 = vld [vmem:[%s498_s1 + $0x74] ss:$8 sps:$4 sm:$0xff]   ;;  %v309_v1 = vld [vmem:[%s498_s1 + $0x70] ss:$8 sps:$4 sm:$0xff]   ;;  %v310_v2 = vld [vmem:[%s498_s1 + $0x64] ss:$8 sps:$4 sm:$0xff]  }
   0x2   :  { %224 = vmatprep.subr.bf16.mxu0 %v307_v0  ;;  %v312_v3 = vld [vmem:[%s498_s1 + $0x60] ss:$8 sps:$4 sm:$0xff]   ;;  %v313_v4 = vld [vmem:[%s498_s1 + $0x54] ss:$8 sps:$4 sm:$0xff]   ;;  %v315_v5 = vld [vmem:[%s498_s1 + $0x50] ss:$8 sps:$4 sm:$0xff]  }
   0x3   :  { %225 = vmatpush1.bf16.msra.mxu0 %v309_v1  ;;  %v316_v6 = vld [vmem:[%s498_s1 + $0x44] ss:$8 sps:$4 sm:$0xff]   ;;  %v318_v7 = vld [vmem:[%s498_s1 + $0x40] ss:$8 sps:$4 sm:$0xff]   ;;  %v319_v8 = vld [vmem:[%s498_s1 + $0x34] ss:$8 sps:$4 sm:$0xff]  }
   0x4   :  { %226 = vmatprep.subr.bf16.mxu0 %v310_v2  ;;  %v321_v9 = vld [vmem:[%s498_s1 + $0x30] ss:$8 sps:$4 sm:$0xff]   ;;  %v322_v10 = vld [vmem:[%s498_s1 + $0x24] ss:$8 sps:$4 sm:$0xff]   ;;  %v324_v11 = vld [vmem:[%s498_s1 + $0x20] ss:$8 sps:$4 sm:$0xff]  }
   0x5   :  { %v325_v12 = vld [vmem:[%s498_s1 + $0x14] ss:$8 sps:$4 sm:$0xff]   ;;  %v15_v13 = vld [vmem:[%s499_s0 + $0x8] sm:$0xff]  ;;  %v327_v16 = vld [vmem:[%s498_s1 + $0x10] ss:$8 sps:$4 sm:$0xff]   ;;  %v55_v39 = vshrl.u32 %v54_v38, 7 }
   0x6   :  { %v17_v14 = vld [vmem:[%s499_s0 + $0x18] sm:$0xff]  ;;  %v328_v17 = vld [vmem:[%s498_s1 + $0x4] ss:$8 sps:$4 sm:$0xff]   ;;  %v330_v18 = vld [vmem:[%s498_s1] ss:$8 sps:$4 sm:$0xff]  }
   0x7   :  { %227 = vmatpush1.bf16.msra.mxu0 %v312_v3  ;;  %v19_v15 = vpack.c.bf16 %v17_v14, %v15_v13  ;;  %v331_v19 = vld [vmem:[%s498_s1 + $0xf4] ss:$8 sps:$4 sm:$0xff]   ;;  %v333_v20 = vld [vmem:[%s498_s1 + $0xf0] ss:$8 sps:$4 sm:$0xff]   ;;  %v334_v21 = vld [vmem:[%s498_s1 + $0xe4] ss:$8 sps:$4 sm:$0xff]  }
   0x8   :  { %228 = vmatprep.subr.bf16.mxu0 %v313_v4  ;;  %v336_v22 = vld [vmem:[%s498_s1 + $0xe0] ss:$8 sps:$4 sm:$0xff]   ;;  %v337_v23 = vld [vmem:[%s498_s1 + $0xd4] ss:$8 sps:$4 sm:$0xff]   ;;  %v339_v24 = vld [vmem:[%s498_s1 + $0xd0] ss:$8 sps:$4 sm:$0xff]  }
   0x9   :  { %256 = vmatprep.mubr.bf16.mxu0 %v19_v15  ;;  %v340_v25 = vld [vmem:[%s498_s1 + $0xc4] ss:$8 sps:$4 sm:$0xff]   ;;  %v342_v26 = vld [vmem:[%s498_s1 + $0xc0] ss:$8 sps:$4 sm:$0xff]   ;;  %v343_v27 = vld [vmem:[%s498_s1 + $0xb4] ss:$8 sps:$4 sm:$0xff]  }
   0xa   :  { %v345_v28 = vld [vmem:[%s498_s1 + $0xb0] ss:$8 sps:$4 sm:$0xff]   ;;  %v346_v29 = vld [vmem:[%s498_s1 + $0xa4] ss:$8 sps:$4 sm:$0xff]   ;;  %v348_v30 = vld [vmem:[%s498_s1 + $0xa0] ss:$8 sps:$4 sm:$0xff]  }
   0xb   :  { %229 = vmatpush1.bf16.msra.mxu0 %v315_v5  ;;  %v349_v31 = vld [vmem:[%s498_s1 + $0x94] ss:$8 sps:$4 sm:$0xff]   ;;  %v351_v32 = vld [vmem:[%s498_s1 + $0x90] ss:$8 sps:$4 sm:$0xff]   ;;  %v352_v33 = vld [vmem:[%s498_s1 + $0x84] ss:$8 sps:$4 sm:$0xff]  }
   0xc   :  { %230 = vmatprep.subr.bf16.mxu0 %v316_v6  ;;  %v354_v34 = vld [vmem:[%s498_s1 + $0x80] ss:$8 sps:$4 sm:$0xff]   ;;  %v16_v36 = vld [vmem:[%s499_s0 + $0x10] sm:$0xff]  ;;  %v56_v40 = vsub.s32 0, %v55_v39  ;;  %v60_v42 = vsub.s32 1, %v55_v39 }
   0xd   :  { %v14_v35 = vld [vmem:[%s499_s0] sm:$0xff] }
   0xe   :  { %v18_v37 = vpack.c.bf16 %v16_v36, %v14_v35  ;;  %v52_v41 = vld [vmem:[%s500_s2] sm:$0x3] }
   0xf   :  { %231 = vmatpush1.bf16.msra.mxu0 %v318_v7  ;;  %v57_v43 = vrot.slane %v52_v41, %v56_v40  ;;  %v61_v44 = vrot.slane %v52_v41, %v60_v42 }
  0x10   :  { %232 = vmatprep.subr.bf16.mxu0 %v319_v8 }
  0x13   :  { %233 = vmatpush1.bf16.msra.mxu0 %v321_v9 }
  0x14   :  { %234 = vmatprep.subr.bf16.mxu0 %v322_v10 }
  0x17   :  { %235 = vmatpush1.bf16.msra.mxu0 %v324_v11 }
  0x18   :  { %236 = vmatprep.subr.bf16.mxu0 %v325_v12 }
  0x1b   :  { %237 = vmatpush1.bf16.msra.mxu0 %v327_v16 }
  0x1c   :  { %238 = vmatprep.subr.bf16.mxu0 %v328_v17 }
  0x1f   :  { %239 = vmatpush1.bf16.msra.mxu0 %v330_v18 }
  0x20   :  { %240 = vmatprep.subr.bf16.mxu0 %v331_v19 }
  0x23   :  { %241 = vmatpush2.bf16.msra.mxu0 %v333_v20 }
  0x24   :  { %242 = vmatprep.subr.bf16.mxu0 %v334_v21 }
  0x27   :  { %243 = vmatpush2.bf16.msra.mxu0 %v336_v22 }
  0x28   :  { %244 = vmatprep.subr.bf16.mxu0 %v337_v23 }
  0x2b   :  { %245 = vmatpush2.bf16.msra.mxu0 %v339_v24 }
  0x2c   :  { %246 = vmatprep.subr.bf16.mxu0 %v340_v25 }
  0x2f   :  { %247 = vmatpush2.bf16.msra.mxu0 %v342_v26 }
  0x30   :  { %248 = vmatprep.subr.bf16.mxu0 %v343_v27 }
  0x33   :  { %249 = vmatpush2.bf16.msra.mxu0 %v345_v28 }
  0x34   :  { %250 = vmatprep.subr.bf16.mxu0 %v346_v29 }
  0x37   :  { %251 = vmatpush2.bf16.msra.mxu0 %v348_v30 }
  0x38   :  { %252 = vmatprep.subr.bf16.mxu0 %v349_v31 }
  0x3b   :  { %253 = vmatpush2.bf16.msra.mxu0 %v351_v32 }
  0x3c   :  { %254 = vmatprep.subr.bf16.mxu0 %v352_v33 }
  0x3f   :  { %255 = vmatpush2.bf16.msra.mxu0 %v354_v34 }
  0x42   :  { %257 = vmatmul.mubr.bf16.vlgmr.msra.gmra.mxu0 %v18_v37 }
 0x102   :  { %v258_v45 = vpop.f32.mrf.mxu0 }
 0x103   :  { %v259_v46 = vadd.f32 %v258_v45, %v57_v43 }
 0x104   :  { %v260_v47 = vpop.f32.mrf.mxu0 }
 0x105   :  { %267 = vst [vmem:[%s501_s3] sm:$0xff] %v259_v46  ;;  %v261_v48 = vadd.f32 %v260_v47, %v61_v44 }
 0x106   :  { %v262_v49 = vpop.f32.mrf.mxu0 }
 0x107   :  { %268 = vst [vmem:[%s501_s3 + $0x8] sm:$0xff] %v261_v48  ;;  %v263_v50 = vadd.f32 %v262_v49, %v57_v43 }
 0x108   :  { %v264_v51 = vpop.f32.mrf.mxu0 }
 0x109   :  { %269 = vst [vmem:[%s501_s3 + $0x10] sm:$0xff] %v263_v50  ;;  %v265_v52 = vadd.f32 %v264_v51, %v61_v44 }
 0x10b   :  { %270 = vst [vmem:[%s501_s3 + $0x18] sm:$0xff] %v265_v52 }

// kernel: conformer_encoder.14
= control target key start
LH: loop header
LB: loop body
LE: loop exit
PB: predicated region body
PF: predicated region fallthrough
CT: control target
= control target key end

     0   :  { %s1356_s1 = inlined_call_operand.vmem [shape: bf16[768,256], index: 1, kind: input, shape index: {}]   ;;  %s1357_s0 = inlined_call_operand.vmem [shape: f32[16,768], index: 0, kind: input, shape index: {}]   ;;  %s1358_s2 = inlined_call_operand.vmem [shape: f32[1,256], index: 2, kind: input, shape index: {}]   ;;  %s1359_s3 = inlined_call_operand.vmem [shape: f32[16,256], index: 3, kind: output, shape index: {}]  }
   0x1   :  { %v853_v0 = vld [vmem:[%s1356_s1 + $0x74] ss:$8 sps:$4 sm:$0xff]   ;;  %v855_v1 = vld [vmem:[%s1356_s1 + $0x70] ss:$8 sps:$4 sm:$0xff]   ;;  %v859_v4 = vld [vmem:[%s1356_s1 + $0x64] ss:$8 sps:$4 sm:$0xff]  }
   0x2   :  { %620 = vmatprep.subr.bf16.mxu0 %v853_v0  ;;  %v856_v2 = vld [vmem:[%s1356_s1 + $0x174] ss:$8 sps:$4 sm:$0xff]   ;;  %v858_v3 = vld [vmem:[%s1356_s1 + $0x170] ss:$8 sps:$4 sm:$0xff]   ;;  %v861_v5 = vld [vmem:[%s1356_s1 + $0x60] ss:$8 sps:$4 sm:$0xff]  }
   0x3   :  { %621 = vmatpush1.bf16.msra.mxu0 %v855_v1  ;;  %663 = vmatprep.subr.bf16.mxu1 %v856_v2  ;;  %v862_v6 = vld [vmem:[%s1356_s1 + $0x164] ss:$8 sps:$4 sm:$0xff]   ;;  %v864_v7 = vld [vmem:[%s1356_s1 + $0x160] ss:$8 sps:$4 sm:$0xff]   ;;  %v865_v8 = vld [vmem:[%s1356_s1 + $0x54] ss:$8 sps:$4 sm:$0xff]  }
   0x4   :  { %664 = vmatpush1.bf16.msra.mxu1 %v858_v3  ;;  %622 = vmatprep.subr.bf16.mxu0 %v859_v4  ;;  %v867_v9 = vld [vmem:[%s1356_s1 + $0x50] ss:$8 sps:$4 sm:$0xff]   ;;  %v868_v10 = vld [vmem:[%s1356_s1 + $0x154] ss:$8 sps:$4 sm:$0xff]   ;;  %v871_v11 = vld [vmem:[%s1356_s1 + $0x44] ss:$8 sps:$4 sm:$0xff]  }
   0x5   :  { %665 = vmatprep.subr.bf16.mxu1 %v862_v6  ;;  %v870_v12 = vld [vmem:[%s1356_s1 + $0x150] ss:$8 sps:$4 sm:$0xff]   ;;  %v874_v13 = vld [vmem:[%s1356_s1 + $0x144] ss:$8 sps:$4 sm:$0xff]   ;;  %v873_v14 = vld [vmem:[%s1356_s1 + $0x40] ss:$8 sps:$4 sm:$0xff]  }
   0x6   :  { %v877_v15 = vld [vmem:[%s1356_s1 + $0x34] ss:$8 sps:$4 sm:$0xff]   ;;  %v876_v16 = vld [vmem:[%s1356_s1 + $0x140] ss:$8 sps:$4 sm:$0xff]   ;;  %v879_v18 = vld [vmem:[%s1356_s1 + $0x30] ss:$8 sps:$4 sm:$0xff]  }
   0x7   :  { %623 = vmatpush1.bf16.msra.mxu0 %v861_v5  ;;  %v880_v17 = vld [vmem:[%s1356_s1 + $0x134] ss:$8 sps:$4 sm:$0xff]   ;;  %v883_v19 = vld [vmem:[%s1356_s1 + $0x24] ss:$8 sps:$4 sm:$0xff]   ;;  %v882_v20 = vld [vmem:[%s1356_s1 + $0x130] ss:$8 sps:$4 sm:$0xff]  }
   0x8   :  { %624 = vmatprep.subr.bf16.mxu0 %v865_v8  ;;  %666 = vmatpush1.bf16.msra.mxu1 %v864_v7  ;;  %v886_v21 = vld [vmem:[%s1356_s1 + $0x124] ss:$8 sps:$4 sm:$0xff]   ;;  %v885_v22 = vld [vmem:[%s1356_s1 + $0x20] ss:$8 sps:$4 sm:$0xff]   ;;  %v889_v23 = vld [vmem:[%s1356_s1 + $0x14] ss:$8 sps:$4 sm:$0xff]  }
   0x9   :  { %667 = vmatprep.subr.bf16.mxu1 %v868_v10  ;;  %v888_v24 = vld [vmem:[%s1356_s1 + $0x120] ss:$8 sps:$4 sm:$0xff]   ;;  %v892_v25 = vld [vmem:[%s1356_s1 + $0x114] ss:$8 sps:$4 sm:$0xff]   ;;  %v891_v26 = vld [vmem:[%s1356_s1 + $0x10] ss:$8 sps:$4 sm:$0xff]  }
   0xa   :  { %v895_v27 = vld [vmem:[%s1356_s1 + $0x4] ss:$8 sps:$4 sm:$0xff]   ;;  %v894_v28 = vld [vmem:[%s1356_s1 + $0x110] ss:$8 sps:$4 sm:$0xff]   ;;  %v897_v30 = vld [vmem:[%s1356_s1] ss:$8 sps:$4 sm:$0xff]  }
   0xb   :  { %625 = vmatpush1.bf16.msra.mxu0 %v867_v9  ;;  %v898_v29 = vld [vmem:[%s1356_s1 + $0x104] ss:$8 sps:$4 sm:$0xff]   ;;  %v901_v31 = vld [vmem:[%s1356_s1 + $0xf4] ss:$8 sps:$4 sm:$0xff]   ;;  %v900_v32 = vld [vmem:[%s1356_s1 + $0x100] ss:$8 sps:$4 sm:$0xff]  }
   0xc   :  { %626 = vmatprep.subr.bf16.mxu0 %v871_v11  ;;  %668 = vmatpush1.bf16.msra.mxu1 %v870_v12  ;;  %v904_v33 = vld [vmem:[%s1356_s1 + $0x1f4] ss:$8 sps:$4 sm:$0xff]   ;;  %v903_v34 = vld [vmem:[%s1356_s1 + $0xf0] ss:$8 sps:$4 sm:$0xff]   ;;  %v907_v35 = vld [vmem:[%s1356_s1 + $0xe4] ss:$8 sps:$4 sm:$0xff]  }
   0xd   :  { %669 = vmatprep.subr.bf16.mxu1 %v874_v13  ;;  %v906_v36 = vld [vmem:[%s1356_s1 + $0x1f0] ss:$8 sps:$4 sm:$0xff]   ;;  %v910_v37 = vld [vmem:[%s1356_s1 + $0x1e4] ss:$8 sps:$4 sm:$0xff]   ;;  %v909_v38 = vld [vmem:[%s1356_s1 + $0xe0] ss:$8 sps:$4 sm:$0xff]  }
   0xe   :  { %v913_v39 = vld [vmem:[%s1356_s1 + $0xd4] ss:$8 sps:$4 sm:$0xff]   ;;  %v912_v40 = vld [vmem:[%s1356_s1 + $0x1e0] ss:$8 sps:$4 sm:$0xff]   ;;  %v915_v42 = vld [vmem:[%s1356_s1 + $0xd0] ss:$8 sps:$4 sm:$0xff]  }
   0xf   :  { %627 = vmatpush1.bf16.msra.mxu0 %v873_v14  ;;  %v916_v41 = vld [vmem:[%s1356_s1 + $0x1d4] ss:$8 sps:$4 sm:$0xff]   ;;  %v919_v43 = vld [vmem:[%s1356_s1 + $0xc4] ss:$8 sps:$4 sm:$0xff]   ;;  %v918_v44 = vld [vmem:[%s1356_s1 + $0x1d0] ss:$8 sps:$4 sm:$0xff]  }
  0x10   :  { %628 = vmatprep.subr.bf16.mxu0 %v877_v15  ;;  %670 = vmatpush1.bf16.msra.mxu1 %v876_v16  ;;  %v922_v45 = vld [vmem:[%s1356_s1 + $0x1c4] ss:$8 sps:$4 sm:$0xff]   ;;  %v21_v47 = vld [vmem:[%s1357_s0 + $0x38] sm:$0xff]  ;;  %v921_v48 = vld [vmem:[%s1356_s1 + $0xc0] ss:$8 sps:$4 sm:$0xff]  }
  0x11   :  { %671 = vmatprep.subr.bf16.mxu1 %v880_v17  ;;  %v15_v46 = vld [vmem:[%s1357_s0 + $0x8] sm:$0xff]  ;;  %v925_v50 = vld [vmem:[%s1356_s1 + $0xb4] ss:$8 sps:$4 sm:$0xff]   ;;  %v927_v56 = vld [vmem:[%s1356_s1 + $0xb0] ss:$8 sps:$4 sm:$0xff]  }
  0x12   :  { %v27_v49 = vpack.c.bf16 %v21_v47, %v15_v46  ;;  %v924_v51 = vld [vmem:[%s1356_s1 + $0x1c0] ss:$8 sps:$4 sm:$0xff]   ;;  %v17_v52 = vld [vmem:[%s1357_s0 + $0x18] sm:$0xff]  ;;  %v931_v57 = vld [vmem:[%s1356_s1 + $0xa4] ss:$8 sps:$4 sm:$0xff]  }
  0x13   :  { %629 = vmatpush1.bf16.msra.mxu0 %v879_v18  ;;  %v23_v53 = vld [vmem:[%s1357_s0 + $0x48] sm:$0xff]  ;;  %v928_v54 = vld [vmem:[%s1356_s1 + $0x1b4] ss:$8 sps:$4 sm:$0xff]   ;;  %v930_v58 = vld [vmem:[%s1356_s1 + $0x1b0] ss:$8 sps:$4 sm:$0xff]  }
  0x14   :  { %630 = vmatprep.subr.bf16.mxu0 %v883_v19  ;;  %672 = vmatpush1.bf16.msra.mxu1 %v882_v20  ;;  %v29_v55 = vpack.c.bf16 %v23_v53, %v17_v52  ;;  %v934_v59 = vld [vmem:[%s1356_s1 + $0x1a4] ss:$8 sps:$4 sm:$0xff]   ;;  %v933_v60 = vld [vmem:[%s1356_s1 + $0xa0] ss:$8 sps:$4 sm:$0xff]   ;;  %v937_v61 = vld [vmem:[%s1356_s1 + $0x94] ss:$8 sps:$4 sm:$0xff]  }
  0x15   :  { %673 = vmatprep.subr.bf16.mxu1 %v886_v21  ;;  %652 = vmatprep.mubr.bf16.mxu0 %v27_v49  ;;  %v936_v62 = vld [vmem:[%s1356_s1 + $0x1a0] ss:$8 sps:$4 sm:$0xff]   ;;  %v940_v63 = vld [vmem:[%s1356_s1 + $0x194] ss:$8 sps:$4 sm:$0xff]   ;;  %v939_v0 = vld [vmem:[%s1356_s1 + $0x90] ss:$8 sps:$4 sm:$0xff]  }
  0x16   :  { %695 = vmatprep.mubr.bf16.mxu1 %v29_v55  ;;  %v942_v1 = vld [vmem:[%s1356_s1 + $0x190] ss:$8 sps:$4 sm:$0xff]   ;;  %v943_v2 = vld [vmem:[%s1356_s1 + $0x84] ss:$8 sps:$4 sm:$0xff]   ;;  %v945_v3 = vld [vmem:[%s1356_s1 + $0x80] ss:$8 sps:$4 sm:$0xff]  }
  0x17   :  { %631 = vmatpush1.bf16.msra.mxu0 %v885_v22  ;;  %v946_v4 = vld [vmem:[%s1356_s1 + $0x184] ss:$8 sps:$4 sm:$0xff]   ;;  %v948_v6 = vld [vmem:[%s1356_s1 + $0x180] ss:$8 sps:$4 sm:$0xff]   ;;  %v20_v7 = vld [vmem:[%s1357_s0 + $0x30] sm:$0xff] }
  0x18   :  { %632 = vmatprep.subr.bf16.mxu0 %v889_v23  ;;  %674 = vmatpush1.bf16.msra.mxu1 %v888_v24  ;;  %v14_v5 = vld [vmem:[%s1357_s0] sm:$0xff]  ;;  %v951_v8 = vld [vmem:[%s1356_s1 + $0x274] ss:$8 sps:$4 sm:$0xff]   ;;  %v949_v12 = vld [vmem:[%s1356_s1 + $0x270] ss:$8 sps:$4 sm:$0xff]  }
  0x19   :  { %675 = vmatprep.subr.bf16.mxu1 %v892_v25  ;;  %v16_v9 = vld [vmem:[%s1357_s0 + $0x10] sm:$0xff]  ;;  %v22_v10 = vld [vmem:[%s1357_s0 + $0x40] sm:$0xff]  ;;  %v26_v11 = vpack.c.bf16 %v20_v7, %v14_v5  ;;  %v19_v15 = vld [vmem:[%s1357_s0 + $0x28] sm:$0xff] }
  0x1a   :  { %v28_v13 = vpack.c.bf16 %v22_v10, %v16_v9  ;;  %v954_v14 = vld [vmem:[%s1356_s1 + $0x264] ss:$8 sps:$4 sm:$0xff]   ;;  %v952_v16 = vld [vmem:[%s1356_s1 + $0x260] ss:$8 sps:$4 sm:$0xff]   ;;  %v25_v17 = vld [vmem:[%s1357_s0 + $0x58] sm:$0xff] }
  0x1b   :  { %633 = vmatpush1.bf16.msra.mxu0 %v891_v26  ;;  %v957_v18 = vld [vmem:[%s1356_s1 + $0x254] ss:$8 sps:$4 sm:$0xff]   ;;  %v31_v19 = vpack.c.bf16 %v25_v17, %v19_v15  ;;  %v955_v20 = vld [vmem:[%s1356_s1 + $0x250] ss:$8 sps:$4 sm:$0xff]   ;;  %v960_v21 = vld [vmem:[%s1356_s1 + $0x244] ss:$8 sps:$4 sm:$0xff]  }
  0x1c   :  { %634 = vmatprep.subr.bf16.mxu0 %v895_v27  ;;  %676 = vmatpush1.bf16.msra.mxu1 %v894_v28  ;;  %v958_v22 = vld [vmem:[%s1356_s1 + $0x240] ss:$8 sps:$4 sm:$0xff]   ;;  %v963_v23 = vld [vmem:[%s1356_s1 + $0x234] ss:$8 sps:$4 sm:$0xff]   ;;  %v961_v24 = vld [vmem:[%s1356_s1 + $0x230] ss:$8 sps:$4 sm:$0xff]  }
  0x1d   :  { %677 = vmatprep.subr.bf16.mxu1 %v898_v29  ;;  %v966_v25 = vld [vmem:[%s1356_s1 + $0x224] ss:$8 sps:$4 sm:$0xff]   ;;  %v964_v26 = vld [vmem:[%s1356_s1 + $0x220] ss:$8 sps:$4 sm:$0xff]   ;;  %v969_v27 = vld [vmem:[%s1356_s1 + $0x214] ss:$8 sps:$4 sm:$0xff]  }
  0x1e   :  { %v967_v28 = vld [vmem:[%s1356_s1 + $0x210] ss:$8 sps:$4 sm:$0xff]   ;;  %v972_v29 = vld [vmem:[%s1356_s1 + $0x204] ss:$8 sps:$4 sm:$0xff]   ;;  %v994_v46 = vld [vmem:[%s1356_s1 + $0x280] ss:$8 sps:$4 sm:$0xff]  }
  0x1f   :  { %635 = vmatpush1.bf16.msra.mxu0 %v897_v30  ;;  %v970_v30 = vld [vmem:[%s1356_s1 + $0x200] ss:$8 sps:$4 sm:$0xff]  }
  0x20   :  { %636 = vmatprep.subr.bf16.mxu0 %v901_v31  ;;  %678 = vmatpush1.bf16.msra.mxu1 %v900_v32  ;;  %v975_v31 = vld [vmem:[%s1356_s1 + $0x2f4] ss:$8 sps:$4 sm:$0xff]   ;;  %v973_v32 = vld [vmem:[%s1356_s1 + $0x2f0] ss:$8 sps:$4 sm:$0xff]   ;;  %v18_v47 = vld [vmem:[%s1357_s0 + $0x20] sm:$0xff] }
  0x21   :  { %679 = vmatprep.subr.bf16.mxu1 %v904_v33  ;;  %v978_v33 = vld [vmem:[%s1356_s1 + $0x2e4] ss:$8 sps:$4 sm:$0xff]  }
  0x23   :  { %637 = vmatpush2.bf16.msra.mxu0 %v903_v34  ;;  %v976_v34 = vld [vmem:[%s1356_s1 + $0x2e0] ss:$8 sps:$4 sm:$0xff]  }
  0x24   :  { %638 = vmatprep.subr.bf16.mxu0 %v907_v35  ;;  %680 = vmatpush2.bf16.msra.mxu1 %v906_v36  ;;  %v981_v35 = vld [vmem:[%s1356_s1 + $0x2d4] ss:$8 sps:$4 sm:$0xff]   ;;  %v979_v36 = vld [vmem:[%s1356_s1 + $0x2d0] ss:$8 sps:$4 sm:$0xff]  }
  0x25   :  { %681 = vmatprep.subr.bf16.mxu1 %v910_v37  ;;  %v984_v37 = vld [vmem:[%s1356_s1 + $0x2c4] ss:$8 sps:$4 sm:$0xff]  }
  0x27   :  { %639 = vmatpush2.bf16.msra.mxu0 %v909_v38  ;;  %v982_v38 = vld [vmem:[%s1356_s1 + $0x2c0] ss:$8 sps:$4 sm:$0xff]  }
  0x28   :  { %640 = vmatprep.subr.bf16.mxu0 %v913_v39  ;;  %682 = vmatpush2.bf16.msra.mxu1 %v912_v40  ;;  %v987_v39 = vld [vmem:[%s1356_s1 + $0x2b4] ss:$8 sps:$4 sm:$0xff]   ;;  %v985_v40 = vld [vmem:[%s1356_s1 + $0x2b0] ss:$8 sps:$4 sm:$0xff]  }
  0x29   :  { %683 = vmatprep.subr.bf16.mxu1 %v916_v41  ;;  %v990_v41 = vld [vmem:[%s1356_s1 + $0x2a4] ss:$8 sps:$4 sm:$0xff]  }
  0x2b   :  { %641 = vmatpush2.bf16.msra.mxu0 %v915_v42  ;;  %v988_v42 = vld [vmem:[%s1356_s1 + $0x2a0] ss:$8 sps:$4 sm:$0xff]  }
  0x2c   :  { %642 = vmatprep.subr.bf16.mxu0 %v919_v43  ;;  %684 = vmatpush2.bf16.msra.mxu1 %v918_v44  ;;  %v993_v43 = vld [vmem:[%s1356_s1 + $0x294] ss:$8 sps:$4 sm:$0xff]   ;;  %v991_v44 = vld [vmem:[%s1356_s1 + $0x290] ss:$8 sps:$4 sm:$0xff]  }
  0x2d   :  { %685 = vmatprep.subr.bf16.mxu1 %v922_v45  ;;  %v996_v45 = vld [vmem:[%s1356_s1 + $0x284] ss:$8 sps:$4 sm:$0xff]  }
  0x2f   :  { %643 = vmatpush2.bf16.msra.mxu0 %v921_v48  ;;  %v24_v48 = vld [vmem:[%s1357_s0 + $0x50] sm:$0xff] }
  0x30   :  { %644 = vmatprep.subr.bf16.mxu0 %v925_v50  ;;  %686 = vmatpush2.bf16.msra.mxu1 %v924_v51  ;;  %v30_v49 = vpack.c.bf16 %v24_v48, %v18_v47  ;;  %v130_v50 = vlaneseq }
  0x31   :  { %687 = vmatprep.subr.bf16.mxu1 %v928_v54  ;;  %v128_v54 = vld [vmem:[%s1358_s2] sm:$0x3] }
  0x32   :  { %v131_v51 = vshrl.u32 %v130_v50, 7 }
  0x33   :  { %645 = vmatpush2.bf16.msra.mxu0 %v927_v56 }
  0x34   :  { %646 = vmatprep.subr.bf16.mxu0 %v931_v57  ;;  %688 = vmatpush2.bf16.msra.mxu1 %v930_v58  ;;  %v132_v53 = vsub.s32 0, %v131_v51  ;;  %v136_v55 = vsub.s32 1, %v131_v51 }
  0x35   :  { %689 = vmatprep.subr.bf16.mxu1 %v934_v59 }
  0x36   :  { %v133_v58 = vrot.slane %v128_v54, %v132_v53  ;;  %v137_v59 = vrot.slane %v128_v54, %v136_v55 }
  0x37   :  { %647 = vmatpush2.bf16.msra.mxu0 %v933_v60 }
  0x38   :  { %648 = vmatprep.subr.bf16.mxu0 %v937_v61  ;;  %690 = vmatpush2.bf16.msra.mxu1 %v936_v62 }
  0x39   :  { %691 = vmatprep.subr.bf16.mxu1 %v940_v63 }
  0x3b   :  { %649 = vmatpush2.bf16.msra.mxu0 %v939_v0 }
  0x3c   :  { %650 = vmatprep.subr.bf16.mxu0 %v943_v2  ;;  %692 = vmatpush2.bf16.msra.mxu1 %v942_v1 }
  0x3d   :  { %693 = vmatprep.subr.bf16.mxu1 %v946_v4 }
  0x3f   :  { %651 = vmatpush2.bf16.msra.mxu0 %v945_v3 }
  0x40   :  { %706 = vmatprep.subr.bf16.mxu0 %v951_v8  ;;  %694 = vmatpush2.bf16.msra.mxu1 %v948_v6 }
  0x42   :  { %653 = vmatmul.mubr.bf16.vlgmr.msra.gmra.mxu0 %v26_v11 }
  0x43   :  { %707 = vmatpush1.bf16.msra.mxu0 %v949_v12  ;;  %696 = vmatmul.mubr.bf16.vlgmr.msra.gmra.mxu1 %v28_v13 }
  0x44   :  { %708 = vmatprep.subr.bf16.mxu0 %v954_v14  ;;  %738 = vmatprep.mubr.bf16.mxu0 %v31_v19 }
  0x47   :  { %709 = vmatpush1.bf16.msra.mxu0 %v952_v16 }
  0x48   :  { %710 = vmatprep.subr.bf16.mxu0 %v957_v18 }
  0x4b   :  { %711 = vmatpush1.bf16.msra.mxu0 %v955_v20 }
  0x4c   :  { %712 = vmatprep.subr.bf16.mxu0 %v960_v21 }
  0x4f   :  { %713 = vmatpush1.bf16.msra.mxu0 %v958_v22 }
  0x50   :  { %714 = vmatprep.subr.bf16.mxu0 %v963_v23 }
  0x53   :  { %715 = vmatpush1.bf16.msra.mxu0 %v961_v24 }
  0x54   :  { %716 = vmatprep.subr.bf16.mxu0 %v966_v25 }
  0x57   :  { %717 = vmatpush1.bf16.msra.mxu0 %v964_v26 }
  0x58   :  { %718 = vmatprep.subr.bf16.mxu0 %v969_v27 }
  0x5b   :  { %719 = vmatpush1.bf16.msra.mxu0 %v967_v28 }
  0x5c   :  { %720 = vmatprep.subr.bf16.mxu0 %v972_v29 }
  0x5f   :  { %721 = vmatpush1.bf16.msra.mxu0 %v970_v30 }
  0x60   :  { %722 = vmatprep.subr.bf16.mxu0 %v975_v31 }
  0x63   :  { %723 = vmatpush2.bf16.msra.mxu0 %v973_v32 }
  0x64   :  { %724 = vmatprep.subr.bf16.mxu0 %v978_v33 }
  0x67   :  { %725 = vmatpush2.bf16.msra.mxu0 %v976_v34 }
  0x68   :  { %726 = vmatprep.subr.bf16.mxu0 %v981_v35 }
  0x6b   :  { %727 = vmatpush2.bf16.msra.mxu0 %v979_v36 }
  0x6c   :  { %728 = vmatprep.subr.bf16.mxu0 %v984_v37 }
  0x6f   :  { %729 = vmatpush2.bf16.msra.mxu0 %v982_v38 }
  0x70   :  { %730 = vmatprep.subr.bf16.mxu0 %v987_v39 }
  0x73   :  { %731 = vmatpush2.bf16.msra.mxu0 %v985_v40 }
  0x74   :  { %732 = vmatprep.subr.bf16.mxu0 %v990_v41 }
  0x77   :  { %733 = vmatpush2.bf16.msra.mxu0 %v988_v42 }
  0x78   :  { %734 = vmatprep.subr.bf16.mxu0 %v993_v43 }
  0x7b   :  { %735 = vmatpush2.bf16.msra.mxu0 %v991_v44 }
  0x7c   :  { %736 = vmatprep.subr.bf16.mxu0 %v996_v45 }
  0x7f   :  { %737 = vmatpush2.bf16.msra.mxu0 %v994_v46 }
  0x82   :  { %739 = vmatmul.mubr.bf16.vlgmr.msra.gmra.mxu0 %v30_v49 }
 0x102   :  { %v654_v52 = vpop.f32.mrf.mxu0 }
 0x103   :  { %v697_v57 = vpop.f32.mrf.mxu1  ;;  %v655_v62 = vadd.f32 %v654_v52, %v133_v58 }
 0x104   :  { %v656_v56 = vpop.f32.mrf.mxu0 }
 0x105   :  { %v699_v61 = vpop.f32.mrf.mxu1  ;;  %v657_v63 = vadd.f32 %v656_v56, %v137_v59  ;;  %v698_v2 = vadd.f32 %v697_v57, %v655_v62 }
 0x106   :  { %v658_v60 = vpop.f32.mrf.mxu0 }
 0x107   :  { %v701_v1 = vpop.f32.mrf.mxu1  ;;  %v659_v3 = vadd.f32 %v658_v60, %v133_v58  ;;  %v700_v5 = vadd.f32 %v699_v61, %v657_v63 }
 0x108   :  { %v660_v0 = vpop.f32.mrf.mxu0 }
 0x109   :  { %v661_v6 = vadd.f32 %v660_v0, %v137_v59  ;;  %v703_v8 = vpop.f32.mrf.mxu1  ;;  %v702_v10 = vadd.f32 %v701_v1, %v659_v3 }
 0x10b   :  { %v704_v13 = vadd.f32 %v703_v8, %v661_v6 }
 0x142   :  { %v740_v4 = vpop.f32.mrf.mxu0 }
 0x143   :  { %v741_v7 = vadd.f32 %v740_v4, %v698_v2 }
 0x144   :  { %v742_v9 = vpop.f32.mrf.mxu0 }
 0x145   :  { %749 = vst [vmem:[%s1359_s3] sm:$0xff] %v741_v7  ;;  %v743_v11 = vadd.f32 %v742_v9, %v700_v5 }
 0x146   :  { %v744_v12 = vpop.f32.mrf.mxu0 }
 0x147   :  { %750 = vst [vmem:[%s1359_s3 + $0x8] sm:$0xff] %v743_v11  ;;  %v745_v14 = vadd.f32 %v744_v12, %v702_v10 }
 0x148   :  { %v746_v15 = vpop.f32.mrf.mxu0 }
 0x149   :  { %751 = vst [vmem:[%s1359_s3 + $0x10] sm:$0xff] %v745_v14  ;;  %v747_v16 = vadd.f32 %v746_v15, %v704_v13 }
 0x14b   :  { %752 = vst [vmem:[%s1359_s3 + $0x18] sm:$0xff] %v747_v16 }

// kernel: conformer_encoder.16
= control target key start
LH: loop header
LB: loop body
LE: loop exit
PB: predicated region body
PF: predicated region fallthrough
CT: control target
= control target key end

     0   :  { %s2065_s0 = inlined_call_operand.vmem [shape: f32[16,256], index: 0, kind: input, shape index: {}]   ;;  %s2066_s7 = inlined_call_operand.vmem [shape: f32[1,256], index: 7, kind: input, shape index: {}]   ;;  %s2067_s8 = inlined_call_operand.vmem [shape: f32[1,256], index: 8, kind: input, shape index: {}]   ;;  %s2068_s3 = inlined_call_operand.vmem [shape: bf16[256,512], index: 3, kind: input, shape index: {}]   ;;  %s2069_s5 = inlined_call_operand.vmem [shape: bf16[512,256], index: 5, kind: input, shape index: {}]   ;;  %s2070_s1 = inlined_call_operand.vmem [shape: f32[1,256], index: 1, kind: input, shape index: {}]   ;;  %s2071_s2 = inlined_call_operand.vmem [shape: f32[1,256], index: 2, kind: input, shape index: {}]   ;;  %s2072_s4 = inlined_call_operand.vmem [shape: f32[1,512], index: 4, kind: input, shape index: {}]   ;;  %s2073_s6 = inlined_call_operand.vmem [shape: f32[1,256], index: 6, kind: input, shape index: {}]   ;;  %s2074_s9 = inlined_call_operand.vmem [shape: f32[16,256], index: 9, kind: output, shape index: {}]  }
   0x1   :  { %v1574_v0 = vld [vmem:[%s2065_s0] sm:$0xff]  ;;  %v1579_v1 = vld [vmem:[%s2065_s0 + $0x8] sm:$0xff]  ;;  %v1584_v2 = vld [vmem:[%s2065_s0 + $0x10] sm:$0xff] }
   0x2   :  { %v38_v3 = vadd.f32 %v1579_v1, %v1574_v0  ;;  %v1591_v4 = vld [vmem:[%s2065_s0 + $0x18] sm:$0xff]  ;;  %v1289_v6 = vld [vmem:[%s2068_s3 + $0xe4] ss:$16 sps:$4 sm:$0xff]   ;;  %v1293_v8 = vld [vmem:[%s2068_s3 + $0xe0] ss:$16 sps:$4 sm:$0xff]  }
   0x3   :  { %v41_v5 = vadd.f32 %v1591_v4, %v1584_v2  ;;  %v1291_v7 = vld [vmem:[%s2068_s3 + $0xec] ss:$16 sps:$4 sm:$0xff]   ;;  %509 = vmatprep.subr.bf16.mxu0 %v1289_v6  ;;  %v1294_v9 = vld [vmem:[%s2068_s3 + $0xe8] ss:$16 sps:$4 sm:$0xff]   ;;  %v1295_v10 = vld [vmem:[%s2068_s3 + $0xc4] ss:$16 sps:$4 sm:$0xff]  }
   0x4   :  { %39 = vadd.xlane.f32.xlu0 %v38_v3  ;;  %552 = vmatprep.subr.bf16.mxu1 %v1291_v7  ;;  %v1297_v11 = vld [vmem:[%s2068_s3 + $0xcc] ss:$16 sps:$4 sm:$0xff]   ;;  %v1299_v12 = vld [vmem:[%s2068_s3 + $0xc0] ss:$16 sps:$4 sm:$0xff]   ;;  %v1300_v13 = vld [vmem:[%s2068_s3 + $0xc8] ss:$16 sps:$4 sm:$0xff]  }
   0x5   :  { %510 = vmatpush1.bf16.msra.mxu0 %v1293_v8  ;;  %553 = vmatpush1.bf16.msra.mxu1 %v1294_v9  ;;  %v1301_v14 = vld [vmem:[%s2068_s3 + $0xa4] ss:$16 sps:$4 sm:$0xff]   ;;  %v1303_v15 = vld [vmem:[%s2068_s3 + $0xac] ss:$16 sps:$4 sm:$0xff]   ;;  %v1305_v16 = vld [vmem:[%s2068_s3 + $0xa0] ss:$16 sps:$4 sm:$0xff]  }
   0x6   :  { %511 = vmatprep.subr.bf16.mxu0 %v1295_v10  ;;  %554 = vmatprep.subr.bf16.mxu1 %v1297_v11  ;;  %v1306_v17 = vld [vmem:[%s2068_s3 + $0xa8] ss:$16 sps:$4 sm:$0xff]   ;;  %v1307_v18 = vld [vmem:[%s2068_s3 + $0x84] ss:$16 sps:$4 sm:$0xff]   ;;  %v1309_v19 = vld [vmem:[%s2068_s3 + $0x8c] ss:$16 sps:$4 sm:$0xff]  }
   0x7   :  { %v1311_v20 = vld [vmem:[%s2068_s3 + $0x80] ss:$16 sps:$4 sm:$0xff]   ;;  %v1312_v21 = vld [vmem:[%s2068_s3 + $0x88] ss:$16 sps:$4 sm:$0xff]   ;;  %v1313_v22 = vld [vmem:[%s2068_s3 + $0x64] ss:$16 sps:$4 sm:$0xff]  }
   0x8   :  { %42 = vadd.xlane.f32.xlu0 %v41_v5  ;;  %v1315_v23 = vld [vmem:[%s2068_s3 + $0x6c] ss:$16 sps:$4 sm:$0xff]   ;;  %v1317_v24 = vld [vmem:[%s2068_s3 + $0x60] ss:$16 sps:$4 sm:$0xff]   ;;  %v1318_v25 = vld [vmem:[%s2068_s3 + $0x68] ss:$16 sps:$4 sm:$0xff]  }
   0x9   :  { %512 = vmatpush1.bf16.msra.mxu0 %v1299_v12  ;;  %555 = vmatpush1.bf16.msra.mxu1 %v1300_v13  ;;  %v1319_v26 = vld [vmem:[%s2068_s3 + $0x44] ss:$16 sps:$4 sm:$0xff]   ;;  %v1321_v27 = vld [vmem:[%s2068_s3 + $0x4c] ss:$16 sps:$4 sm:$0xff]   ;;  %v1323_v28 = vld [vmem:[%s2068_s3 + $0x40] ss:$16 sps:$4 sm:$0xff]  }
   0xa   :  { %513 = vmatprep.subr.bf16.mxu0 %v1301_v14  ;;  %556 = vmatprep.subr.bf16.mxu1 %v1303_v15  ;;  %v1324_v29 = vld [vmem:[%s2068_s3 + $0x48] ss:$16 sps:$4 sm:$0xff]   ;;  %v1325_v30 = vld [vmem:[%s2068_s3 + $0x24] ss:$16 sps:$4 sm:$0xff]   ;;  %v1327_v31 = vld [vmem:[%s2068_s3 + $0x2c] ss:$16 sps:$4 sm:$0xff]  }
   0xb   :  { %v1329_v32 = vld [vmem:[%s2068_s3 + $0x20] ss:$16 sps:$4 sm:$0xff]   ;;  %v1330_v33 = vld [vmem:[%s2068_s3 + $0x28] ss:$16 sps:$4 sm:$0xff]   ;;  %v1331_v34 = vld [vmem:[%s2068_s3 + $0x4] ss:$16 sps:$4 sm:$0xff]  }
   0xc   :  { %v1333_v35 = vld [vmem:[%s2068_s3 + $0xc] ss:$16 sps:$4 sm:$0xff]   ;;  %v1335_v36 = vld [vmem:[%s2068_s3] ss:$16 sps:$4 sm:$0xff]   ;;  %v1336_v37 = vld [vmem:[%s2068_s3 + $0x8] ss:$16 sps:$4 sm:$0xff]  }
   0xd   :  { %514 = vmatpush1.bf16.msra.mxu0 %v1305_v16  ;;  %557 = vmatpush1.bf16.msra.mxu1 %v1306_v17  ;;  %v1337_v38 = vld [vmem:[%s2068_s3 + $0x1e4] ss:$16 sps:$4 sm:$0xff]   ;;  %v1339_v39 = vld [vmem:[%s2068_s3 + $0x1ec] ss:$16 sps:$4 sm:$0xff]   ;;  %v1341_v54 = vld [vmem:[%s2068_s3 + $0x1e0] ss:$16 sps:$4 sm:$0xff]  }
   0xe   :  { %515 = vmatprep.subr.bf16.mxu0 %v1307_v18  ;;  %558 = vmatprep.subr.bf16.mxu1 %v1309_v19  ;;  %v1342_v55 = vld [vmem:[%s2068_s3 + $0x1e8] ss:$16 sps:$4 sm:$0xff]   ;;  %v1343_v56 = vld [vmem:[%s2068_s3 + $0x1c4] ss:$16 sps:$4 sm:$0xff]   ;;  %v1345_v57 = vld [vmem:[%s2068_s3 + $0x1cc] ss:$16 sps:$4 sm:$0xff]  }
   0xf   :  { %v1347_v58 = vld [vmem:[%s2068_s3 + $0x1c0] ss:$16 sps:$4 sm:$0xff]   ;;  %v1348_v59 = vld [vmem:[%s2068_s3 + $0x1c8] ss:$16 sps:$4 sm:$0xff]   ;;  %v1349_v60 = vld [vmem:[%s2068_s3 + $0x1a4] ss:$16 sps:$4 sm:$0xff]  }
  0x10   :  { %v1351_v61 = vld [vmem:[%s2068_s3 + $0x1ac] ss:$16 sps:$4 sm:$0xff]   ;;  %v1353_v62 = vld [vmem:[%s2068_s3 + $0x1a0] ss:$16 sps:$4 sm:$0xff]   ;;  %v1354_v63 = vld [vmem:[%s2068_s3 + $0x1a8] ss:$16 sps:$4 sm:$0xff]  }
  0x11   :  { %516 = vmatpush1.bf16.msra.mxu0 %v1311_v20  ;;  %559 = vmatpush1.bf16.msra.mxu1 %v1312_v21  ;;  %v1360_v3 = vld [vmem:[%s2068_s3 + $0x188] ss:$16 sps:$4 sm:$0xff]   ;;  %v1363_v5 = vld [vmem:[%s2068_s3 + $0x16c] ss:$16 sps:$4 sm:$0xff]   ;;  %v1365_v6 = vld [vmem:[%s2068_s3 + $0x160] ss:$16 sps:$4 sm:$0xff]  }
  0x12   :  { %517 = vmatprep.subr.bf16.mxu0 %v1313_v22  ;;  %560 = vmatprep.subr.bf16.mxu1 %v1315_v23  ;;  %v1366_v7 = vld [vmem:[%s2068_s3 + $0x168] ss:$16 sps:$4 sm:$0xff]   ;;  %v1367_v8 = vld [vmem:[%s2068_s3 + $0x144] ss:$16 sps:$4 sm:$0xff]   ;;  %v1369_v9 = vld [vmem:[%s2068_s3 + $0x14c] ss:$16 sps:$4 sm:$0xff]  }
  0x13   :  { %v1371_v10 = vld [vmem:[%s2068_s3 + $0x140] ss:$16 sps:$4 sm:$0xff]   ;;  %v1372_v11 = vld [vmem:[%s2068_s3 + $0x148] ss:$16 sps:$4 sm:$0xff]   ;;  %v1373_v12 = vld [vmem:[%s2068_s3 + $0x124] ss:$16 sps:$4 sm:$0xff]  }
  0x14   :  { %v1375_v13 = vld [vmem:[%s2068_s3 + $0x12c] ss:$16 sps:$4 sm:$0xff]   ;;  %v1377_v14 = vld [vmem:[%s2068_s3 + $0x120] ss:$16 sps:$4 sm:$0xff]   ;;  %v1378_v15 = vld [vmem:[%s2068_s3 + $0x128] ss:$16 sps:$4 sm:$0xff]  }
  0x15   :  { %518 = vmatpush1.bf16.msra.mxu0 %v1317_v24  ;;  %561 = vmatpush1.bf16.msra.mxu1 %v1318_v25  ;;  %v1379_v16 = vld [vmem:[%s2068_s3 + $0x104] ss:$16 sps:$4 sm:$0xff]   ;;  %v1381_v17 = vld [vmem:[%s2068_s3 + $0x10c] ss:$16 sps:$4 sm:$0xff]   ;;  %v1383_v18 = vld [vmem:[%s2068_s3 + $0x100] ss:$16 sps:$4 sm:$0xff]  }
  0x16   :  { %519 = vmatprep.subr.bf16.mxu0 %v1319_v26  ;;  %562 = vmatprep.subr.bf16.mxu1 %v1321_v27  ;;  %v1384_v19 = vld [vmem:[%s2068_s3 + $0x108] ss:$16 sps:$4 sm:$0xff]   ;;  %v1387_v20 = vld [vmem:[%s2069_s5 + $0x74] ss:$8 sps:$4 sm:$0xff]  }
  0x17   :  { %v1390_v21 = vld [vmem:[%s2069_s5 + $0x174] ss:$8 sps:$4 sm:$0xff]  }
  0x19   :  { %520 = vmatpush1.bf16.msra.mxu0 %v1323_v28  ;;  %563 = vmatpush1.bf16.msra.mxu1 %v1324_v29  ;;  %v72_v28 = vlaneseq }
  0x1a   :  { %521 = vmatprep.subr.bf16.mxu0 %v1325_v30  ;;  %564 = vmatprep.subr.bf16.mxu1 %v1327_v31 }
  0x1b   :  { %v1813_v29 = vshrl.u32 %v72_v28, 7  ;;  %v1447_v28 = vld [vmem:[%s2069_s5 + $0xd4] ss:$8 sps:$4 sm:$0xff]  }
  0x1d   :  { %522 = vmatpush1.bf16.msra.mxu0 %v1329_v32  ;;  %565 = vmatpush1.bf16.msra.mxu1 %v1330_v33  ;;  %v1816_v30 = vsub.s32 0, %v1813_v29  ;;  %v1819_v31 = vsub.s32 1, %v1813_v29  ;;  %v36_v32 = vld [vmem:[%s2070_s1] sm:$0x3] }
  0x1e   :  { %523 = vmatprep.subr.bf16.mxu0 %v1331_v34  ;;  %566 = vmatprep.subr.bf16.mxu1 %v1333_v35  ;;  %v37_v34 = vld [vmem:[%s2071_s2] sm:$0x3] }
  0x21   :  { %524 = vmatpush1.bf16.msra.mxu0 %v1335_v36  ;;  %567 = vmatpush1.bf16.msra.mxu1 %v1336_v37  ;;  %v75_v36 = vrot.slane %v36_v32, %v1816_v30  ;;  %v79_v37 = vrot.slane %v36_v32, %v1819_v31  ;;  %v1450_v32 = vld [vmem:[%s2069_s5 + $0x1d4] ss:$8 sps:$4 sm:$0xff]  }
  0x22   :  { %525 = vmatprep.subr.bf16.mxu0 %v1337_v38  ;;  %568 = vmatprep.subr.bf16.mxu1 %v1339_v39 }
  0x25   :  { %526 = vmatpush2.bf16.msra.mxu0 %v1341_v54  ;;  %569 = vmatpush2.bf16.msra.mxu1 %v1342_v55 }
  0x26   :  { %527 = vmatprep.subr.bf16.mxu0 %v1343_v56  ;;  %570 = vmatprep.subr.bf16.mxu1 %v1345_v57  ;;  %v1396_v57 = vld [vmem:[%s2069_s5 + $0x164] ss:$8 sps:$4 sm:$0xff]  }
  0x29   :  { %528 = vmatpush2.bf16.msra.mxu0 %v1347_v58  ;;  %571 = vmatpush2.bf16.msra.mxu1 %v1348_v59  ;;  %v1391_v58 = vld [vmem:[%s2069_s5 + $0x60] ss:$8 sps:$4 sm:$0xff]  }
  0x2a   :  { %529 = vmatprep.subr.bf16.mxu0 %v1349_v60  ;;  %572 = vmatprep.subr.bf16.mxu1 %v1351_v61  ;;  %v1394_v59 = vld [vmem:[%s2069_s5 + $0x160] ss:$8 sps:$4 sm:$0xff]   ;;  %v1399_v60 = vld [vmem:[%s2069_s5 + $0x54] ss:$8 sps:$4 sm:$0xff]  }
  0x2b   :  { %v1402_v61 = vld [vmem:[%s2069_s5 + $0x154] ss:$8 sps:$4 sm:$0xff]  }
  0x2d   :  { %530 = vmatpush2.bf16.msra.mxu0 %v1353_v62  ;;  %573 = vmatpush2.bf16.msra.mxu1 %v1354_v63  ;;  %v1397_v62 = vld [vmem:[%s2069_s5 + $0x50] ss:$8 sps:$4 sm:$0xff]  }
  0x2e   :  { %v1400_v63 = vld [vmem:[%s2069_s5 + $0x150] ss:$8 sps:$4 sm:$0xff]  }
  0x8d   :  { %v40_v40 = vpop.xlane.xlu0 %39 }
  0x8e   :  { %v45_v41 = vmul.f32 0.00390625, %v40_v40  ;;  %v90_v40 = vrot.slane %v37_v34, %v1816_v30 }
  0x90   :  { %v1698_v42 = vsub.f32 %v1574_v0, %v45_v41  ;;  %v1701_v43 = vsub.f32 %v1579_v1, %v45_v41  ;;  %v1355_v0 = vld [vmem:[%s2068_s3 + $0x184] ss:$16 sps:$4 sm:$0xff]   ;;  %v1357_v1 = vld [vmem:[%s2068_s3 + $0x18c] ss:$16 sps:$4 sm:$0xff]   ;;  %v94_v41 = vrot.slane %v37_v34, %v1819_v31  ;;  %v1448_v34 = vld [vmem:[%s2069_s5 + $0x1d0] ss:$8 sps:$4 sm:$0xff]  }
  0x91   :  { %v43_v44 = vpop.xlane.xlu0 %42  ;;  %531 = vmatprep.subr.bf16.mxu0 %v1355_v0  ;;  %574 = vmatprep.subr.bf16.mxu1 %v1357_v1  ;;  %v1405_v0 = vld [vmem:[%s2069_s5 + $0x44] ss:$8 sps:$4 sm:$0xff]  }
  0x92   :  { %v46_v45 = vmul.f32 0.00390625, %v43_v44  ;;  %v51_v46 = vmul.f32 %v1698_v42, %v1698_v42  ;;  %v52_v47 = vmul.f32 %v1701_v43, %v1701_v43  ;;  %575 = vmatpush2.bf16.msra.mxu1 %v1360_v3  ;;  %v1408_v1 = vld [vmem:[%s2069_s5 + $0x144] ss:$8 sps:$4 sm:$0xff]   ;;  %v1406_v3 = vld [vmem:[%s2069_s5 + $0x140] ss:$8 sps:$4 sm:$0xff]  }
  0x93   :  { %576 = vmatprep.subr.bf16.mxu1 %v1363_v5  ;;  %v1414_v5 = vld [vmem:[%s2069_s5 + $0x134] ss:$8 sps:$4 sm:$0xff]  }
  0x94   :  { %v1708_v48 = vsub.f32 %v1584_v2, %v46_v45  ;;  %v1711_v49 = vsub.f32 %v1591_v4, %v46_v45  ;;  %v55_v50 = vadd.f32 %v52_v47, %v51_v46  ;;  %v1359_v2 = vld [vmem:[%s2068_s3 + $0x180] ss:$16 sps:$4 sm:$0xff]   ;;  %v1361_v4 = vld [vmem:[%s2068_s3 + $0x164] ss:$16 sps:$4 sm:$0xff]  }
  0x95   :  { %532 = vmatpush2.bf16.msra.mxu0 %v1359_v2  ;;  %v1403_v2 = vld [vmem:[%s2069_s5 + $0x40] ss:$8 sps:$4 sm:$0xff]  }
  0x96   :  { %56 = vadd.xlane.f32.xlu1 %v55_v50  ;;  %v53_v51 = vmul.f32 %v1708_v48, %v1708_v48  ;;  %v54_v52 = vmul.f32 %v1711_v49, %v1711_v49  ;;  %533 = vmatprep.subr.bf16.mxu0 %v1361_v4  ;;  %v1411_v4 = vld [vmem:[%s2069_s5 + $0x34] ss:$8 sps:$4 sm:$0xff]  }
  0x97   :  { %577 = vmatpush2.bf16.msra.mxu1 %v1366_v7  ;;  %v1412_v7 = vld [vmem:[%s2069_s5 + $0x130] ss:$8 sps:$4 sm:$0xff]  }
  0x98   :  { %v58_v53 = vadd.f32 %v54_v52, %v53_v51  ;;  %578 = vmatprep.subr.bf16.mxu1 %v1369_v9  ;;  %v1420_v9 = vld [vmem:[%s2069_s5 + $0x124] ss:$8 sps:$4 sm:$0xff]  }
  0x99   :  { %534 = vmatpush2.bf16.msra.mxu0 %v1365_v6  ;;  %v1409_v6 = vld [vmem:[%s2069_s5 + $0x30] ss:$8 sps:$4 sm:$0xff]  }
  0x9a   :  { %59 = vadd.xlane.f32.xlu1 %v58_v53  ;;  %535 = vmatprep.subr.bf16.mxu0 %v1367_v8  ;;  %v1417_v8 = vld [vmem:[%s2069_s5 + $0x24] ss:$8 sps:$4 sm:$0xff]  }
  0x9b   :  { %579 = vmatpush2.bf16.msra.mxu1 %v1372_v11  ;;  %v1418_v11 = vld [vmem:[%s2069_s5 + $0x120] ss:$8 sps:$4 sm:$0xff]  }
  0x9c   :  { %580 = vmatprep.subr.bf16.mxu1 %v1375_v13  ;;  %v1426_v13 = vld [vmem:[%s2069_s5 + $0x114] ss:$8 sps:$4 sm:$0xff]  }
  0x9d   :  { %536 = vmatpush2.bf16.msra.mxu0 %v1371_v10  ;;  %v1415_v10 = vld [vmem:[%s2069_s5 + $0x20] ss:$8 sps:$4 sm:$0xff]  }
  0x9e   :  { %537 = vmatprep.subr.bf16.mxu0 %v1373_v12  ;;  %v1423_v12 = vld [vmem:[%s2069_s5 + $0x14] ss:$8 sps:$4 sm:$0xff]  }
  0x9f   :  { %581 = vmatpush2.bf16.msra.mxu1 %v1378_v15  ;;  %v1424_v15 = vld [vmem:[%s2069_s5 + $0x110] ss:$8 sps:$4 sm:$0xff]  }
  0xa0   :  { %582 = vmatprep.subr.bf16.mxu1 %v1381_v17  ;;  %v1432_v17 = vld [vmem:[%s2069_s5 + $0x104] ss:$8 sps:$4 sm:$0xff]  }
  0xa1   :  { %538 = vmatpush2.bf16.msra.mxu0 %v1377_v14  ;;  %v1421_v14 = vld [vmem:[%s2069_s5 + $0x10] ss:$8 sps:$4 sm:$0xff]  }
  0xa2   :  { %539 = vmatprep.subr.bf16.mxu0 %v1379_v16  ;;  %v1429_v16 = vld [vmem:[%s2069_s5 + $0x4] ss:$8 sps:$4 sm:$0xff]  }
  0xa3   :  { %583 = vmatpush2.bf16.msra.mxu1 %v1384_v19  ;;  %v1430_v19 = vld [vmem:[%s2069_s5 + $0x100] ss:$8 sps:$4 sm:$0xff]  }
  0xa4   :  { %1094 = vmatprep.subr.bf16.mxu1 %v1390_v21  ;;  %v1438_v21 = vld [vmem:[%s2069_s5 + $0x1f4] ss:$8 sps:$4 sm:$0xff]  }
  0xa5   :  { %540 = vmatpush2.bf16.msra.mxu0 %v1383_v18  ;;  %v1427_v18 = vld [vmem:[%s2069_s5] ss:$8 sps:$4 sm:$0xff]  }
  0xa6   :  { %1051 = vmatprep.subr.bf16.mxu0 %v1387_v20  ;;  %v1435_v20 = vld [vmem:[%s2069_s5 + $0xf4] ss:$8 sps:$4 sm:$0xff]  }
 0x11f   :  { %v57_v22 = vpop.xlane.xlu1 %56 }
 0x120   :  { %v61_v23 = vmul.f32 0.00390625, %v57_v22  ;;  %v1433_v22 = vld [vmem:[%s2069_s5 + $0xf0] ss:$8 sps:$4 sm:$0xff]  }
 0x122   :  { %v63_v24 = vadd.f32 1e-05, %v61_v23  ;;  %v1436_v23 = vld [vmem:[%s2069_s5 + $0x1f0] ss:$8 sps:$4 sm:$0xff]  }
 0x123   :  { %v60_v25 = vpop.xlane.xlu1 %59 }
 0x124   :  { %1481 = vrsqrt.f32 %v63_v24  ;;  %v62_v26 = vmul.f32 0.00390625, %v60_v25  ;;  %v1441_v24 = vld [vmem:[%s2069_s5 + $0xe4] ss:$8 sps:$4 sm:$0xff]  }
 0x125   :  { %v1444_v25 = vld [vmem:[%s2069_s5 + $0x1e4] ss:$8 sps:$4 sm:$0xff]  }
 0x126   :  { %v64_v27 = vadd.f32 1e-05, %v62_v26  ;;  %v1439_v26 = vld [vmem:[%s2069_s5 + $0xe0] ss:$8 sps:$4 sm:$0xff]  }
 0x128   :  { %1483 = vrsqrt.f32 %v64_v27  ;;  %v1442_v27 = vld [vmem:[%s2069_s5 + $0x1e0] ss:$8 sps:$4 sm:$0xff]  }
 0x131   :  { %v1482_v33 = vpop.eup %1481 }
 0x132   :  { %v68_v35 = vmul.f32 %v1482_v33, %v1701_v43  ;;  %v67_v38 = vmul.f32 %v1482_v33, %v1698_v42  ;;  %v1385_v42 = vld [vmem:[%s2069_s5 + $0x70] ss:$8 sps:$4 sm:$0xff]  }
 0x133   :  { %v1445_v33 = vld [vmem:[%s2069_s5 + $0xd0] ss:$8 sps:$4 sm:$0xff]  }
 0x134   :  { %v83_v45 = vmul.f32 %v79_v37, %v68_v35  ;;  %v82_v47 = vmul.f32 %v75_v36, %v67_v38  ;;  %v1453_v35 = vld [vmem:[%s2069_s5 + $0xc4] ss:$8 sps:$4 sm:$0xff]   ;;  %v1454_v38 = vld [vmem:[%s2069_s5 + $0x1c0] ss:$8 sps:$4 sm:$0xff]  }
 0x135   :  { %v1484_v39 = vpop.eup %1483 }
 0x136   :  { %v70_v44 = vmul.f32 %v1484_v39, %v1711_v49  ;;  %v69_v46 = vmul.f32 %v1484_v39, %v1708_v48  ;;  %v98_v43 = vadd.f32 %v94_v41, %v83_v45  ;;  %v97_v53 = vadd.f32 %v90_v40, %v82_v47  ;;  %v1388_v49 = vld [vmem:[%s2069_s5 + $0x170] ss:$8 sps:$4 sm:$0xff]   ;;  %v1393_v48 = vld [vmem:[%s2069_s5 + $0x64] ss:$8 sps:$4 sm:$0xff]   ;;  %v1459_v39 = vld [vmem:[%s2069_s5 + $0xb4] ss:$8 sps:$4 sm:$0xff]  }
 0x137   :  { %v1465_v45 = vld [vmem:[%s2069_s5 + $0xa4] ss:$8 sps:$4 sm:$0xff]   ;;  %v1463_v47 = vld [vmem:[%s2069_s5 + $0xa0] ss:$8 sps:$4 sm:$0xff]  }
 0x138   :  { %v85_v50 = vmul.f32 %v79_v37, %v70_v44  ;;  %v84_v51 = vmul.f32 %v75_v36, %v69_v46  ;;  %v1456_v36 = vld [vmem:[%s2069_s5 + $0x1c4] ss:$8 sps:$4 sm:$0xff]   ;;  %v1451_v37 = vld [vmem:[%s2069_s5 + $0xc0] ss:$8 sps:$4 sm:$0xff]   ;;  %v1460_v44 = vld [vmem:[%s2069_s5 + $0x1b0] ss:$8 sps:$4 sm:$0xff]  }
 0x139   :  { %v1468_v46 = vld [vmem:[%s2069_s5 + $0x1a4] ss:$8 sps:$4 sm:$0xff]  }
 0x13a   :  { %v100_v52 = vadd.f32 %v94_v41, %v85_v50  ;;  %v99_v54 = vadd.f32 %v90_v40, %v84_v51  ;;  %v1462_v40 = vld [vmem:[%s2069_s5 + $0x1b4] ss:$8 sps:$4 sm:$0xff]   ;;  %v1457_v41 = vld [vmem:[%s2069_s5 + $0xb0] ss:$8 sps:$4 sm:$0xff]   ;;  %v1466_v50 = vld [vmem:[%s2069_s5 + $0x1a0] ss:$8 sps:$4 sm:$0xff]  }
 0x13b   :  { %v1471_v51 = vld [vmem:[%s2069_s5 + $0x94] ss:$8 sps:$4 sm:$0xff]  }
 0x13c   :  { %v102_v55 = vpack.c.bf16 %v100_v52, %v98_v43  ;;  %v101_v56 = vpack.c.bf16 %v99_v54, %v97_v53  ;;  %v1474_v43 = vld [vmem:[%s2069_s5 + $0x194] ss:$8 sps:$4 sm:$0xff]   ;;  %v1469_v52 = vld [vmem:[%s2069_s5 + $0x90] ss:$8 sps:$4 sm:$0xff]   ;;  %v1477_v54 = vld [vmem:[%s2069_s5 + $0x84] ss:$8 sps:$4 sm:$0xff]  }
 0x13d   :  { %v1472_v53 = vld [vmem:[%s2069_s5 + $0x190] ss:$8 sps:$4 sm:$0xff]  }
 0x13e   :  { %541 = vmatprep.mubr.bf16.mxu0 %v102_v55  ;;  %584 = vmatprep.mubr.bf16.mxu1 %v102_v55  ;;  %v1480_v55 = vld [vmem:[%s2069_s5 + $0x184] ss:$8 sps:$4 sm:$0xff]  }
 0x13f   :  { %542 = vmatmul.mubr.bf16.vlgmr.msra.gmra.mxu0 %v101_v56  ;;  %585 = vmatmul.mubr.bf16.vlgmr.msra.gmra.mxu1 %v101_v56  ;;  %v1475_v56 = vld [vmem:[%s2069_s5 + $0x80] ss:$8 sps:$4 sm:$0xff]  }
 0x140   :  { %1052 = vmatpush1.bf16.msra.mxu0 %v1385_v42  ;;  %1095 = vmatpush1.bf16.msra.mxu1 %v1388_v49  ;;  %v1478_v42 = vld [vmem:[%s2069_s5 + $0x180] ss:$8 sps:$4 sm:$0xff]   ;;  %v179_v49 = vsub.s32 2, %v1813_v29 }
 0x141   :  { %1053 = vmatprep.subr.bf16.mxu0 %v1393_v48  ;;  %1096 = vmatprep.subr.bf16.mxu1 %v1396_v57  ;;  %v167_v48 = vld [vmem:[%s2072_s4] sm:$0xf]  ;;  %v183_v57 = vsub.s32 3, %v1813_v29 }
 0x144   :  { %1054 = vmatpush1.bf16.msra.mxu0 %v1391_v58  ;;  %1097 = vmatpush1.bf16.msra.mxu1 %v1394_v59  ;;  %v172_v58 = vrot.slane %v167_v48, %v1816_v30  ;;  %v180_v59 = vrot.slane %v167_v48, %v179_v49 }
 0x145   :  { %1055 = vmatprep.subr.bf16.mxu0 %v1399_v60  ;;  %1098 = vmatprep.subr.bf16.mxu1 %v1402_v61  ;;  %v176_v60 = vrot.slane %v167_v48, %v1819_v31  ;;  %v184_v61 = vrot.slane %v167_v48, %v183_v57 }
 0x148   :  { %1056 = vmatpush1.bf16.msra.mxu0 %v1397_v62  ;;  %1099 = vmatpush1.bf16.msra.mxu1 %v1400_v63 }
 0x149   :  { %1057 = vmatprep.subr.bf16.mxu0 %v1405_v0  ;;  %1100 = vmatprep.subr.bf16.mxu1 %v1408_v1 }
 0x14c   :  { %1058 = vmatpush1.bf16.msra.mxu0 %v1403_v2  ;;  %1101 = vmatpush1.bf16.msra.mxu1 %v1406_v3 }
 0x14d   :  { %1059 = vmatprep.subr.bf16.mxu0 %v1411_v4  ;;  %1102 = vmatprep.subr.bf16.mxu1 %v1414_v5 }
 0x150   :  { %1060 = vmatpush1.bf16.msra.mxu0 %v1409_v6  ;;  %1103 = vmatpush1.bf16.msra.mxu1 %v1412_v7 }
 0x151   :  { %1061 = vmatprep.subr.bf16.mxu0 %v1417_v8  ;;  %1104 = vmatprep.subr.bf16.mxu1 %v1420_v9 }
 0x154   :  { %1062 = vmatpush1.bf16.msra.mxu0 %v1415_v10  ;;  %1105 = vmatpush1.bf16.msra.mxu1 %v1418_v11 }
 0x155   :  { %1063 = vmatprep.subr.bf16.mxu0 %v1423_v12  ;;  %1106 = vmatprep.subr.bf16.mxu1 %v1426_v13 }
 0x158   :  { %1064 = vmatpush1.bf16.msra.mxu0 %v1421_v14  ;;  %1107 = vmatpush1.bf16.msra.mxu1 %v1424_v15 }
 0x159   :  { %1065 = vmatprep.subr.bf16.mxu0 %v1429_v16  ;;  %1108 = vmatprep.subr.bf16.mxu1 %v1432_v17 }
 0x15c   :  { %1066 = vmatpush1.bf16.msra.mxu0 %v1427_v18  ;;  %1109 = vmatpush1.bf16.msra.mxu1 %v1430_v19 }
 0x15d   :  { %1067 = vmatprep.subr.bf16.mxu0 %v1435_v20  ;;  %1110 = vmatprep.subr.bf16.mxu1 %v1438_v21 }
 0x160   :  { %1068 = vmatpush2.bf16.msra.mxu0 %v1433_v22  ;;  %1111 = vmatpush2.bf16.msra.mxu1 %v1436_v23 }
 0x161   :  { %1069 = vmatprep.subr.bf16.mxu0 %v1441_v24  ;;  %1112 = vmatprep.subr.bf16.mxu1 %v1444_v25 }
 0x164   :  { %1070 = vmatpush2.bf16.msra.mxu0 %v1439_v26  ;;  %1113 = vmatpush2.bf16.msra.mxu1 %v1442_v27 }
 0x165   :  { %1071 = vmatprep.subr.bf16.mxu0 %v1447_v28  ;;  %1114 = vmatprep.subr.bf16.mxu1 %v1450_v32 }
 0x168   :  { %1072 = vmatpush2.bf16.msra.mxu0 %v1445_v33  ;;  %1115 = vmatpush2.bf16.msra.mxu1 %v1448_v34 }
 0x169   :  { %1073 = vmatprep.subr.bf16.mxu0 %v1453_v35  ;;  %1116 = vmatprep.subr.bf16.mxu1 %v1456_v36 }
 0x16c   :  { %1074 = vmatpush2.bf16.msra.mxu0 %v1451_v37  ;;  %1117 = vmatpush2.bf16.msra.mxu1 %v1454_v38 }
 0x16d   :  { %1075 = vmatprep.subr.bf16.mxu0 %v1459_v39  ;;  %1118 = vmatprep.subr.bf16.mxu1 %v1462_v40 }
 0x170   :  { %1076 = vmatpush2.bf16.msra.mxu0 %v1457_v41  ;;  %1119 = vmatpush2.bf16.msra.mxu1 %v1460_v44 }
 0x171   :  { %1077 = vmatprep.subr.bf16.mxu0 %v1465_v45  ;;  %1120 = vmatprep.subr.bf16.mxu1 %v1468_v46 }
 0x174   :  { %1078 = vmatpush2.bf16.msra.mxu0 %v1463_v47  ;;  %1121 = vmatpush2.bf16.msra.mxu1 %v1466_v50 }
 0x175   :  { %1079 = vmatprep.subr.bf16.mxu0 %v1471_v51  ;;  %1122 = vmatprep.subr.bf16.mxu1 %v1474_v43 }
 0x178   :  { %1080 = vmatpush2.bf16.msra.mxu0 %v1469_v52  ;;  %1123 = vmatpush2.bf16.msra.mxu1 %v1472_v53 }
 0x179   :  { %1081 = vmatprep.subr.bf16.mxu0 %v1477_v54  ;;  %1124 = vmatprep.subr.bf16.mxu1 %v1480_v55 }
 0x17c   :  { %1082 = vmatpush2.bf16.msra.mxu0 %v1475_v56  ;;  %1125 = vmatpush2.bf16.msra.mxu1 %v1478_v42 }
 0x1ff   :  { %v543_v62 = vpop.f32.mrf.mxu0  ;;  %v586_v63 = vpop.f32.mrf.mxu1 }
 0x200   :  { %v2028_v0 = vadd.f32 %v543_v62, %v172_v58  ;;  %v2030_v1 = vadd.f32 %v586_v63, %v180_v59 }
 0x201   :  { %v545_v2 = vpop.f32.mrf.mxu0  ;;  %v588_v3 = vpop.f32.mrf.mxu1 }
 0x202   :  { %v1217_v4 = vmul.f32 -1.442695, %v2028_v0  ;;  %v1219_v5 = vmul.f32 -1.442695, %v2030_v1  ;;  %v546_v6 = vadd.f32 %v545_v2, %v176_v60  ;;  %v589_v29 = vadd.f32 %v588_v3, %v184_v61 }
 0x203   :  { %v547_v7 = vpop.f32.mrf.mxu0  ;;  %v590_v8 = vpop.f32.mrf.mxu1 }
 0x204   :  { %1485 = vpow2.f32 %v1217_v4  ;;  %v1218_v9 = vmul.f32 -1.442695, %v546_v6  ;;  %v1220_v10 = vmul.f32 -1.442695, %v589_v29  ;;  %v548_v11 = vadd.f32 %v547_v7, %v172_v58 }
 0x205   :  { %1487 = vpow2.f32 %v1219_v5  ;;  %v591_v12 = vadd.f32 %v590_v8, %v180_v59  ;;  %v549_v13 = vpop.f32.mrf.mxu0  ;;  %v592_v14 = vpop.f32.mrf.mxu1 }
 0x206   :  { %1489 = vpow2.f32 %v1218_v9  ;;  %v1221_v15 = vmul.f32 -1.442695, %v548_v11  ;;  %v550_v16 = vadd.f32 %v549_v13, %v176_v60  ;;  %v593_v17 = vadd.f32 %v592_v14, %v184_v61  ;;  %v719_v60 = vld [vmem:[%s2073_s6] sm:$0x3] }
 0x207   :  { %1491 = vpow2.f32 %v1220_v10  ;;  %v1223_v18 = vmul.f32 -1.442695, %v591_v12  ;;  %v724_v61 = vrot.slane %v719_v60, %v1816_v30  ;;  %v728_v62 = vrot.slane %v719_v60, %v1819_v31 }
 0x208   :  { %1493 = vpow2.f32 %v1221_v15  ;;  %v1222_v19 = vmul.f32 -1.442695, %v550_v16  ;;  %v1224_v20 = vmul.f32 -1.442695, %v593_v17  ;;  %v1518_v15 = vld [vmem:[%s2065_s0 + $0x8] sm:$0xff] }
 0x209   :  { %1495 = vpow2.f32 %v1223_v18 }
 0x20a   :  { %1497 = vpow2.f32 %v1222_v19  ;;  %v1519_v19 = vld [vmem:[%s2065_s0 + $0x10] sm:$0xff] }
 0x20b   :  { %1499 = vpow2.f32 %v1224_v20 }
 0x211   :  { %v1486_v21 = vpop.eup %1485 }
 0x212   :  { %v1488_v22 = vpop.eup %1487  ;;  %v619_v23 = vadd.f32 1.0, %v1486_v21 }
 0x213   :  { %v1490_v24 = vpop.eup %1489  ;;  %v621_v25 = vadd.f32 1.0, %v1488_v22  ;;  %v1520_v22 = vld [vmem:[%s2065_s0 + $0x18] sm:$0xff] }
 0x214   :  { %v1492_v26 = vpop.eup %1491  ;;  %1501 = vrcp.f32 %v619_v23  ;;  %v620_v27 = vadd.f32 1.0, %v1490_v24 }
 0x215   :  { %v1494_v28 = vpop.eup %1493  ;;  %1503 = vrcp.f32 %v621_v25  ;;  %v622_v32 = vadd.f32 1.0, %v1492_v26 }
 0x216   :  { %v1496_v33 = vpop.eup %1495  ;;  %1505 = vrcp.f32 %v620_v27  ;;  %v623_v34 = vadd.f32 1.0, %v1494_v28 }
 0x217   :  { %v1498_v35 = vpop.eup %1497  ;;  %1507 = vrcp.f32 %v622_v32  ;;  %v625_v36 = vadd.f32 1.0, %v1496_v33 }
 0x218   :  { %v1500_v37 = vpop.eup %1499  ;;  %1509 = vrcp.f32 %v623_v34  ;;  %v624_v38 = vadd.f32 1.0, %v1498_v35 }
 0x219   :  { %1511 = vrcp.f32 %v625_v36  ;;  %v626_v39 = vadd.f32 1.0, %v1500_v37 }
 0x21a   :  { %1513 = vrcp.f32 %v624_v38 }
 0x21b   :  { %1515 = vrcp.f32 %v626_v39 }
 0x221   :  { %v1502_v40 = vpop.eup %1501 }
 0x222   :  { %v1504_v41 = vpop.eup %1503  ;;  %v643_v55 = vmul.f32 %v1502_v40, %v2028_v0 }
 0x223   :  { %v1506_v44 = vpop.eup %1505  ;;  %v645_v49 = vmul.f32 %v1504_v41, %v2030_v1 }
 0x224   :  { %v1508_v45 = vpop.eup %1507  ;;  %v644_v52 = vmul.f32 %v1506_v44, %v546_v6 }
 0x225   :  { %v1510_v46 = vpop.eup %1509  ;;  %v646_v56 = vmul.f32 %v1508_v45, %v589_v29 }
 0x226   :  { %v1512_v47 = vpop.eup %1511  ;;  %v647_v51 = vmul.f32 %v1510_v46, %v548_v11  ;;  %v1517_v11 = vld [vmem:[%s2065_s0] sm:$0xff] }
 0x227   :  { %v1514_v50 = vpop.eup %1513  ;;  %v649_v53 = vmul.f32 %v1512_v47, %v591_v12 }
 0x228   :  { %v1516_v43 = vpop.eup %1515  ;;  %v648_v54 = vmul.f32 %v1514_v50, %v550_v16  ;;  %v651_v57 = vpack.c.bf16 %v647_v51, %v643_v55 }
 0x229   :  { %v650_v42 = vmul.f32 %v1516_v43, %v593_v17  ;;  %v653_v59 = vpack.c.bf16 %v649_v53, %v645_v49 }
 0x22a   :  { %v652_v48 = vpack.c.bf16 %v648_v54, %v644_v52 }
 0x22b   :  { %v654_v58 = vpack.c.bf16 %v650_v42, %v646_v56 }
 0x22c   :  { %1083 = vmatprep.mubr.bf16.mxu0 %v652_v48 }
 0x22d   :  { %1126 = vmatprep.mubr.bf16.mxu1 %v654_v58  ;;  %1084 = vmatmul.mubr.bf16.vlgmr.msra.gmra.mxu0 %v651_v57 }
 0x22e   :  { %1127 = vmatmul.mubr.bf16.vlgmr.msra.gmra.mxu1 %v653_v59 }
 0x2ed   :  { %v1085_v63 = vpop.f32.mrf.mxu0 }
 0x2ee   :  { %v1086_v0 = vadd.f32 %v1085_v63, %v724_v61  ;;  %v1128_v2 = vpop.f32.mrf.mxu1 }
 0x2ef   :  { %v1087_v1 = vpop.f32.mrf.mxu0 }
 0x2f0   :  { %v1129_v3 = vadd.f32 %v1128_v2, %v1086_v0  ;;  %v1088_v4 = vadd.f32 %v1087_v1, %v728_v62  ;;  %v1130_v5 = vpop.f32.mrf.mxu1 }
 0x2f1   :  { %v1089_v6 = vpop.f32.mrf.mxu0 }
 0x2f2   :  { %v1137_v29 = vmul.f32 0.5, %v1129_v3  ;;  %v1131_v7 = vadd.f32 %v1130_v5, %v1088_v4  ;;  %v1090_v8 = vadd.f32 %v1089_v6, %v724_v61  ;;  %v1132_v9 = vpop.f32.mrf.mxu1 }
 0x2f3   :  { %v1091_v10 = vpop.f32.mrf.mxu0 }
 0x2f4   :  { %v1141_v30 = vadd.f32 %v1517_v11, %v1137_v29  ;;  %v1138_v12 = vmul.f32 0.5, %v1131_v7  ;;  %v1133_v31 = vadd.f32 %v1132_v9, %v1090_v8  ;;  %v1092_v13 = vadd.f32 %v1091_v10, %v728_v62  ;;  %v1134_v14 = vpop.f32.mrf.mxu1 }
 0x2f6   :  { %1145 = vst [vmem:[%s2074_s9] sm:$0xff] %v1141_v30  ;;  %v1142_v16 = vadd.f32 %v1518_v15, %v1138_v12  ;;  %v1139_v17 = vmul.f32 0.5, %v1133_v31  ;;  %v1135_v18 = vadd.f32 %v1134_v14, %v1092_v13 }
 0x2f8   :  { %1146 = vst [vmem:[%s2074_s9 + $0x8] sm:$0xff] %v1142_v16  ;;  %v1143_v20 = vadd.f32 %v1519_v19, %v1139_v17  ;;  %v1140_v21 = vmul.f32 0.5, %v1135_v18 }
 0x2fa   :  { %1147 = vst [vmem:[%s2074_s9 + $0x10] sm:$0xff] %v1143_v20  ;;  %v1144_v23 = vadd.f32 %v1520_v22, %v1140_v21 }
 0x2fc   :  { %1148 = vst [vmem:[%s2074_s9 + $0x18] sm:$0xff] %v1144_v23 }

// kernel: conformer_encoder.18
= control target key start
LH: loop header
LB: loop body
LE: loop exit
PB: predicated region body
PF: predicated region fallthrough
CT: control target
= control target key end

     0   :  { %s836_s0 = inlined_call_operand.vmem [shape: s32[2], index: 0, kind: input, shape index: {}]   ;;  %s837_s1 = inlined_call_operand.vmem [shape: bf16[2,8,256], index: 1, kind: input, shape index: {}]   ;;  %s838_s2 = inlined_call_operand.vmem [shape: bf16[2,8,256], index: 2, kind: input, shape index: {}]   ;;  %s839_s3 = inlined_call_operand.vmem [shape: bf16[2,8,256], index: 3, kind: input, shape index: {}]   ;;  %s840_s4 = inlined_call_operand.vmem [shape: f32[2,8,256], index: 4, kind: input, shape index: {}]   ;;  %s841_s5 = inlined_call_operand.vmem [shape: f32[2,8,256], index: 5, kind: output, shape index: {}]  }
   0x1   :  { %s10_s20 = sshll.u32 %s836_s0, 4  ;;  %s11_s20 = int_to_ptr.vmem [resolvable:$true] %s10_s20 }
   0x2   :  { %s669_s21 = scalar_lea.vmem %s11_s20, 16  ;;  %p674_p1 = scmp.lt.s32.totalorder %s11_s20, %s11_s20 }
   0x3   :  { %p670_p0 = scmp.ne.s32.totalorder %s11_s20, %s669_s21  ;;  %p675_p2 = scmp.lt.s32.totalorder %s669_s21, %s669_s21 }
   0x5   :  { %p676_p3 = por %p675_p2, %p674_p1 }
   0x7   :  { %p677_p4 = pnand %p676_p3, %p670_p0 }
   0x9   :  { %680 = shalt.err (!%p677_p4)  }
   0xa   :  { %s723_s22 = smov [#allocation3]  }
   0xb   :  { %13 = dma.vmem_to_smem %s11_s20, 16, %s723_s22, [#allocation2] }
   0xc   :  { %701 = dma.done.wait [#allocation2], 16 }
   0xd   :  { %702 = vsyncadd [#allocation2], 4294967280 }
   0xe   :  { %15 = sfence }
   0xf   :  { %s759_s23 = smov 0   ;;  %s761_s24 = smov 0  }
  0x10   :  { %s763_s25 = smov 0   ;;  %s765_s0 = smov 0  }
  0x11   :  { %s767_s26 = smov 0  }
  0x12 LB: > { %s30_s27 = sadd.s32 1, %s713_s25  ;;  %s33_s28 = sadd.s32 1, %s717_s0  ;;  %s721_s26 = sphi %s767_s26, %s21_s26   ;;  %s717_s0 = sphi %s765_s0, %s845_s0   ;;  %s713_s25 = sphi %s763_s25, %s844_s25   ;;  %s709_s24 = sphi %s761_s24, %s843_s24   ;;  %s705_s23 = sphi %s759_s23, %s842_s23  }
  0x13   : > { %p31_p5 = scmp.ge.s32.totalorder %s30_s27, 2  ;;  %p592_p6 = scmp.ge.s32.totalorder %s721_s26, 1 }
  0x14   : > { %p233_p7 = scmp.lt.s32.totalorder %s721_s26, 5 }
  0x15   : > { %s847_s27 = smov (%p31_p5, %s30_s27), 0  ;;  %s849_s28 = smov (!%p31_p5, %s33_s28), %s717_s0 }
  0x16   : > { %p234_p8 = pnand %p592_p6, %p233_p7  ;;  %p35_p9 = scmp.ge.s32.totalorder %s849_s28, 2 }
  0x17   : > { %p289_p10 = scmp.lt.s32.totalorder (!%p234_p8), %s709_s24, 1  ;;  %p291_p11 = scmp.lt.s32.totalorder (!%p234_p8), %s705_s23, 1 }
  0x18   : > { %s851_s28 = smov (%p35_p9, %s849_s28), 0  ;;  %237 = sbr.rel (%p234_p8) target bundleno = 752 (0x2f0), region = 36 }
  0x19   : > { %s330_s14 = sld [smem:[#allocation3 + %s709_s24]] (!%p234_p8) }
  0x1d   : > { %v724_v0 = vmov 0.0   ;;  %vm725_vm0 = vmmov 0   ;;  %s290_s29 = scalar_select %p289_p10, %s709_s24, 1  ;;  %v375_v3 = vlaneseq  ;;  %vm384_vm4 = vcmask 64512  }
  0x1e   : > { %610 = vmatprep.subr.bf16.mxu0 %v724_v0  ;;  %612 = vmatprep.mubr.msk.bf16.mxu0 %vm725_vm0, %v724_v0  ;;  %s853_s23 = smov (!%p291_p11, %s705_s23), 1  ;;  %vm401_vm5 = vcmask 1043456  }
  0x1f   : > { %616 = vmatprep.subr.bf16.mxu1 %v724_v0  ;;  %618 = vmatprep.mubr.msk.bf16.mxu1 %vm725_vm0, %v724_v0  ;;  %s593_s30 = sshll.u32 %s290_s29, 1  ;;  %v376_v4 = vshrl.u32 %v375_v3, 7  ;;  %v378_v5 = vand.u32 127, %v375_v3  ;;  %v379_v6 = vstv %s330_s14 }
  0x20   : > { %s793_s6 = sadd.s32 %s593_s30, %s853_s23 }
  0x21   : > { %s796_s7 = sshll.u32 %s793_s6, 2  ;;  %vm380_vm1 = vcmp.lt.s32.totalorder %v376_v4, %v379_v6  ;;  %vm381_vm2 = vcmp.lt.s32.totalorder %v378_v5, %v379_v6  ;;  %s600_s18 = sshll.u32 %s793_s6, 3 }
  0x22   : > { %s304_s10 = scalar_lea.vmem %s838_s2, %s796_s7  ;;  %s296_s13 = scalar_lea.vmem %s837_s1, %s796_s7  ;;  %vm382_vm3 = vmand %vm380_vm1, %vm381_vm2 }
  0x23   : > { %v332_v1 = vld [vmem:[%s304_s10] sm:$0xf]  ;;  %s312_s17 = scalar_lea.vmem %s839_s3, %s796_s7  ;;  %s320_s21 = scalar_lea.vmem %s840_s4, %s600_s18 }
  0x24   : > { %611 = vmatpush3.bf16.xpose.msra.mxu0 %v332_v1  ;;  %v331_v2 = vld [vmem:[%s296_s13] sm:$0xf]  ;;  %s328_s24 = scalar_lea.vmem %s841_s5, %s600_s18 }
  0x25   : > { %v333_v19 = vld [vmem:[%s312_s17] sm:$0xf] }
  0x26   : > { %v403_v20 = vsel %vm401_vm5, %v333_v19, 0  ;;  %v445_v25 = vld [vmem:[%s320_s21] sm:$0xff] }
  0x27   : > { %617 = vmatpush3.bf16.msra.mxu1 %v403_v20 }
  0x2b   : > { %613 = vmatmul.mubr.bf16.vlgmr.msra.gmra.mxu0 %v331_v2 }
  0xeb   : > { %v368_v7 = vpop.f32.mrf.mxu0 }
  0xec   : > { %v374_v8 = vmul.f32 0.088388346, %v368_v7 }
  0xed   : > { %v614_v9 = vpop.f32.mrf.mxu0 }
  0xee   : > { %v383_v10 = vsel %vm382_vm3, %v374_v8, -1e+15 }
  0xef   : > { %v371_v11 = vpop.f32.mrf.mxu0  ;;  %v385_v12 = vsel %vm384_vm4, %v383_v10, -inf }
  0xf0   : > { %386 = vmax.xlane.f32.xlu0 %v385_v12 }
  0xf1   : > { %v615_v13 = vpop.f32.mrf.mxu0 }
 0x179   : > { %v387_v14 = vpop.xlane.xlu0 %386 }
 0x17a   : > { %v388_v15 = vsub.f32 %v383_v10, %v387_v14 }
 0x17c   : > { %v389_v16 = vmul.f32 1.442695, %v388_v15 }
 0x17e   : > { %665 = vpow2.f32 %v389_v16 }
 0x18b   : > { %v666_v17 = vpop.eup %665 }
 0x18c   : > { %v391_v18 = vsel %vm384_vm4, %v666_v17, 0.0 }
 0x18d   : > { %392 = vadd.xlane.f32.xlu0 %v391_v18 }
 0x216   : > { %v393_v21 = vpop.xlane.xlu0 %392 }
 0x217   : > { %667 = vrcp.f32 %v393_v21 }
 0x224   : > { %v668_v22 = vpop.eup %667 }
 0x225   : > { %v396_v23 = vmul.f32 %v668_v22, %v666_v17 }
 0x227   : > { %v397_v24 = vpack.c.bf16 %v396_v23, %v396_v23 }
 0x229   : > { %619 = vmatmul.mubr.msk.bf16.vlgmr.msra.gmra.mxu1 %vm384_vm4, %v397_v24 }
 0x2e9   : > { %v439_v26 = vpop.f32.mrf.mxu1 }
 0x2ea   : > { %v446_v27 = vadd.f32 %v445_v25, %v439_v26 }
 0x2eb   : > { %v620_v28 = vpop.f32.mrf.mxu1 }
 0x2ec   : > { %447 = vst [vmem:[%s328_s24] sm:$0xff] %v446_v27 }
 0x2ed   : > { %v442_v29 = vpop.f32.mrf.mxu1 }
 0x2ef   : > { %v621_v30 = vpop.f32.mrf.mxu1 }
 0x2f0 PF: > { %s21_s26 = sadd.s32 1, %s721_s26   ;;  %s842_s23 = smov %s713_s25 }
 0x2f1   : > { %p18_p12 = scmp.ge.s32.totalorder %s21_s26, 6   ;;  %s843_s24 = smov %s717_s0 }
 0x2f2   : > { %s844_s25 = smov %s847_s27  ;;  %s845_s0 = smov %s851_s28 }
 0x2f3   :  { %20 = sbr.rel (!%p18_p12) target bundleno = 18 (0x12), region = 75 }

// kernel: conformer_encoder.17
= control target key start
LH: loop header
LB: loop body
LE: loop exit
PB: predicated region body
PF: predicated region fallthrough
CT: control target
= control target key end

     0   :  { %s1793_s27 = smov 0   ;;  %s1795_s28 = smov 0   ;;  %s2185_s0 = inlined_call_operand.vmem [shape: f32[2,8,256], index: 0, kind: input, shape index: {}]   ;;  %s2186_s1 = inlined_call_operand.vmem [shape: f32[8,256], index: 1, kind: input, shape index: {}]   ;;  %s2187_s2 = inlined_call_operand.vmem [shape: f32[1,256], index: 2, kind: input, shape index: {}]   ;;  %s2188_s3 = inlined_call_operand.vmem [shape: f32[1,256], index: 3, kind: input, shape index: {}]   ;;  %s2189_s4 = inlined_call_operand.vmem [shape: bf16[256,768], index: 4, kind: input, shape index: {}]   ;;  %s2190_s5 = inlined_call_operand.vmem [shape: f32[1,768], index: 5, kind: input, shape index: {}]   ;;  %s2191_s6 = inlined_call_operand.vmem [shape: bf16[2,8,256], index: 6, kind: output, shape index: {0}]   ;;  %s2192_s7 = inlined_call_operand.vmem [shape: bf16[2,8,256], index: 7, kind: output, shape index: {1}]   ;;  %s2193_s8 = inlined_call_operand.vmem [shape: bf16[2,8,256], index: 8, kind: output, shape index: {2}]  }
   0x1   :  { %s1797_s29 = smov 0  }
   0x2 LB: > { %s31_s30 = sadd.s32 1, %s1742_s28  ;;  %p1437_p0 = scmp.ge.s32.totalorder %s1746_s29, 1  ;;  %s1746_s29 = sphi %s1797_s29, %s19_s29   ;;  %s1742_s28 = sphi %s1795_s28, %s2195_s28   ;;  %s1738_s27 = sphi %s1793_s27, %s2194_s27  }
   0x3   : > { %p33_p1 = scmp.ge.s32.totalorder %s31_s30, 2  ;;  %p301_p2 = scmp.lt.s32.totalorder %s1746_s29, 3 }
   0x5   : > { %s2197_s30 = smov (%p33_p1, %s31_s30), 0  ;;  %p302_p3 = pnand %p1437_p0, %p301_p2 }
   0x6   : > { %p366_p4 = scmp.lt.s32.totalorder (!%p302_p3), %s1738_s27, 1 }
   0x7   : > { %305 = sbr.rel (%p302_p3) target bundleno = 595 (0x253), region = 44 }
   0xc   : > { %s2199_s27 = smov (!%p366_p4, %s1738_s27), 1  ;;  %v1578_v3 = vld [vmem:[%s2189_s4 + $0x154] ss:$24 sps:$4 sm:$0xff]   ;;  %v1580_v4 = vld [vmem:[%s2189_s4 + $0x150] ss:$24 sps:$4 sm:$0xff]  }
   0xd   : > { %s1547_s9 = sshll.u32 %s2199_s27, 4  ;;  %v1581_v5 = vld [vmem:[%s2189_s4 + $0x15c] ss:$24 sps:$4 sm:$0xff]   ;;  %v1583_v6 = vld [vmem:[%s2189_s4 + $0x158] ss:$24 sps:$4 sm:$0xff]   ;;  %1068 = vmatprep.subr.bf16.mxu0 %v1578_v3  ;;  %s2160_s17 = sshll.u32 %s2199_s27, 3 }
   0xe   : > { %s374_s12 = scalar_lea.vmem %s2185_s0, %s1547_s9  ;;  %v1584_v7 = vld [vmem:[%s2189_s4 + $0x124] ss:$24 sps:$4 sm:$0xff]   ;;  %1109 = vmatprep.subr.bf16.mxu1 %v1581_v5  ;;  %1069 = vmatpush1.bf16.msra.mxu0 %v1580_v4  ;;  %v1586_v9 = vld [vmem:[%s2189_s4 + $0x120] ss:$24 sps:$4 sm:$0xff]   ;;  %v1590_v11 = vld [vmem:[%s2189_s4 + $0xf4] ss:$24 sps:$4 sm:$0xff]   ;;  %s388_s20 = scalar_lea.vmem %s2191_s6, %s2160_s17 }
   0xf   : > { %v1817_v0 = vld [vmem:[%s374_s12] sm:$0xff]  ;;  %v1819_v1 = vld [vmem:[%s374_s12 + $0x8] sm:$0xff]  ;;  %1110 = vmatpush1.bf16.msra.mxu1 %v1583_v6  ;;  %1070 = vmatprep.subr.bf16.mxu0 %v1584_v7  ;;  %v1593_v12 = vld [vmem:[%s2189_s4 + $0xfc] ss:$24 sps:$4 sm:$0xff]   ;;  %s397_s23 = scalar_lea.vmem %s2192_s7, %s2160_s17  ;;  %s406_s25 = scalar_lea.vmem %s2193_s8, %s2160_s17 }
  0x10   : > { %v411_v2 = vadd.f32 %v1819_v1, %v1817_v0  ;;  %v1587_v8 = vld [vmem:[%s2189_s4 + $0x12c] ss:$24 sps:$4 sm:$0xff]   ;;  %v1589_v10 = vld [vmem:[%s2189_s4 + $0x128] ss:$24 sps:$4 sm:$0xff]   ;;  %v1595_v14 = vld [vmem:[%s2189_s4 + $0xf8] ss:$24 sps:$4 sm:$0xff]  }
  0x11   : > { %1111 = vmatprep.subr.bf16.mxu1 %v1587_v8  ;;  %v1592_v13 = vld [vmem:[%s2189_s4 + $0xf0] ss:$24 sps:$4 sm:$0xff]   ;;  %v1596_v15 = vld [vmem:[%s2189_s4 + $0xc4] ss:$24 sps:$4 sm:$0xff]   ;;  %v1598_v17 = vld [vmem:[%s2189_s4 + $0xc0] ss:$24 sps:$4 sm:$0xff]  }
  0x12   : > { %412 = vadd.xlane.f32.xlu0 %v411_v2  ;;  %1071 = vmatpush1.bf16.msra.mxu0 %v1586_v9  ;;  %v1599_v16 = vld [vmem:[%s2189_s4 + $0xcc] ss:$24 sps:$4 sm:$0xff]   ;;  %v1601_v18 = vld [vmem:[%s2189_s4 + $0xc8] ss:$24 sps:$4 sm:$0xff]   ;;  %v1605_v20 = vld [vmem:[%s2189_s4 + $0x9c] ss:$24 sps:$4 sm:$0xff]  }
  0x13   : > { %1112 = vmatpush1.bf16.msra.mxu1 %v1589_v10  ;;  %1072 = vmatprep.subr.bf16.mxu0 %v1590_v11  ;;  %v1602_v19 = vld [vmem:[%s2189_s4 + $0x94] ss:$24 sps:$4 sm:$0xff]   ;;  %v1604_v21 = vld [vmem:[%s2189_s4 + $0x90] ss:$24 sps:$4 sm:$0xff]   ;;  %v1608_v23 = vld [vmem:[%s2189_s4 + $0x64] ss:$24 sps:$4 sm:$0xff]  }
  0x14   : > { %1113 = vmatprep.subr.bf16.mxu1 %v1593_v12  ;;  %v1607_v22 = vld [vmem:[%s2189_s4 + $0x98] ss:$24 sps:$4 sm:$0xff]   ;;  %v1611_v24 = vld [vmem:[%s2189_s4 + $0x6c] ss:$24 sps:$4 sm:$0xff]   ;;  %v1613_v26 = vld [vmem:[%s2189_s4 + $0x68] ss:$24 sps:$4 sm:$0xff]  }
  0x15   : > { %v1610_v25 = vld [vmem:[%s2189_s4 + $0x60] ss:$24 sps:$4 sm:$0xff]   ;;  %v1614_v27 = vld [vmem:[%s2189_s4 + $0x34] ss:$24 sps:$4 sm:$0xff]   ;;  %v1616_v29 = vld [vmem:[%s2189_s4 + $0x30] ss:$24 sps:$4 sm:$0xff]  }
  0x16   : > { %1073 = vmatpush1.bf16.msra.mxu0 %v1592_v13  ;;  %v1617_v28 = vld [vmem:[%s2189_s4 + $0x3c] ss:$24 sps:$4 sm:$0xff]   ;;  %v1619_v30 = vld [vmem:[%s2189_s4 + $0x38] ss:$24 sps:$4 sm:$0xff]   ;;  %v1623_v32 = vld [vmem:[%s2189_s4 + $0xc] ss:$24 sps:$4 sm:$0xff]  }
  0x17   : > { %1114 = vmatpush1.bf16.msra.mxu1 %v1595_v14  ;;  %1074 = vmatprep.subr.bf16.mxu0 %v1596_v15  ;;  %v1620_v31 = vld [vmem:[%s2189_s4 + $0x4] ss:$24 sps:$4 sm:$0xff]   ;;  %v1622_v33 = vld [vmem:[%s2189_s4] ss:$24 sps:$4 sm:$0xff]   ;;  %v1626_v35 = vld [vmem:[%s2189_s4 + $0x2d4] ss:$24 sps:$4 sm:$0xff]   ;;  %v429_v14 = vlaneseq }
  0x18   : > { %1115 = vmatprep.subr.bf16.mxu1 %v1599_v16  ;;  %v1625_v34 = vld [vmem:[%s2189_s4 + $0x8] ss:$24 sps:$4 sm:$0xff]   ;;  %v1629_v36 = vld [vmem:[%s2189_s4 + $0x2dc] ss:$24 sps:$4 sm:$0xff]   ;;  %v1631_v38 = vld [vmem:[%s2189_s4 + $0x2d8] ss:$24 sps:$4 sm:$0xff]  }
  0x19   : > { %v1628_v37 = vld [vmem:[%s2189_s4 + $0x2d0] ss:$24 sps:$4 sm:$0xff]   ;;  %v1632_v46 = vld [vmem:[%s2189_s4 + $0x2a4] ss:$24 sps:$4 sm:$0xff]   ;;  %v1634_v47 = vld [vmem:[%s2189_s4 + $0x2a0] ss:$24 sps:$4 sm:$0xff]  }
  0x1a   : > { %1075 = vmatpush1.bf16.msra.mxu0 %v1598_v17  ;;  %v1635_v48 = vld [vmem:[%s2189_s4 + $0x2ac] ss:$24 sps:$4 sm:$0xff]   ;;  %v1637_v49 = vld [vmem:[%s2189_s4 + $0x2a8] ss:$24 sps:$4 sm:$0xff]   ;;  %v1641_v52 = vld [vmem:[%s2189_s4 + $0x27c] ss:$24 sps:$4 sm:$0xff]  }
  0x1b   : > { %1116 = vmatpush1.bf16.msra.mxu1 %v1601_v18  ;;  %1076 = vmatprep.subr.bf16.mxu0 %v1602_v19  ;;  %v1638_v50 = vld [vmem:[%s2189_s4 + $0x274] ss:$24 sps:$4 sm:$0xff]   ;;  %v1640_v51 = vld [vmem:[%s2189_s4 + $0x270] ss:$24 sps:$4 sm:$0xff]   ;;  %v1644_v54 = vld [vmem:[%s2189_s4 + $0x244] ss:$24 sps:$4 sm:$0xff]  }
  0x1c   : > { %1117 = vmatprep.subr.bf16.mxu1 %v1605_v20  ;;  %v1643_v53 = vld [vmem:[%s2189_s4 + $0x278] ss:$24 sps:$4 sm:$0xff]   ;;  %v1647_v56 = vld [vmem:[%s2189_s4 + $0x24c] ss:$24 sps:$4 sm:$0xff]   ;;  %v1649_v57 = vld [vmem:[%s2189_s4 + $0x248] ss:$24 sps:$4 sm:$0xff]  }
  0x1d   : > { %v1646_v55 = vld [vmem:[%s2189_s4 + $0x240] ss:$24 sps:$4 sm:$0xff]   ;;  %v1650_v58 = vld [vmem:[%s2189_s4 + $0x214] ss:$24 sps:$4 sm:$0xff]   ;;  %v1652_v60 = vld [vmem:[%s2189_s4 + $0x210] ss:$24 sps:$4 sm:$0xff]  }
  0x1e   : > { %1077 = vmatpush1.bf16.msra.mxu0 %v1604_v21  ;;  %v1653_v59 = vld [vmem:[%s2189_s4 + $0x21c] ss:$24 sps:$4 sm:$0xff]   ;;  %v1655_v61 = vld [vmem:[%s2189_s4 + $0x218] ss:$24 sps:$4 sm:$0xff]   ;;  %v1659_v63 = vld [vmem:[%s2189_s4 + $0x1ec] ss:$24 sps:$4 sm:$0xff]  }
  0x1f   : > { %1118 = vmatpush1.bf16.msra.mxu1 %v1607_v22  ;;  %1078 = vmatprep.subr.bf16.mxu0 %v1608_v23  ;;  %v1656_v62 = vld [vmem:[%s2189_s4 + $0x1e4] ss:$24 sps:$4 sm:$0xff]   ;;  %v1662_v2 = vld [vmem:[%s2189_s4 + $0x1b4] ss:$24 sps:$4 sm:$0xff]   ;;  %v1664_v4 = vld [vmem:[%s2189_s4 + $0x1b0] ss:$24 sps:$4 sm:$0xff]  }
  0x20   : > { %1119 = vmatprep.subr.bf16.mxu1 %v1611_v24  ;;  %v1665_v3 = vld [vmem:[%s2189_s4 + $0x1bc] ss:$24 sps:$4 sm:$0xff]   ;;  %v1667_v5 = vld [vmem:[%s2189_s4 + $0x1b8] ss:$24 sps:$4 sm:$0xff]   ;;  %v1671_v7 = vld [vmem:[%s2189_s4 + $0x18c] ss:$24 sps:$4 sm:$0xff]  }
  0x21   : > { %v1668_v6 = vld [vmem:[%s2189_s4 + $0x184] ss:$24 sps:$4 sm:$0xff]   ;;  %v1670_v8 = vld [vmem:[%s2189_s4 + $0x180] ss:$24 sps:$4 sm:$0xff]   ;;  %v2028_v15 = vshrl.u32 %v429_v14, 7 }
  0x22   : > { %1079 = vmatpush1.bf16.msra.mxu0 %v1610_v25  ;;  %v1673_v9 = vld [vmem:[%s2189_s4 + $0x188] ss:$24 sps:$4 sm:$0xff]   ;;  %v1676_v10 = vld [vmem:[%s2189_s4 + $0x164] ss:$24 sps:$4 sm:$0xff]  }
  0x23   : > { %1120 = vmatpush1.bf16.msra.mxu1 %v1613_v26  ;;  %1080 = vmatprep.subr.bf16.mxu0 %v1614_v27  ;;  %v2031_v16 = vsub.s32 1, %v2028_v15  ;;  %v2034_v17 = vsub.s32 0, %v2028_v15  ;;  %v409_v18 = vld [vmem:[%s2187_s2] sm:$0x3] }
  0x24   : > { %1121 = vmatprep.subr.bf16.mxu1 %v1617_v28  ;;  %v410_v19 = vld [vmem:[%s2188_s3] sm:$0x3] }
  0x25   : > { %v436_v20 = vrot.slane %v409_v18, %v2031_v16  ;;  %v432_v21 = vrot.slane %v409_v18, %v2034_v17  ;;  %v449_v24 = vrot.slane %v410_v19, %v2031_v16  ;;  %v445_v26 = vrot.slane %v410_v19, %v2034_v17 }
  0x26   : > { %1081 = vmatpush1.bf16.msra.mxu0 %v1616_v29  ;;  %v455_v29 = vld [vmem:[%s2186_s1 + $0x8] sm:$0xff] }
  0x27   : > { %1122 = vmatpush1.bf16.msra.mxu1 %v1619_v30  ;;  %1082 = vmatprep.subr.bf16.mxu0 %v1620_v31  ;;  %v454_v30 = vld [vmem:[%s2186_s1] sm:$0xff] }
  0x28   : > { %1123 = vmatprep.subr.bf16.mxu1 %v1623_v32 }
  0x2a   : > { %1083 = vmatpush1.bf16.msra.mxu0 %v1622_v33 }
  0x2b   : > { %1124 = vmatpush1.bf16.msra.mxu1 %v1625_v34  ;;  %1084 = vmatprep.subr.bf16.mxu0 %v1626_v35 }
  0x2c   : > { %1125 = vmatprep.subr.bf16.mxu1 %v1629_v36  ;;  %v1674_v36 = vld [vmem:[%s2189_s4 + $0x160] ss:$24 sps:$4 sm:$0xff]  }
  0x2e   : > { %1085 = vmatpush2.bf16.msra.mxu0 %v1628_v37 }
  0x2f   : > { %1126 = vmatpush2.bf16.msra.mxu1 %v1631_v38  ;;  %1086 = vmatprep.subr.bf16.mxu0 %v1632_v46  ;;  %v1679_v38 = vld [vmem:[%s2189_s4 + $0x134] ss:$24 sps:$4 sm:$0xff]  }
  0x30   : > { %1127 = vmatprep.subr.bf16.mxu1 %v1635_v48  ;;  %v1691_v46 = vld [vmem:[%s2189_s4 + $0x74] ss:$24 sps:$4 sm:$0xff]   ;;  %v1694_v48 = vld [vmem:[%s2189_s4 + $0x44] ss:$24 sps:$4 sm:$0xff]  }
  0x32   : > { %1087 = vmatpush2.bf16.msra.mxu0 %v1634_v47  ;;  %v1689_v47 = vld [vmem:[%s2189_s4 + $0x70] ss:$24 sps:$4 sm:$0xff]  }
  0x33   : > { %1128 = vmatpush2.bf16.msra.mxu1 %v1637_v49  ;;  %1088 = vmatprep.subr.bf16.mxu0 %v1638_v50  ;;  %v1692_v49 = vld [vmem:[%s2189_s4 + $0x40] ss:$24 sps:$4 sm:$0xff]   ;;  %v1697_v50 = vld [vmem:[%s2189_s4 + $0x14] ss:$24 sps:$4 sm:$0xff]  }
  0x34   : > { %1129 = vmatprep.subr.bf16.mxu1 %v1641_v52  ;;  %v1700_v52 = vld [vmem:[%s2189_s4 + $0x2e4] ss:$24 sps:$4 sm:$0xff]  }
  0x36   : > { %1089 = vmatpush2.bf16.msra.mxu0 %v1640_v51  ;;  %v1695_v51 = vld [vmem:[%s2189_s4 + $0x10] ss:$24 sps:$4 sm:$0xff]  }
  0x37   : > { %1130 = vmatpush2.bf16.msra.mxu1 %v1643_v53  ;;  %1090 = vmatprep.subr.bf16.mxu0 %v1644_v54  ;;  %v1698_v53 = vld [vmem:[%s2189_s4 + $0x2e0] ss:$24 sps:$4 sm:$0xff]   ;;  %v1703_v54 = vld [vmem:[%s2189_s4 + $0x2b4] ss:$24 sps:$4 sm:$0xff]  }
  0x38   : > { %1131 = vmatprep.subr.bf16.mxu1 %v1647_v56  ;;  %v1706_v56 = vld [vmem:[%s2189_s4 + $0x284] ss:$24 sps:$4 sm:$0xff]  }
  0x3a   : > { %1091 = vmatpush2.bf16.msra.mxu0 %v1646_v55  ;;  %v1701_v55 = vld [vmem:[%s2189_s4 + $0x2b0] ss:$24 sps:$4 sm:$0xff]  }
  0x3b   : > { %1132 = vmatpush2.bf16.msra.mxu1 %v1649_v57  ;;  %1092 = vmatprep.subr.bf16.mxu0 %v1650_v58  ;;  %v1704_v57 = vld [vmem:[%s2189_s4 + $0x280] ss:$24 sps:$4 sm:$0xff]   ;;  %v1709_v58 = vld [vmem:[%s2189_s4 + $0x254] ss:$24 sps:$4 sm:$0xff]  }
  0x3c   : > { %1133 = vmatprep.subr.bf16.mxu1 %v1653_v59  ;;  %v1707_v59 = vld [vmem:[%s2189_s4 + $0x250] ss:$24 sps:$4 sm:$0xff]  }
  0x3e   : > { %1093 = vmatpush2.bf16.msra.mxu0 %v1652_v60  ;;  %v1712_v60 = vld [vmem:[%s2189_s4 + $0x224] ss:$24 sps:$4 sm:$0xff]  }
  0x3f   : > { %1134 = vmatpush2.bf16.msra.mxu1 %v1655_v61  ;;  %1094 = vmatprep.subr.bf16.mxu0 %v1656_v62  ;;  %v1710_v61 = vld [vmem:[%s2189_s4 + $0x220] ss:$24 sps:$4 sm:$0xff]   ;;  %v1715_v62 = vld [vmem:[%s2189_s4 + $0x1f4] ss:$24 sps:$4 sm:$0xff]  }
  0x40   : > { %1135 = vmatprep.subr.bf16.mxu1 %v1659_v63  ;;  %v1713_v63 = vld [vmem:[%s2189_s4 + $0x1f0] ss:$24 sps:$4 sm:$0xff]  }
  0x9b   : > { %v413_v39 = vpop.xlane.xlu0 %412 }
  0x9c   : > { %v415_v40 = vmul.f32 0.00390625, %v413_v39  ;;  %v1677_v39 = vld [vmem:[%s2189_s4 + $0x130] ss:$24 sps:$4 sm:$0xff]  }
  0x9e   : > { %v1932_v41 = vsub.f32 %v1817_v0, %v415_v40  ;;  %v1935_v42 = vsub.f32 %v1819_v1, %v415_v40  ;;  %v1658_v0 = vld [vmem:[%s2189_s4 + $0x1e0] ss:$24 sps:$4 sm:$0xff]   ;;  %v1682_v40 = vld [vmem:[%s2189_s4 + $0x104] ss:$24 sps:$4 sm:$0xff]  }
  0x9f   : > { %v1661_v1 = vld [vmem:[%s2189_s4 + $0x1e8] ss:$24 sps:$4 sm:$0xff]   ;;  %1095 = vmatpush2.bf16.msra.mxu0 %v1658_v0  ;;  %v1718_v0 = vld [vmem:[%s2189_s4 + $0x1c4] ss:$24 sps:$4 sm:$0xff]  }
  0xa0   : > { %v418_v43 = vmul.f32 %v1932_v41, %v1932_v41  ;;  %v419_v44 = vmul.f32 %v1935_v42, %v1935_v42  ;;  %1136 = vmatpush2.bf16.msra.mxu1 %v1661_v1  ;;  %1096 = vmatprep.subr.bf16.mxu0 %v1662_v2  ;;  %v1716_v1 = vld [vmem:[%s2189_s4 + $0x1c0] ss:$24 sps:$4 sm:$0xff]   ;;  %v1721_v2 = vld [vmem:[%s2189_s4 + $0x194] ss:$24 sps:$4 sm:$0xff]  }
  0xa1   : > { %1137 = vmatprep.subr.bf16.mxu1 %v1665_v3  ;;  %v1719_v3 = vld [vmem:[%s2189_s4 + $0x190] ss:$24 sps:$4 sm:$0xff]  }
  0xa2   : > { %v420_v45 = vadd.f32 %v419_v44, %v418_v43  ;;  %v1683_v43 = vld [vmem:[%s2189_s4 + $0xd0] ss:$24 sps:$4 sm:$0xff]   ;;  %v1688_v44 = vld [vmem:[%s2189_s4 + $0xa4] ss:$24 sps:$4 sm:$0xff]  }
  0xa3   : > { %1097 = vmatpush2.bf16.msra.mxu0 %v1664_v4  ;;  %v568_v4 = vsub.s32 2, %v2028_v15 }
  0xa4   : > { %421 = vadd.xlane.f32.xlu0 %v420_v45  ;;  %1138 = vmatpush2.bf16.msra.mxu1 %v1667_v5  ;;  %v1686_v45 = vld [vmem:[%s2189_s4 + $0xa0] ss:$24 sps:$4 sm:$0xff]   ;;  %v572_v5 = vsub.s32 3, %v2028_v15 }
  0xa5   : > { %1098 = vmatprep.subr.bf16.mxu0 %v1668_v6  ;;  %1139 = vmatprep.subr.bf16.mxu1 %v1671_v7  ;;  %v556_v6 = vld [vmem:[%s2190_s5] sm:$0x3f] }
  0xa6   : > { %v561_v7 = vrot.slane %v556_v6, %v2034_v17 }
  0xa7   : > { %1099 = vmatpush2.bf16.msra.mxu0 %v1670_v8  ;;  %v569_v8 = vrot.slane %v556_v6, %v568_v4 }
  0xa8   : > { %1140 = vmatpush2.bf16.msra.mxu1 %v1673_v9  ;;  %1150 = vmatprep.subr.bf16.mxu0 %v1676_v10  ;;  %v565_v9 = vrot.slane %v556_v6, %v2031_v16  ;;  %v573_v10 = vrot.slane %v556_v6, %v572_v5 }
 0x12d   : > { %v422_v11 = vpop.xlane.xlu0 %421 }
 0x12e   : > { %v423_v12 = vmul.f32 0.00390625, %v422_v11 }
 0x130   : > { %v424_v13 = vadd.f32 1e-05, %v423_v12 }
 0x132   : > { %1722 = vrsqrt.f32 %v424_v13 }
 0x13f   : > { %v1723_v22 = vpop.eup %1722 }
 0x140   : > { %v427_v23 = vmul.f32 %v1723_v22, %v1935_v42  ;;  %v426_v25 = vmul.f32 %v1723_v22, %v1932_v41  ;;  %v1680_v41 = vld [vmem:[%s2189_s4 + $0x100] ss:$24 sps:$4 sm:$0xff]   ;;  %v1685_v42 = vld [vmem:[%s2189_s4 + $0xd4] ss:$24 sps:$4 sm:$0xff]  }
 0x142   : > { %v440_v27 = vmul.f32 %v436_v20, %v427_v23  ;;  %v439_v28 = vmul.f32 %v432_v21, %v426_v25 }
 0x144   : > { %v453_v31 = vadd.f32 %v449_v24, %v440_v27  ;;  %v452_v32 = vadd.f32 %v445_v26, %v439_v28  ;;  %v576_v26 = vsub.s32 4, %v2028_v15  ;;  %v580_v27 = vsub.s32 5, %v2028_v15 }
 0x146   : > { %v457_v33 = vadd.f32 %v455_v29, %v453_v31  ;;  %v456_v34 = vadd.f32 %v454_v30, %v452_v32  ;;  %v577_v28 = vrot.slane %v556_v6, %v576_v26  ;;  %v581_v29 = vrot.slane %v556_v6, %v580_v27 }
 0x148   : > { %v459_v35 = vpack.c.bf16 %v457_v33, %v457_v33  ;;  %v2057_v37 = vpack.c.bf16 %v456_v34, %v456_v34 }
 0x14a   : > { %1100 = vmatprep.mubr.bf16.mxu0 %v459_v35  ;;  %1141 = vmatprep.mubr.bf16.mxu1 %v459_v35 }
 0x14b   : > { %1101 = vmatmul.mubr.bf16.vlgmr.msra.gmra.mxu0 %v2057_v37  ;;  %1142 = vmatmul.mubr.bf16.vlgmr.msra.gmra.mxu1 %v2057_v37 }
 0x14c   : > { %1151 = vmatpush1.bf16.msra.mxu0 %v1674_v36  ;;  %1182 = vmatprep.mubr.bf16.mxu0 %v459_v35 }
 0x14d   : > { %1152 = vmatprep.subr.bf16.mxu0 %v1679_v38 }
 0x150   : > { %1153 = vmatpush1.bf16.msra.mxu0 %v1677_v39 }
 0x151   : > { %1154 = vmatprep.subr.bf16.mxu0 %v1682_v40 }
 0x154   : > { %1155 = vmatpush1.bf16.msra.mxu0 %v1680_v41 }
 0x155   : > { %1156 = vmatprep.subr.bf16.mxu0 %v1685_v42 }
 0x158   : > { %1157 = vmatpush1.bf16.msra.mxu0 %v1683_v43 }
 0x159   : > { %1158 = vmatprep.subr.bf16.mxu0 %v1688_v44 }
 0x15c   : > { %1159 = vmatpush1.bf16.msra.mxu0 %v1686_v45 }
 0x15d   : > { %1160 = vmatprep.subr.bf16.mxu0 %v1691_v46 }
 0x160   : > { %1161 = vmatpush1.bf16.msra.mxu0 %v1689_v47 }
 0x161   : > { %1162 = vmatprep.subr.bf16.mxu0 %v1694_v48 }
 0x164   : > { %1163 = vmatpush1.bf16.msra.mxu0 %v1692_v49 }
 0x165   : > { %1164 = vmatprep.subr.bf16.mxu0 %v1697_v50 }
 0x168   : > { %1165 = vmatpush1.bf16.msra.mxu0 %v1695_v51 }
 0x169   : > { %1166 = vmatprep.subr.bf16.mxu0 %v1700_v52 }
 0x16c   : > { %1167 = vmatpush2.bf16.msra.mxu0 %v1698_v53 }
 0x16d   : > { %1168 = vmatprep.subr.bf16.mxu0 %v1703_v54 }
 0x170   : > { %1169 = vmatpush2.bf16.msra.mxu0 %v1701_v55 }
 0x171   : > { %1170 = vmatprep.subr.bf16.mxu0 %v1706_v56 }
 0x174   : > { %1171 = vmatpush2.bf16.msra.mxu0 %v1704_v57 }
 0x175   : > { %1172 = vmatprep.subr.bf16.mxu0 %v1709_v58 }
 0x178   : > { %1173 = vmatpush2.bf16.msra.mxu0 %v1707_v59 }
 0x179   : > { %1174 = vmatprep.subr.bf16.mxu0 %v1712_v60 }
 0x17c   : > { %1175 = vmatpush2.bf16.msra.mxu0 %v1710_v61 }
 0x17d   : > { %1176 = vmatprep.subr.bf16.mxu0 %v1715_v62 }
 0x180   : > { %1177 = vmatpush2.bf16.msra.mxu0 %v1713_v63 }
 0x181   : > { %1178 = vmatprep.subr.bf16.mxu0 %v1718_v0 }
 0x184   : > { %1179 = vmatpush2.bf16.msra.mxu0 %v1716_v1 }
 0x185   : > { %1180 = vmatprep.subr.bf16.mxu0 %v1721_v2 }
 0x188   : > { %1181 = vmatpush2.bf16.msra.mxu0 %v1719_v3 }
 0x18b   : > { %1183 = vmatmul.mubr.bf16.vlgmr.msra.gmra.mxu0 %v2057_v37 }
 0x20b   : > { %v1102_v11 = vpop.f32.mrf.mxu0  ;;  %v1143_v12 = vpop.f32.mrf.mxu1 }
 0x20c   : > { %v1103_v18 = vadd.f32 %v1102_v11, %v561_v7  ;;  %v1144_v19 = vadd.f32 %v1143_v12, %v569_v8 }
 0x20d   : > { %v1104_v13 = vpop.f32.mrf.mxu0  ;;  %v1145_v14 = vpop.f32.mrf.mxu1 }
 0x20e   : > { %v1105_v20 = vadd.f32 %v1104_v13, %v565_v9  ;;  %v1146_v21 = vadd.f32 %v1145_v14, %v573_v10 }
 0x20f   : > { %v1106_v16 = vpop.f32.mrf.mxu0  ;;  %v1147_v17 = vpop.f32.mrf.mxu1 }
 0x210   : > { %v1551_v22 = vpack.c.bf16 %v1105_v20, %v1103_v18  ;;  %v1552_v23 = vpack.c.bf16 %v1146_v21, %v1144_v19 }
 0x211   : > { %v1107_v24 = vpop.f32.mrf.mxu0  ;;  %v1148_v25 = vpop.f32.mrf.mxu1 }
 0x212   : > { %1199 = vst [vmem:[%s388_s20] sm:$0xff] %v1551_v22  ;;  %1208 = vst [vmem:[%s397_s23] sm:$0xff] %v1552_v23 }
 0x24b   : > { %v1184_v30 = vpop.f32.mrf.mxu0 }
 0x24c   : > { %v1185_v32 = vadd.f32 %v1184_v30, %v577_v28 }
 0x24d   : > { %v1186_v31 = vpop.f32.mrf.mxu0 }
 0x24e   : > { %v1187_v33 = vadd.f32 %v1186_v31, %v581_v29 }
 0x24f   : > { %v1188_v34 = vpop.f32.mrf.mxu0 }
 0x250   : > { %v1553_v35 = vpack.c.bf16 %v1187_v33, %v1185_v32 }
 0x251   : > { %v1189_v36 = vpop.f32.mrf.mxu0 }
 0x252   : > { %1217 = vst [vmem:[%s406_s25] sm:$0xff] %v1553_v35 }
 0x253 PF: > { %s19_s29 = sadd.s32 1, %s1746_s29   ;;  %s2194_s27 = smov %s1742_s28 }
 0x254   : > { %p16_p5 = scmp.ge.s32.totalorder %s19_s29, 4   ;;  %s2195_s28 = smov %s2197_s30 }
 0x256   :  { %18 = sbr.rel (!%p16_p5) target bundleno = 2 (0x2), region = 101 }

// kernel: conformer_encoder.19
= control target key start
LH: loop header
LB: loop body
LE: loop exit
PB: predicated region body
PF: predicated region fallthrough
CT: control target
= control target key end

     0   :  { %s1795_s17 = smov 0   ;;  %s2247_s0 = inlined_call_operand.vmem [shape: f32[2,8,256], index: 0, kind: input, shape index: {}]   ;;  %s2248_s1 = inlined_call_operand.vmem [shape: f32[1,256], index: 1, kind: input, shape index: {}]   ;;  %s2249_s2 = inlined_call_operand.vmem [shape: f32[1,256], index: 2, kind: input, shape index: {}]   ;;  %s2250_s3 = inlined_call_operand.vmem [shape: bf16[256,512], index: 3, kind: input, shape index: {}]   ;;  %s2251_s4 = inlined_call_operand.vmem [shape: f32[1,512], index: 4, kind: input, shape index: {}]   ;;  %s2252_s5 = inlined_call_operand.vmem [shape: f32[7,256], index: 5, kind: input, shape index: {}]   ;;  %s2253_s6 = inlined_call_operand.vmem [shape: f32[1,256], index: 6, kind: input, shape index: {}]   ;;  %s2254_s7 = inlined_call_operand.vmem [shape: f32[1,256], index: 7, kind: input, shape index: {}]   ;;  %s2255_s8 = inlined_call_operand.vmem [shape: f32[1,256], index: 8, kind: input, shape index: {}]   ;;  %s2256_s9 = inlined_call_operand.vmem [shape: bf16[256,256], index: 9, kind: input, shape index: {}]   ;;  %s2257_s10 = inlined_call_operand.vmem [shape: f32[1,256], index: 10, kind: input, shape index: {}]   ;;  %s2258_s11 = inlined_call_operand.vmem [shape: f32[2,8,256], index: 11, kind: output, shape index: {}]  }
   0x1 LB: > { %s1442_s18 = sadd.s32 4294967295, %s1732_s17   ;;  %p1446_p0 = scmp.ge.s32.totalorder %s1732_s17, 1  ;;  %s1732_s17 = sphi %s1795_s17, %s21_s17  }
   0x2   : > { %p337_p1 = scmp.lt.s32.totalorder %s1732_s17, 3 }
   0x4   : > { %p338_p2 = pnand %p1446_p0, %p337_p1 }
   0x5   : > { %p377_p3 = scmp.lt.s32.totalorder (!%p338_p2), %s1442_s18, 1 }
   0x6   : > { %341 = sbr.rel (%p338_p2) target bundleno = 821 (0x335), region = 64 }
   0xb   : > { %s2260_s18 = smov (!%p377_p3, %s1442_s18), 1  ;;  %v1564_v3 = vld [vmem:[%s2250_s3 + $0xe4] ss:$16 sps:$4 sm:$0xff]   ;;  %v1566_v4 = vld [vmem:[%s2250_s3 + $0xec] ss:$16 sps:$4 sm:$0xff]  }
   0xc   : > { %s1553_s19 = sshll.u32 %s2260_s18, 4  ;;  %v1568_v5 = vld [vmem:[%s2250_s3 + $0xe0] ss:$16 sps:$4 sm:$0xff]   ;;  %v1569_v6 = vld [vmem:[%s2250_s3 + $0xe8] ss:$16 sps:$4 sm:$0xff]   ;;  %842 = vmatprep.subr.bf16.mxu0 %v1564_v3  ;;  %883 = vmatprep.subr.bf16.mxu1 %v1566_v4 }
   0xd   : > { %s381_s22 = scalar_lea.vmem %s2247_s0, %s1553_s19  ;;  %v1570_v7 = vld [vmem:[%s2250_s3 + $0xc4] ss:$16 sps:$4 sm:$0xff]   ;;  %v1572_v8 = vld [vmem:[%s2250_s3 + $0xcc] ss:$16 sps:$4 sm:$0xff]   ;;  %843 = vmatpush1.bf16.msra.mxu0 %v1568_v5  ;;  %884 = vmatpush1.bf16.msra.mxu1 %v1569_v6  ;;  %v1574_v9 = vld [vmem:[%s2250_s3 + $0xc0] ss:$16 sps:$4 sm:$0xff]   ;;  %s386_s27 = scalar_lea.vmem %s2258_s11, %s1553_s19 }
   0xe   : > { %v1811_v0 = vld [vmem:[%s381_s22] sm:$0xff]  ;;  %v1813_v1 = vld [vmem:[%s381_s22 + $0x8] sm:$0xff]  ;;  %844 = vmatprep.subr.bf16.mxu0 %v1570_v7  ;;  %885 = vmatprep.subr.bf16.mxu1 %v1572_v8 }
   0xf   : > { %v391_v2 = vadd.f32 %v1813_v1, %v1811_v0  ;;  %v1575_v10 = vld [vmem:[%s2250_s3 + $0xc8] ss:$16 sps:$4 sm:$0xff]   ;;  %v1576_v11 = vld [vmem:[%s2250_s3 + $0xa4] ss:$16 sps:$4 sm:$0xff]   ;;  %v1578_v12 = vld [vmem:[%s2250_s3 + $0xac] ss:$16 sps:$4 sm:$0xff]  }
  0x10   : > { %v1580_v13 = vld [vmem:[%s2250_s3 + $0xa0] ss:$16 sps:$4 sm:$0xff]   ;;  %v1581_v14 = vld [vmem:[%s2250_s3 + $0xa8] ss:$16 sps:$4 sm:$0xff]   ;;  %v1582_v15 = vld [vmem:[%s2250_s3 + $0x84] ss:$16 sps:$4 sm:$0xff]  }
  0x11   : > { %392 = vadd.xlane.f32.xlu0 %v391_v2  ;;  %845 = vmatpush1.bf16.msra.mxu0 %v1574_v9  ;;  %v1584_v16 = vld [vmem:[%s2250_s3 + $0x8c] ss:$16 sps:$4 sm:$0xff]   ;;  %v1586_v17 = vld [vmem:[%s2250_s3 + $0x80] ss:$16 sps:$4 sm:$0xff]   ;;  %v1587_v18 = vld [vmem:[%s2250_s3 + $0x88] ss:$16 sps:$4 sm:$0xff]  }
  0x12   : > { %886 = vmatpush1.bf16.msra.mxu1 %v1575_v10  ;;  %846 = vmatprep.subr.bf16.mxu0 %v1576_v11  ;;  %v1588_v19 = vld [vmem:[%s2250_s3 + $0x64] ss:$16 sps:$4 sm:$0xff]   ;;  %v1590_v20 = vld [vmem:[%s2250_s3 + $0x6c] ss:$16 sps:$4 sm:$0xff]   ;;  %v1592_v21 = vld [vmem:[%s2250_s3 + $0x60] ss:$16 sps:$4 sm:$0xff]  }
  0x13   : > { %887 = vmatprep.subr.bf16.mxu1 %v1578_v12  ;;  %v1593_v22 = vld [vmem:[%s2250_s3 + $0x68] ss:$16 sps:$4 sm:$0xff]   ;;  %v1594_v23 = vld [vmem:[%s2250_s3 + $0x44] ss:$16 sps:$4 sm:$0xff]   ;;  %v1596_v24 = vld [vmem:[%s2250_s3 + $0x4c] ss:$16 sps:$4 sm:$0xff]  }
  0x14   : > { %v1598_v25 = vld [vmem:[%s2250_s3 + $0x40] ss:$16 sps:$4 sm:$0xff]   ;;  %v1599_v26 = vld [vmem:[%s2250_s3 + $0x48] ss:$16 sps:$4 sm:$0xff]   ;;  %v1600_v27 = vld [vmem:[%s2250_s3 + $0x24] ss:$16 sps:$4 sm:$0xff]  }
  0x15   : > { %847 = vmatpush1.bf16.msra.mxu0 %v1580_v13  ;;  %v1602_v28 = vld [vmem:[%s2250_s3 + $0x2c] ss:$16 sps:$4 sm:$0xff]   ;;  %v1604_v29 = vld [vmem:[%s2250_s3 + $0x20] ss:$16 sps:$4 sm:$0xff]   ;;  %v1605_v30 = vld [vmem:[%s2250_s3 + $0x28] ss:$16 sps:$4 sm:$0xff]  }
  0x16   : > { %888 = vmatpush1.bf16.msra.mxu1 %v1581_v14  ;;  %848 = vmatprep.subr.bf16.mxu0 %v1582_v15  ;;  %v1606_v31 = vld [vmem:[%s2250_s3 + $0x4] ss:$16 sps:$4 sm:$0xff]   ;;  %v1608_v32 = vld [vmem:[%s2250_s3 + $0xc] ss:$16 sps:$4 sm:$0xff]   ;;  %v1610_v33 = vld [vmem:[%s2250_s3] ss:$16 sps:$4 sm:$0xff]   ;;  %v409_v15 = vlaneseq }
  0x17   : > { %889 = vmatprep.subr.bf16.mxu1 %v1584_v16  ;;  %v1611_v34 = vld [vmem:[%s2250_s3 + $0x8] ss:$16 sps:$4 sm:$0xff]   ;;  %v1612_v35 = vld [vmem:[%s2250_s3 + $0x1e4] ss:$16 sps:$4 sm:$0xff]   ;;  %v1614_v36 = vld [vmem:[%s2250_s3 + $0x1ec] ss:$16 sps:$4 sm:$0xff]  }
  0x18   : > { %v1616_v37 = vld [vmem:[%s2250_s3 + $0x1e0] ss:$16 sps:$4 sm:$0xff]   ;;  %v1617_v38 = vld [vmem:[%s2250_s3 + $0x1e8] ss:$16 sps:$4 sm:$0xff]   ;;  %v1618_v39 = vld [vmem:[%s2250_s3 + $0x1c4] ss:$16 sps:$4 sm:$0xff]  }
  0x19   : > { %849 = vmatpush1.bf16.msra.mxu0 %v1586_v17  ;;  %v1620_v40 = vld [vmem:[%s2250_s3 + $0x1cc] ss:$16 sps:$4 sm:$0xff]   ;;  %v1622_v48 = vld [vmem:[%s2250_s3 + $0x1c0] ss:$16 sps:$4 sm:$0xff]   ;;  %v1623_v49 = vld [vmem:[%s2250_s3 + $0x1c8] ss:$16 sps:$4 sm:$0xff]  }
  0x1a   : > { %890 = vmatpush1.bf16.msra.mxu1 %v1587_v18  ;;  %850 = vmatprep.subr.bf16.mxu0 %v1588_v19  ;;  %v1624_v50 = vld [vmem:[%s2250_s3 + $0x1a4] ss:$16 sps:$4 sm:$0xff]   ;;  %v1626_v51 = vld [vmem:[%s2250_s3 + $0x1ac] ss:$16 sps:$4 sm:$0xff]   ;;  %v1628_v52 = vld [vmem:[%s2250_s3 + $0x1a0] ss:$16 sps:$4 sm:$0xff]  }
  0x1b   : > { %891 = vmatprep.subr.bf16.mxu1 %v1590_v20  ;;  %v1629_v53 = vld [vmem:[%s2250_s3 + $0x1a8] ss:$16 sps:$4 sm:$0xff]   ;;  %v1630_v54 = vld [vmem:[%s2250_s3 + $0x184] ss:$16 sps:$4 sm:$0xff]   ;;  %v1632_v55 = vld [vmem:[%s2250_s3 + $0x18c] ss:$16 sps:$4 sm:$0xff]  }
  0x1c   : > { %v1634_v56 = vld [vmem:[%s2250_s3 + $0x180] ss:$16 sps:$4 sm:$0xff]   ;;  %v1635_v57 = vld [vmem:[%s2250_s3 + $0x188] ss:$16 sps:$4 sm:$0xff]   ;;  %v1636_v58 = vld [vmem:[%s2250_s3 + $0x164] ss:$16 sps:$4 sm:$0xff]  }
  0x1d   : > { %851 = vmatpush1.bf16.msra.mxu0 %v1592_v21  ;;  %v1638_v59 = vld [vmem:[%s2250_s3 + $0x16c] ss:$16 sps:$4 sm:$0xff]   ;;  %v1640_v60 = vld [vmem:[%s2250_s3 + $0x160] ss:$16 sps:$4 sm:$0xff]   ;;  %v1641_v61 = vld [vmem:[%s2250_s3 + $0x168] ss:$16 sps:$4 sm:$0xff]  }
  0x1e   : > { %892 = vmatpush1.bf16.msra.mxu1 %v1593_v22  ;;  %852 = vmatprep.subr.bf16.mxu0 %v1594_v23  ;;  %v1642_v62 = vld [vmem:[%s2250_s3 + $0x144] ss:$16 sps:$4 sm:$0xff]   ;;  %v1644_v63 = vld [vmem:[%s2250_s3 + $0x14c] ss:$16 sps:$4 sm:$0xff]   ;;  %v1646_v2 = vld [vmem:[%s2250_s3 + $0x140] ss:$16 sps:$4 sm:$0xff]  }
  0x1f   : > { %893 = vmatprep.subr.bf16.mxu1 %v1596_v24  ;;  %v1647_v3 = vld [vmem:[%s2250_s3 + $0x148] ss:$16 sps:$4 sm:$0xff]   ;;  %v1648_v4 = vld [vmem:[%s2250_s3 + $0x124] ss:$16 sps:$4 sm:$0xff]   ;;  %v1650_v5 = vld [vmem:[%s2250_s3 + $0x12c] ss:$16 sps:$4 sm:$0xff]  }
  0x20   : > { %v1652_v6 = vld [vmem:[%s2250_s3 + $0x120] ss:$16 sps:$4 sm:$0xff]   ;;  %v1653_v7 = vld [vmem:[%s2250_s3 + $0x128] ss:$16 sps:$4 sm:$0xff]   ;;  %v1654_v8 = vld [vmem:[%s2250_s3 + $0x104] ss:$16 sps:$4 sm:$0xff]  }
  0x21   : > { %853 = vmatpush1.bf16.msra.mxu0 %v1598_v25  ;;  %v1656_v9 = vld [vmem:[%s2250_s3 + $0x10c] ss:$16 sps:$4 sm:$0xff]   ;;  %v1658_v10 = vld [vmem:[%s2250_s3 + $0x100] ss:$16 sps:$4 sm:$0xff]   ;;  %v1659_v11 = vld [vmem:[%s2250_s3 + $0x108] ss:$16 sps:$4 sm:$0xff]  }
  0x22   : > { %894 = vmatpush1.bf16.msra.mxu1 %v1599_v26  ;;  %854 = vmatprep.subr.bf16.mxu0 %v1600_v27  ;;  %v2019_v16 = vshrl.u32 %v409_v15, 7  ;;  %v389_v19 = vld [vmem:[%s2248_s1] sm:$0x3] }
  0x23   : > { %895 = vmatprep.subr.bf16.mxu1 %v1602_v28  ;;  %v390_v20 = vld [vmem:[%s2249_s2] sm:$0x3] }
  0x24   : > { %v2022_v17 = vsub.s32 0, %v2019_v16  ;;  %v2025_v18 = vsub.s32 1, %v2019_v16  ;;  %vm940_vm0 = vcmp.lt.s32.totalorder %v2019_v16, 7  ;;  %vm959_vm1 = vcmp.lt.s32.totalorder %v2019_v16, 3 }
  0x25   : > { %855 = vmatpush1.bf16.msra.mxu0 %v1604_v29  ;;  %vm978_vm2 = vcmp.lt.s32.totalorder %v2019_v16, 2  ;;  %vm997_vm3 = vcmp.lt.s32.totalorder %v2019_v16, 1  ;;  %vm1046_vm4 = vcmp.lt.s32.totalorder %v2019_v16, 6  ;;  %vm1065_vm5 = vcmp.lt.s32.totalorder %v2019_v16, 5 }
  0x26   : > { %896 = vmatpush1.bf16.msra.mxu1 %v1605_v30  ;;  %856 = vmatprep.subr.bf16.mxu0 %v1606_v31  ;;  %v412_v21 = vrot.slane %v389_v19, %v2022_v17  ;;  %v416_v22 = vrot.slane %v389_v19, %v2025_v18  ;;  %v425_v25 = vrot.slane %v390_v20, %v2022_v17 }
  0x27   : > { %897 = vmatprep.subr.bf16.mxu1 %v1608_v32  ;;  %v429_v26 = vrot.slane %v390_v20, %v2025_v18 }
  0x29   : > { %857 = vmatpush1.bf16.msra.mxu0 %v1610_v33 }
  0x2a   : > { %898 = vmatpush1.bf16.msra.mxu1 %v1611_v34  ;;  %858 = vmatprep.subr.bf16.mxu0 %v1612_v35  ;;  %v1662_v34 = vld [vmem:[%s2256_s9 + $0x74] ss:$8 sps:$4 sm:$0xff]   ;;  %v1660_v35 = vld [vmem:[%s2256_s9 + $0x70] ss:$8 sps:$4 sm:$0xff]  }
  0x2b   : > { %899 = vmatprep.subr.bf16.mxu1 %v1614_v36  ;;  %v1665_v36 = vld [vmem:[%s2256_s9 + $0x64] ss:$8 sps:$4 sm:$0xff]  }
  0x2d   : > { %859 = vmatpush2.bf16.msra.mxu0 %v1616_v37  ;;  %v1663_v37 = vld [vmem:[%s2256_s9 + $0x60] ss:$8 sps:$4 sm:$0xff]  }
  0x2e   : > { %900 = vmatpush2.bf16.msra.mxu1 %v1617_v38  ;;  %860 = vmatprep.subr.bf16.mxu0 %v1618_v39  ;;  %v1668_v38 = vld [vmem:[%s2256_s9 + $0x54] ss:$8 sps:$4 sm:$0xff]   ;;  %v1666_v39 = vld [vmem:[%s2256_s9 + $0x50] ss:$8 sps:$4 sm:$0xff]  }
  0x2f   : > { %901 = vmatprep.subr.bf16.mxu1 %v1620_v40  ;;  %v1671_v40 = vld [vmem:[%s2256_s9 + $0x44] ss:$8 sps:$4 sm:$0xff]  }
  0x31   : > { %861 = vmatpush2.bf16.msra.mxu0 %v1622_v48  ;;  %v1683_v48 = vld [vmem:[%s2256_s9 + $0x4] ss:$8 sps:$4 sm:$0xff]  }
  0x32   : > { %902 = vmatpush2.bf16.msra.mxu1 %v1623_v49  ;;  %862 = vmatprep.subr.bf16.mxu0 %v1624_v50  ;;  %v1681_v49 = vld [vmem:[%s2256_s9] ss:$8 sps:$4 sm:$0xff]   ;;  %v1686_v50 = vld [vmem:[%s2256_s9 + $0xf4] ss:$8 sps:$4 sm:$0xff]  }
  0x33   : > { %903 = vmatprep.subr.bf16.mxu1 %v1626_v51  ;;  %v1684_v51 = vld [vmem:[%s2256_s9 + $0xf0] ss:$8 sps:$4 sm:$0xff]  }
  0x35   : > { %863 = vmatpush2.bf16.msra.mxu0 %v1628_v52  ;;  %v1689_v52 = vld [vmem:[%s2256_s9 + $0xe4] ss:$8 sps:$4 sm:$0xff]  }
  0x36   : > { %904 = vmatpush2.bf16.msra.mxu1 %v1629_v53  ;;  %864 = vmatprep.subr.bf16.mxu0 %v1630_v54  ;;  %v1687_v53 = vld [vmem:[%s2256_s9 + $0xe0] ss:$8 sps:$4 sm:$0xff]   ;;  %v1692_v54 = vld [vmem:[%s2256_s9 + $0xd4] ss:$8 sps:$4 sm:$0xff]  }
  0x37   : > { %905 = vmatprep.subr.bf16.mxu1 %v1632_v55  ;;  %v1690_v55 = vld [vmem:[%s2256_s9 + $0xd0] ss:$8 sps:$4 sm:$0xff]  }
  0x39   : > { %865 = vmatpush2.bf16.msra.mxu0 %v1634_v56  ;;  %v1695_v56 = vld [vmem:[%s2256_s9 + $0xc4] ss:$8 sps:$4 sm:$0xff]  }
  0x3a   : > { %906 = vmatpush2.bf16.msra.mxu1 %v1635_v57  ;;  %866 = vmatprep.subr.bf16.mxu0 %v1636_v58  ;;  %v1693_v57 = vld [vmem:[%s2256_s9 + $0xc0] ss:$8 sps:$4 sm:$0xff]   ;;  %v1698_v58 = vld [vmem:[%s2256_s9 + $0xb4] ss:$8 sps:$4 sm:$0xff]  }
  0x3b   : > { %907 = vmatprep.subr.bf16.mxu1 %v1638_v59  ;;  %v1696_v59 = vld [vmem:[%s2256_s9 + $0xb0] ss:$8 sps:$4 sm:$0xff]  }
  0x3d   : > { %867 = vmatpush2.bf16.msra.mxu0 %v1640_v60  ;;  %v1701_v60 = vld [vmem:[%s2256_s9 + $0xa4] ss:$8 sps:$4 sm:$0xff]  }
  0x3e   : > { %908 = vmatpush2.bf16.msra.mxu1 %v1641_v61  ;;  %868 = vmatprep.subr.bf16.mxu0 %v1642_v62  ;;  %v1699_v61 = vld [vmem:[%s2256_s9 + $0xa0] ss:$8 sps:$4 sm:$0xff]   ;;  %v1704_v62 = vld [vmem:[%s2256_s9 + $0x94] ss:$8 sps:$4 sm:$0xff]  }
  0x3f   : > { %909 = vmatprep.subr.bf16.mxu1 %v1644_v63  ;;  %v1702_v63 = vld [vmem:[%s2256_s9 + $0x90] ss:$8 sps:$4 sm:$0xff]  }
  0x41   : > { %869 = vmatpush2.bf16.msra.mxu0 %v1646_v2  ;;  %v1707_v2 = vld [vmem:[%s2256_s9 + $0x84] ss:$8 sps:$4 sm:$0xff]  }
  0x42   : > { %910 = vmatpush2.bf16.msra.mxu1 %v1647_v3  ;;  %870 = vmatprep.subr.bf16.mxu0 %v1648_v4  ;;  %v1705_v3 = vld [vmem:[%s2256_s9 + $0x80] ss:$8 sps:$4 sm:$0xff]   ;;  %v2136_v4 = vsub.s32 2, %v2019_v16 }
  0x43   : > { %911 = vmatprep.subr.bf16.mxu1 %v1650_v5  ;;  %v500_v5 = vld [vmem:[%s2251_s4] sm:$0xf] }
  0x45   : > { %871 = vmatpush2.bf16.msra.mxu0 %v1652_v6  ;;  %v2142_v6 = vsub.s32 3, %v2019_v16 }
  0x46   : > { %912 = vmatpush2.bf16.msra.mxu1 %v1653_v7  ;;  %872 = vmatprep.subr.bf16.mxu0 %v1654_v8  ;;  %v513_v7 = vrot.slane %v500_v5, %v2136_v4 }
  0x47   : > { %913 = vmatprep.subr.bf16.mxu1 %v1656_v9  ;;  %v517_v8 = vrot.slane %v500_v5, %v2142_v6 }
  0x49   : > { %873 = vmatpush2.bf16.msra.mxu0 %v1658_v10 }
  0x4a   : > { %914 = vmatpush2.bf16.msra.mxu1 %v1659_v11  ;;  %1342 = vmatprep.subr.bf16.mxu0 %v1662_v34 }
  0x9a   : > { %v393_v41 = vpop.xlane.xlu0 %392 }
  0x9b   : > { %v395_v42 = vmul.f32 0.00390625, %v393_v41  ;;  %v1669_v41 = vld [vmem:[%s2256_s9 + $0x40] ss:$8 sps:$4 sm:$0xff]  }
  0x9d   : > { %v1932_v43 = vsub.f32 %v1811_v0, %v395_v42  ;;  %v1935_v44 = vsub.f32 %v1813_v1, %v395_v42  ;;  %v1674_v42 = vld [vmem:[%s2256_s9 + $0x34] ss:$8 sps:$4 sm:$0xff]  }
  0x9f   : > { %v398_v45 = vmul.f32 %v1932_v43, %v1932_v43  ;;  %v399_v46 = vmul.f32 %v1935_v44, %v1935_v44 }
  0xa1   : > { %v400_v47 = vadd.f32 %v399_v46, %v398_v45  ;;  %v1675_v45 = vld [vmem:[%s2256_s9 + $0x20] ss:$8 sps:$4 sm:$0xff]   ;;  %v1680_v46 = vld [vmem:[%s2256_s9 + $0x14] ss:$8 sps:$4 sm:$0xff]  }
  0xa3   : > { %401 = vadd.xlane.f32.xlu0 %v400_v47  ;;  %v1678_v47 = vld [vmem:[%s2256_s9 + $0x10] ss:$8 sps:$4 sm:$0xff]  }
 0x12c   : > { %v402_v12 = vpop.xlane.xlu0 %401 }
 0x12d   : > { %v403_v13 = vmul.f32 0.00390625, %v402_v12 }
 0x12f   : > { %v404_v14 = vadd.f32 1e-05, %v403_v13 }
 0x131   : > { %1708 = vrsqrt.f32 %v404_v14 }
 0x13e   : > { %v1709_v23 = vpop.eup %1708 }
 0x13f   : > { %v407_v24 = vmul.f32 %v1709_v23, %v1935_v44  ;;  %v406_v27 = vmul.f32 %v1709_v23, %v1932_v43  ;;  %v1672_v43 = vld [vmem:[%s2256_s9 + $0x30] ss:$8 sps:$4 sm:$0xff]   ;;  %v1677_v44 = vld [vmem:[%s2256_s9 + $0x24] ss:$8 sps:$4 sm:$0xff]  }
 0x141   : > { %v420_v28 = vmul.f32 %v416_v22, %v407_v24  ;;  %v419_v29 = vmul.f32 %v412_v21, %v406_v27 }
 0x143   : > { %v433_v30 = vadd.f32 %v429_v26, %v420_v28  ;;  %v432_v31 = vadd.f32 %v425_v25, %v419_v29  ;;  %v505_v28 = vrot.slane %v500_v5, %v2022_v17  ;;  %v2151_v29 = vld [vmem:[%s2252_s5] sm:$0x7f] }
 0x144   : > { %v965_v34 = vrot.slane %v2151_v29, %v2022_v17 }
 0x145   : > { %v435_v32 = vpack.c.bf16 %v433_v30, %v433_v30  ;;  %v434_v33 = vpack.c.bf16 %v432_v31, %v432_v31  ;;  %v2156_v30 = vld [vmem:[%s2252_s5 + $0x8] sm:$0x7f]  ;;  %v1734_v31 = vmov 0.0  }
 0x147   : > { %874 = vmatprep.mubr.bf16.mxu0 %v435_v32  ;;  %915 = vmatprep.mubr.bf16.mxu1 %v435_v32  ;;  %v957_v32 = vrot.slane %v1734_v31, 5 }
 0x148   : > { %875 = vmatmul.mubr.bf16.vlgmr.msra.gmra.mxu0 %v434_v33  ;;  %916 = vmatmul.mubr.bf16.vlgmr.msra.gmra.mxu1 %v434_v33  ;;  %v509_v33 = vrot.slane %v500_v5, %v2025_v18 }
 0x149   : > { %1343 = vmatpush1.bf16.msra.mxu0 %v1660_v35  ;;  %v976_v35 = vrot.slane %v1734_v31, 6 }
 0x14a   : > { %1344 = vmatprep.subr.bf16.mxu0 %v1665_v36  ;;  %v995_v36 = vrot.slane %v1734_v31, 7 }
 0x14d   : > { %1345 = vmatpush1.bf16.msra.mxu0 %v1663_v37 }
 0x14e   : > { %1346 = vmatprep.subr.bf16.mxu0 %v1668_v38  ;;  %v984_v38 = vrot.slane %v2151_v29, %v2025_v18 }
 0x151   : > { %1347 = vmatpush1.bf16.msra.mxu0 %v1666_v39  ;;  %v1032_v39 = vsub.s32 4, %v2019_v16 }
 0x152   : > { %1348 = vmatprep.subr.bf16.mxu0 %v1671_v40 }
 0x155   : > { %1349 = vmatpush1.bf16.msra.mxu0 %v1669_v41  ;;  %v1003_v41 = vrot.slane %v2151_v29, %v2136_v4 }
 0x156   : > { %1350 = vmatprep.subr.bf16.mxu0 %v1674_v42  ;;  %v1015_v42 = vrot.slane %v2151_v29, %v2142_v6 }
 0x159   : > { %1351 = vmatpush1.bf16.msra.mxu0 %v1672_v43  ;;  %v1019_v43 = vrot.slane %v2156_v30, %v2142_v6 }
 0x15a   : > { %1352 = vmatprep.subr.bf16.mxu0 %v1677_v44 }
 0x15d   : > { %1353 = vmatpush1.bf16.msra.mxu0 %v1675_v45  ;;  %v1007_v45 = vrot.slane %v2156_v30, %v2136_v4 }
 0x15e   : > { %1354 = vmatprep.subr.bf16.mxu0 %v1680_v46 }
 0x161   : > { %1355 = vmatpush1.bf16.msra.mxu0 %v1678_v47  ;;  %v1026_v47 = vrot.slane %v1734_v31, 1 }
 0x162   : > { %1356 = vmatprep.subr.bf16.mxu0 %v1683_v48 }
 0x165   : > { %1357 = vmatpush1.bf16.msra.mxu0 %v1681_v49  ;;  %v969_v49 = vrot.slane %v2156_v30, %v2022_v17 }
 0x166   : > { %1358 = vmatprep.subr.bf16.mxu0 %v1686_v50  ;;  %v988_v50 = vrot.slane %v2156_v30, %v2025_v18 }
 0x169   : > { %1359 = vmatpush2.bf16.msra.mxu0 %v1684_v51  ;;  %v1044_v51 = vrot.slane %v1734_v31, 2 }
 0x16a   : > { %1360 = vmatprep.subr.bf16.mxu0 %v1689_v52  ;;  %v1051_v52 = vsub.s32 5, %v2019_v16 }
 0x16d   : > { %1361 = vmatpush2.bf16.msra.mxu0 %v1687_v53 }
 0x16e   : > { %1362 = vmatprep.subr.bf16.mxu0 %v1692_v54 }
 0x171   : > { %1363 = vmatpush2.bf16.msra.mxu0 %v1690_v55  ;;  %v1033_v55 = vrot.slane %v2151_v29, %v1032_v39 }
 0x172   : > { %1364 = vmatprep.subr.bf16.mxu0 %v1695_v56  ;;  %v1070_v56 = vsub.s32 6, %v2019_v16 }
 0x175   : > { %1365 = vmatpush2.bf16.msra.mxu0 %v1693_v57 }
 0x176   : > { %1366 = vmatprep.subr.bf16.mxu0 %v1698_v58 }
 0x179   : > { %1367 = vmatpush2.bf16.msra.mxu0 %v1696_v59 }
 0x17a   : > { %1368 = vmatprep.subr.bf16.mxu0 %v1701_v60 }
 0x17d   : > { %1369 = vmatpush2.bf16.msra.mxu0 %v1699_v61 }
 0x17e   : > { %1370 = vmatprep.subr.bf16.mxu0 %v1704_v62  ;;  %v1063_v62 = vrot.slane %v1734_v31, 3 }
 0x181   : > { %1371 = vmatpush2.bf16.msra.mxu0 %v1702_v63 }
 0x182   : > { %1372 = vmatprep.subr.bf16.mxu0 %v1707_v2 }
 0x185   : > { %1373 = vmatpush2.bf16.msra.mxu0 %v1705_v3 }
 0x208   : > { %v876_v9 = vpop.f32.mrf.mxu0  ;;  %v917_v10 = vpop.f32.mrf.mxu1 }
 0x209   : > { %v918_v11 = vadd.f32 %v917_v10, %v513_v7  ;;  %v877_v37 = vadd.f32 %v876_v9, %v505_v28 }
 0x20a   : > { %v878_v12 = vpop.f32.mrf.mxu0  ;;  %v919_v13 = vpop.f32.mrf.mxu1 }
 0x20b   : > { %v1515_v14 = vmul.f32 -1.442695, %v918_v11  ;;  %v920_v15 = vadd.f32 %v919_v13, %v517_v8  ;;  %v879_v46 = vadd.f32 %v878_v12, %v509_v33  ;;  %v1052_v8 = vrot.slane %v2151_v29, %v1051_v52 }
 0x20c   : > { %v880_v19 = vpop.f32.mrf.mxu0  ;;  %v921_v20 = vpop.f32.mrf.mxu1  ;;  %v1071_v33 = vrot.slane %v2151_v29, %v1070_v56 }
 0x20d   : > { %1710 = vpow2.f32 %v1515_v14  ;;  %v1516_v21 = vmul.f32 -1.442695, %v920_v15 }
 0x20e   : > { %v881_v22 = vpop.f32.mrf.mxu0  ;;  %v922_v23 = vpop.f32.mrf.mxu1 }
 0x20f   : > { %1712 = vpow2.f32 %v1516_v21 }
 0x21a   : > { %v1711_v24 = vpop.eup %1710 }
 0x21b   : > { %v930_v25 = vadd.f32 1.0, %v1711_v24 }
 0x21c   : > { %v1713_v26 = vpop.eup %1712 }
 0x21d   : > { %1714 = vrcp.f32 %v930_v25  ;;  %v931_v27 = vadd.f32 1.0, %v1713_v26  ;;  %v1037_v26 = vrot.slane %v2156_v30, %v1032_v39  ;;  %v1080_v39 = vld [vmem:[%s2253_s6] sm:$0x3] }
 0x21f   : > { %1716 = vrcp.f32 %v931_v27 }
 0x22a   : > { %v1715_v40 = vpop.eup %1714 }
 0x22b   : > { %v936_v44 = vmul.f32 %v1715_v40, %v877_v37 }
 0x22c   : > { %v1717_v48 = vpop.eup %1716 }
 0x22d   : > { %v943_v53 = vsel %vm940_vm0, %v936_v44, 0.0  ;;  %v937_v54 = vmul.f32 %v1717_v48, %v879_v46 }
 0x22e   : > { %v955_v57 = vrot.slane %v943_v53, 5  ;;  %v974_v58 = vrot.slane %v943_v53, 6  ;;  %v993_v59 = vrot.slane %v943_v53, 7  ;;  %v1024_v61 = vrot.slane %v943_v53, 1 }
 0x22f   : > { %v944_v60 = vsel %vm940_vm0, %v937_v54, 0.0  ;;  %v1042_v11 = vrot.slane %v943_v53, 2  ;;  %v1061_v12 = vrot.slane %v943_v53, 3  ;;  %v1020_v25 = vmul.f32 %v1015_v42, %v943_v53 }
 0x230   : > { %v960_v63 = vsel %vm959_vm1, %v957_v32, %v955_v57  ;;  %v979_v2 = vsel %vm978_vm2, %v976_v35, %v974_v58  ;;  %v998_v3 = vsel %vm997_vm3, %v995_v36, %v993_v59  ;;  %v956_v4 = vrot.slane %v944_v60, 5 }
 0x231   : > { %v970_v5 = vmul.f32 %v965_v34, %v960_v63  ;;  %v989_v6 = vmul.f32 %v984_v38, %v979_v2  ;;  %v975_v7 = vrot.slane %v944_v60, 6  ;;  %v994_v10 = vrot.slane %v944_v60, 7 }
 0x232   : > { %v961_v9 = vsel %vm959_vm1, %v957_v32, %v956_v4  ;;  %v1008_v14 = vmul.f32 %v1003_v41, %v998_v3  ;;  %v1028_v22 = vsel %vm940_vm0, %v1024_v61, %v1026_v47  ;;  %v1025_v23 = vrot.slane %v944_v60, 1 }
 0x233   : > { %v991_v13 = vadd.f32 %v989_v6, %v970_v5  ;;  %v971_v15 = vmul.f32 %v969_v49, %v961_v9  ;;  %v980_v19 = vsel %vm978_vm2, %v976_v35, %v975_v7  ;;  %v999_v21 = vsel %vm997_vm3, %v995_v36, %v994_v10 }
 0x234   : > { %v990_v20 = vmul.f32 %v988_v50, %v980_v19  ;;  %v1043_v27 = vrot.slane %v944_v60, 2  ;;  %v1009_v31 = vmul.f32 %v1007_v45, %v999_v21  ;;  %v1047_v32 = vsel %vm1046_vm4, %v1042_v11, %v1044_v51 }
 0x235   : > { %v1010_v24 = vadd.f32 %v1008_v14, %v991_v13  ;;  %v1038_v35 = vmul.f32 %v1033_v55, %v1028_v22  ;;  %v1029_v36 = vsel %vm940_vm0, %v1025_v23, %v1026_v47  ;;  %v1062_v37 = vrot.slane %v944_v60, 3  ;;  %v1170_v22 = vld [vmem:[%s2257_s10] sm:$0x3] }
 0x236   : > { %v992_v28 = vadd.f32 %v990_v20, %v971_v15  ;;  %v1021_v40 = vmul.f32 %v1019_v43, %v944_v60  ;;  %v1056_v41 = vrot.slane %v2156_v30, %v1051_v52  ;;  %v1066_v42 = vsel %vm1065_vm5, %v1061_v12, %v1063_v62  ;;  %v1094_v43 = vld [vmem:[%s2254_s7] sm:$0x3] }
 0x237   : > { %v1022_v34 = vadd.f32 %v1020_v25, %v1010_v24  ;;  %v1048_v29 = vsel %vm1046_vm4, %v1043_v27, %v1044_v51  ;;  %v1057_v45 = vmul.f32 %v1052_v8, %v1047_v32  ;;  %v1039_v48 = vmul.f32 %v1037_v26, %v1029_v36  ;;  %v1108_v51 = vld [vmem:[%s2255_s8] sm:$0x3] }
 0x238   : > { %v1011_v38 = vadd.f32 %v1009_v31, %v992_v28  ;;  %v1075_v47 = vrot.slane %v2156_v30, %v1070_v56  ;;  %v1067_v49 = vsel %vm1065_vm5, %v1062_v37, %v1063_v62  ;;  %v1085_v50 = vrot.slane %v1080_v39, %v2022_v17 }
 0x239   : > { %v1040_v44 = vadd.f32 %v1038_v35, %v1022_v34  ;;  %v1076_v53 = vmul.f32 %v1071_v33, %v1066_v42  ;;  %v1058_v55 = vmul.f32 %v1056_v41, %v1048_v29  ;;  %v1099_v57 = vrot.slane %v1094_v43, %v2022_v17 }
 0x23a   : > { %v1023_v46 = vadd.f32 %v1021_v40, %v1011_v38  ;;  %v1077_v58 = vmul.f32 %v1075_v47, %v1067_v49  ;;  %v1089_v59 = vrot.slane %v1080_v39, %v2025_v18  ;;  %v1113_v16 = vrot.slane %v1108_v51, %v2022_v17 }
 0x23b   : > { %v1059_v52 = vadd.f32 %v1057_v45, %v1040_v44  ;;  %v1103_v62 = vrot.slane %v1094_v43, %v2025_v18  ;;  %v1117_v3 = vrot.slane %v1108_v51, %v2025_v18  ;;  %v1175_v23 = vrot.slane %v1170_v22, %v2022_v17 }
 0x23c   : > { %v1041_v54 = vadd.f32 %v1039_v48, %v1023_v46  ;;  %v1179_v24 = vrot.slane %v1170_v22, %v2025_v18 }
 0x23d   : > { %v1078_v30 = vadd.f32 %v1076_v53, %v1059_v52 }
 0x23e   : > { %v1060_v56 = vadd.f32 %v1058_v55, %v1041_v54 }
 0x23f   : > { %v1092_v60 = vadd.f32 %v1085_v50, %v1078_v30 }
 0x240   : > { %v1079_v61 = vadd.f32 %v1077_v58, %v1060_v56 }
 0x241   : > { %v1106_v63 = vmul.f32 %v1099_v57, %v1092_v60 }
 0x242   : > { %v1093_v2 = vadd.f32 %v1089_v59, %v1079_v61 }
 0x243   : > { %v1120_v4 = vadd.f32 %v1113_v16, %v1106_v63 }
 0x244   : > { %v1107_v5 = vmul.f32 %v1103_v62, %v1093_v2 }
 0x245   : > { %v1517_v6 = vmul.f32 -1.442695, %v1120_v4 }
 0x246   : > { %v1121_v7 = vadd.f32 %v1117_v3, %v1107_v5 }
 0x247   : > { %1718 = vpow2.f32 %v1517_v6 }
 0x248   : > { %v1518_v8 = vmul.f32 -1.442695, %v1121_v7 }
 0x24a   : > { %1720 = vpow2.f32 %v1518_v8 }
 0x254   : > { %v1719_v9 = vpop.eup %1718 }
 0x255   : > { %v1128_v10 = vadd.f32 1.0, %v1719_v9 }
 0x257   : > { %v1721_v11 = vpop.eup %1720  ;;  %1722 = vrcp.f32 %v1128_v10 }
 0x258   : > { %v1129_v12 = vadd.f32 1.0, %v1721_v11 }
 0x25a   : > { %1724 = vrcp.f32 %v1129_v12 }
 0x264   : > { %v1723_v13 = vpop.eup %1722 }
 0x265   : > { %v1134_v15 = vmul.f32 %v1723_v13, %v1120_v4 }
 0x267   : > { %v1725_v14 = vpop.eup %1724  ;;  %v1136_v21 = vpack.c.bf16 %v1134_v15, %v1134_v15 }
 0x268   : > { %v1135_v19 = vmul.f32 %v1725_v14, %v1121_v7 }
 0x26a   : > { %v1137_v20 = vpack.c.bf16 %v1135_v19, %v1135_v19 }
 0x26c   : > { %1374 = vmatprep.mubr.bf16.mxu0 %v1137_v20 }
 0x26d   : > { %1375 = vmatmul.mubr.bf16.vlgmr.msra.gmra.mxu0 %v1136_v21 }
 0x32d   : > { %v1376_v25 = vpop.f32.mrf.mxu0 }
 0x32e   : > { %v1377_v26 = vadd.f32 %v1376_v25, %v1175_v23 }
 0x32f   : > { %v1378_v27 = vpop.f32.mrf.mxu0 }
 0x330   : > { %v1383_v28 = vadd.f32 %v1377_v26, %v1811_v0  ;;  %v1379_v31 = vadd.f32 %v1378_v27, %v1179_v24 }
 0x331   : > { %v1380_v32 = vpop.f32.mrf.mxu0 }
 0x332   : > { %1385 = vst [vmem:[%s386_s27] sm:$0xff] %v1383_v28  ;;  %v1384_v33 = vadd.f32 %v1379_v31, %v1813_v1 }
 0x333   : > { %v1381_v34 = vpop.f32.mrf.mxu0 }
 0x334   : > { %1386 = vst [vmem:[%s386_s27 + $0x8] sm:$0xff] %v1384_v33 }
 0x335 PF: > { %s21_s17 = sadd.s32 1, %s1732_s17  }
 0x336   : > { %p18_p4 = scmp.ge.s32.totalorder %s21_s17, 4  }
 0x338   :  { %20 = sbr.rel (!%p18_p4) target bundleno = 1 (0x1), region = 94 }

// kernel: conformer_encoder.20
= control target key start
LH: loop header
LB: loop body
LE: loop exit
PB: predicated region body
PF: predicated region fallthrough
CT: control target
= control target key end

     0   :  { %s2143_s0 = inlined_call_operand.vmem [shape: f32[16,256], index: 0, kind: input, shape index: {}]   ;;  %s2144_s3 = inlined_call_operand.vmem [shape: bf16[256,512], index: 3, kind: input, shape index: {}]   ;;  %s2145_s5 = inlined_call_operand.vmem [shape: bf16[512,256], index: 5, kind: input, shape index: {}]   ;;  %s2146_s1 = inlined_call_operand.vmem [shape: f32[1,256], index: 1, kind: input, shape index: {}]   ;;  %s2147_s2 = inlined_call_operand.vmem [shape: f32[1,256], index: 2, kind: input, shape index: {}]   ;;  %s2148_s4 = inlined_call_operand.vmem [shape: f32[1,512], index: 4, kind: input, shape index: {}]   ;;  %s2149_s6 = inlined_call_operand.vmem [shape: f32[1,256], index: 6, kind: input, shape index: {}]   ;;  %s2150_s7 = inlined_call_operand.vmem [shape: f32[1,256], index: 7, kind: input, shape index: {}]   ;;  %s2151_s8 = inlined_call_operand.vmem [shape: f32[1,256], index: 8, kind: input, shape index: {}]   ;;  %s2152_s9 = inlined_call_operand.vmem [shape: f32[16,256], index: 9, kind: output, shape index: {}]  }
   0x1   :  { %v1642_v0 = vld [vmem:[%s2143_s0] sm:$0xff]  ;;  %v1647_v1 = vld [vmem:[%s2143_s0 + $0x8] sm:$0xff]  ;;  %v1652_v2 = vld [vmem:[%s2143_s0 + $0x10] sm:$0xff] }
   0x2   :  { %v38_v3 = vadd.f32 %v1647_v1, %v1642_v0  ;;  %v1659_v4 = vld [vmem:[%s2143_s0 + $0x18] sm:$0xff]  ;;  %v1353_v6 = vld [vmem:[%s2144_s3 + $0xe4] ss:$16 sps:$4 sm:$0xff]   ;;  %v1357_v8 = vld [vmem:[%s2144_s3 + $0xe0] ss:$16 sps:$4 sm:$0xff]  }
   0x3   :  { %v41_v5 = vadd.f32 %v1659_v4, %v1652_v2  ;;  %v1355_v7 = vld [vmem:[%s2144_s3 + $0xec] ss:$16 sps:$4 sm:$0xff]   ;;  %509 = vmatprep.subr.bf16.mxu0 %v1353_v6  ;;  %v1358_v9 = vld [vmem:[%s2144_s3 + $0xe8] ss:$16 sps:$4 sm:$0xff]   ;;  %v1359_v10 = vld [vmem:[%s2144_s3 + $0xc4] ss:$16 sps:$4 sm:$0xff]  }
   0x4   :  { %39 = vadd.xlane.f32.xlu0 %v38_v3  ;;  %552 = vmatprep.subr.bf16.mxu1 %v1355_v7  ;;  %v1361_v11 = vld [vmem:[%s2144_s3 + $0xcc] ss:$16 sps:$4 sm:$0xff]   ;;  %v1363_v12 = vld [vmem:[%s2144_s3 + $0xc0] ss:$16 sps:$4 sm:$0xff]   ;;  %v1364_v13 = vld [vmem:[%s2144_s3 + $0xc8] ss:$16 sps:$4 sm:$0xff]  }
   0x5   :  { %510 = vmatpush1.bf16.msra.mxu0 %v1357_v8  ;;  %553 = vmatpush1.bf16.msra.mxu1 %v1358_v9  ;;  %v1365_v14 = vld [vmem:[%s2144_s3 + $0xa4] ss:$16 sps:$4 sm:$0xff]   ;;  %v1367_v15 = vld [vmem:[%s2144_s3 + $0xac] ss:$16 sps:$4 sm:$0xff]   ;;  %v1369_v16 = vld [vmem:[%s2144_s3 + $0xa0] ss:$16 sps:$4 sm:$0xff]  }
   0x6   :  { %511 = vmatprep.subr.bf16.mxu0 %v1359_v10  ;;  %554 = vmatprep.subr.bf16.mxu1 %v1361_v11  ;;  %v1370_v17 = vld [vmem:[%s2144_s3 + $0xa8] ss:$16 sps:$4 sm:$0xff]   ;;  %v1371_v18 = vld [vmem:[%s2144_s3 + $0x84] ss:$16 sps:$4 sm:$0xff]   ;;  %v1373_v19 = vld [vmem:[%s2144_s3 + $0x8c] ss:$16 sps:$4 sm:$0xff]  }
   0x7   :  { %v1375_v20 = vld [vmem:[%s2144_s3 + $0x80] ss:$16 sps:$4 sm:$0xff]   ;;  %v1376_v21 = vld [vmem:[%s2144_s3 + $0x88] ss:$16 sps:$4 sm:$0xff]   ;;  %v1377_v22 = vld [vmem:[%s2144_s3 + $0x64] ss:$16 sps:$4 sm:$0xff]  }
   0x8   :  { %42 = vadd.xlane.f32.xlu0 %v41_v5  ;;  %v1379_v23 = vld [vmem:[%s2144_s3 + $0x6c] ss:$16 sps:$4 sm:$0xff]   ;;  %v1381_v24 = vld [vmem:[%s2144_s3 + $0x60] ss:$16 sps:$4 sm:$0xff]   ;;  %v1382_v25 = vld [vmem:[%s2144_s3 + $0x68] ss:$16 sps:$4 sm:$0xff]  }
   0x9   :  { %512 = vmatpush1.bf16.msra.mxu0 %v1363_v12  ;;  %555 = vmatpush1.bf16.msra.mxu1 %v1364_v13  ;;  %v1383_v26 = vld [vmem:[%s2144_s3 + $0x44] ss:$16 sps:$4 sm:$0xff]   ;;  %v1385_v27 = vld [vmem:[%s2144_s3 + $0x4c] ss:$16 sps:$4 sm:$0xff]   ;;  %v1387_v28 = vld [vmem:[%s2144_s3 + $0x40] ss:$16 sps:$4 sm:$0xff]  }
   0xa   :  { %513 = vmatprep.subr.bf16.mxu0 %v1365_v14  ;;  %556 = vmatprep.subr.bf16.mxu1 %v1367_v15  ;;  %v1388_v29 = vld [vmem:[%s2144_s3 + $0x48] ss:$16 sps:$4 sm:$0xff]   ;;  %v1389_v30 = vld [vmem:[%s2144_s3 + $0x24] ss:$16 sps:$4 sm:$0xff]   ;;  %v1391_v31 = vld [vmem:[%s2144_s3 + $0x2c] ss:$16 sps:$4 sm:$0xff]  }
   0xb   :  { %v1393_v32 = vld [vmem:[%s2144_s3 + $0x20] ss:$16 sps:$4 sm:$0xff]   ;;  %v1394_v33 = vld [vmem:[%s2144_s3 + $0x28] ss:$16 sps:$4 sm:$0xff]   ;;  %v1395_v34 = vld [vmem:[%s2144_s3 + $0x4] ss:$16 sps:$4 sm:$0xff]  }
   0xc   :  { %v1397_v35 = vld [vmem:[%s2144_s3 + $0xc] ss:$16 sps:$4 sm:$0xff]   ;;  %v1399_v36 = vld [vmem:[%s2144_s3] ss:$16 sps:$4 sm:$0xff]   ;;  %v1400_v37 = vld [vmem:[%s2144_s3 + $0x8] ss:$16 sps:$4 sm:$0xff]  }
   0xd   :  { %514 = vmatpush1.bf16.msra.mxu0 %v1369_v16  ;;  %557 = vmatpush1.bf16.msra.mxu1 %v1370_v17  ;;  %v1401_v38 = vld [vmem:[%s2144_s3 + $0x1e4] ss:$16 sps:$4 sm:$0xff]   ;;  %v1403_v39 = vld [vmem:[%s2144_s3 + $0x1ec] ss:$16 sps:$4 sm:$0xff]   ;;  %v1405_v54 = vld [vmem:[%s2144_s3 + $0x1e0] ss:$16 sps:$4 sm:$0xff]  }
   0xe   :  { %515 = vmatprep.subr.bf16.mxu0 %v1371_v18  ;;  %558 = vmatprep.subr.bf16.mxu1 %v1373_v19  ;;  %v1406_v55 = vld [vmem:[%s2144_s3 + $0x1e8] ss:$16 sps:$4 sm:$0xff]   ;;  %v1407_v56 = vld [vmem:[%s2144_s3 + $0x1c4] ss:$16 sps:$4 sm:$0xff]   ;;  %v1409_v57 = vld [vmem:[%s2144_s3 + $0x1cc] ss:$16 sps:$4 sm:$0xff]  }
   0xf   :  { %v1411_v58 = vld [vmem:[%s2144_s3 + $0x1c0] ss:$16 sps:$4 sm:$0xff]   ;;  %v1412_v59 = vld [vmem:[%s2144_s3 + $0x1c8] ss:$16 sps:$4 sm:$0xff]   ;;  %v1413_v60 = vld [vmem:[%s2144_s3 + $0x1a4] ss:$16 sps:$4 sm:$0xff]  }
  0x10   :  { %v1415_v61 = vld [vmem:[%s2144_s3 + $0x1ac] ss:$16 sps:$4 sm:$0xff]   ;;  %v1417_v62 = vld [vmem:[%s2144_s3 + $0x1a0] ss:$16 sps:$4 sm:$0xff]   ;;  %v1418_v63 = vld [vmem:[%s2144_s3 + $0x1a8] ss:$16 sps:$4 sm:$0xff]  }
  0x11   :  { %516 = vmatpush1.bf16.msra.mxu0 %v1375_v20  ;;  %559 = vmatpush1.bf16.msra.mxu1 %v1376_v21  ;;  %v1424_v3 = vld [vmem:[%s2144_s3 + $0x188] ss:$16 sps:$4 sm:$0xff]   ;;  %v1427_v5 = vld [vmem:[%s2144_s3 + $0x16c] ss:$16 sps:$4 sm:$0xff]   ;;  %v1429_v6 = vld [vmem:[%s2144_s3 + $0x160] ss:$16 sps:$4 sm:$0xff]  }
  0x12   :  { %517 = vmatprep.subr.bf16.mxu0 %v1377_v22  ;;  %560 = vmatprep.subr.bf16.mxu1 %v1379_v23  ;;  %v1430_v7 = vld [vmem:[%s2144_s3 + $0x168] ss:$16 sps:$4 sm:$0xff]   ;;  %v1431_v8 = vld [vmem:[%s2144_s3 + $0x144] ss:$16 sps:$4 sm:$0xff]   ;;  %v1433_v9 = vld [vmem:[%s2144_s3 + $0x14c] ss:$16 sps:$4 sm:$0xff]  }
  0x13   :  { %v1435_v10 = vld [vmem:[%s2144_s3 + $0x140] ss:$16 sps:$4 sm:$0xff]   ;;  %v1436_v11 = vld [vmem:[%s2144_s3 + $0x148] ss:$16 sps:$4 sm:$0xff]   ;;  %v1437_v12 = vld [vmem:[%s2144_s3 + $0x124] ss:$16 sps:$4 sm:$0xff]  }
  0x14   :  { %v1439_v13 = vld [vmem:[%s2144_s3 + $0x12c] ss:$16 sps:$4 sm:$0xff]   ;;  %v1441_v14 = vld [vmem:[%s2144_s3 + $0x120] ss:$16 sps:$4 sm:$0xff]   ;;  %v1442_v15 = vld [vmem:[%s2144_s3 + $0x128] ss:$16 sps:$4 sm:$0xff]  }
  0x15   :  { %518 = vmatpush1.bf16.msra.mxu0 %v1381_v24  ;;  %561 = vmatpush1.bf16.msra.mxu1 %v1382_v25  ;;  %v1443_v16 = vld [vmem:[%s2144_s3 + $0x104] ss:$16 sps:$4 sm:$0xff]   ;;  %v1445_v17 = vld [vmem:[%s2144_s3 + $0x10c] ss:$16 sps:$4 sm:$0xff]   ;;  %v1447_v18 = vld [vmem:[%s2144_s3 + $0x100] ss:$16 sps:$4 sm:$0xff]  }
  0x16   :  { %519 = vmatprep.subr.bf16.mxu0 %v1383_v26  ;;  %562 = vmatprep.subr.bf16.mxu1 %v1385_v27  ;;  %v1448_v19 = vld [vmem:[%s2144_s3 + $0x108] ss:$16 sps:$4 sm:$0xff]   ;;  %v1451_v20 = vld [vmem:[%s2145_s5 + $0x74] ss:$8 sps:$4 sm:$0xff]  }
  0x17   :  { %v1454_v21 = vld [vmem:[%s2145_s5 + $0x174] ss:$8 sps:$4 sm:$0xff]  }
  0x19   :  { %520 = vmatpush1.bf16.msra.mxu0 %v1387_v28  ;;  %563 = vmatpush1.bf16.msra.mxu1 %v1388_v29  ;;  %v72_v28 = vlaneseq }
  0x1a   :  { %521 = vmatprep.subr.bf16.mxu0 %v1389_v30  ;;  %564 = vmatprep.subr.bf16.mxu1 %v1391_v31 }
  0x1b   :  { %v1881_v29 = vshrl.u32 %v72_v28, 7  ;;  %v1511_v28 = vld [vmem:[%s2145_s5 + $0xd4] ss:$8 sps:$4 sm:$0xff]  }
  0x1d   :  { %522 = vmatpush1.bf16.msra.mxu0 %v1393_v32  ;;  %565 = vmatpush1.bf16.msra.mxu1 %v1394_v33  ;;  %v1884_v30 = vsub.s32 0, %v1881_v29  ;;  %v1887_v31 = vsub.s32 1, %v1881_v29  ;;  %v36_v32 = vld [vmem:[%s2146_s1] sm:$0x3] }
  0x1e   :  { %523 = vmatprep.subr.bf16.mxu0 %v1395_v34  ;;  %566 = vmatprep.subr.bf16.mxu1 %v1397_v35  ;;  %v37_v34 = vld [vmem:[%s2147_s2] sm:$0x3] }
  0x21   :  { %524 = vmatpush1.bf16.msra.mxu0 %v1399_v36  ;;  %567 = vmatpush1.bf16.msra.mxu1 %v1400_v37  ;;  %v75_v36 = vrot.slane %v36_v32, %v1884_v30  ;;  %v79_v37 = vrot.slane %v36_v32, %v1887_v31  ;;  %v1514_v32 = vld [vmem:[%s2145_s5 + $0x1d4] ss:$8 sps:$4 sm:$0xff]  }
  0x22   :  { %525 = vmatprep.subr.bf16.mxu0 %v1401_v38  ;;  %568 = vmatprep.subr.bf16.mxu1 %v1403_v39 }
  0x25   :  { %526 = vmatpush2.bf16.msra.mxu0 %v1405_v54  ;;  %569 = vmatpush2.bf16.msra.mxu1 %v1406_v55 }
  0x26   :  { %527 = vmatprep.subr.bf16.mxu0 %v1407_v56  ;;  %570 = vmatprep.subr.bf16.mxu1 %v1409_v57  ;;  %v1460_v57 = vld [vmem:[%s2145_s5 + $0x164] ss:$8 sps:$4 sm:$0xff]  }
  0x29   :  { %528 = vmatpush2.bf16.msra.mxu0 %v1411_v58  ;;  %571 = vmatpush2.bf16.msra.mxu1 %v1412_v59  ;;  %v1455_v58 = vld [vmem:[%s2145_s5 + $0x60] ss:$8 sps:$4 sm:$0xff]  }
  0x2a   :  { %529 = vmatprep.subr.bf16.mxu0 %v1413_v60  ;;  %572 = vmatprep.subr.bf16.mxu1 %v1415_v61  ;;  %v1458_v59 = vld [vmem:[%s2145_s5 + $0x160] ss:$8 sps:$4 sm:$0xff]   ;;  %v1463_v60 = vld [vmem:[%s2145_s5 + $0x54] ss:$8 sps:$4 sm:$0xff]  }
  0x2b   :  { %v1466_v61 = vld [vmem:[%s2145_s5 + $0x154] ss:$8 sps:$4 sm:$0xff]  }
  0x2d   :  { %530 = vmatpush2.bf16.msra.mxu0 %v1417_v62  ;;  %573 = vmatpush2.bf16.msra.mxu1 %v1418_v63  ;;  %v1461_v62 = vld [vmem:[%s2145_s5 + $0x50] ss:$8 sps:$4 sm:$0xff]  }
  0x2e   :  { %v1464_v63 = vld [vmem:[%s2145_s5 + $0x150] ss:$8 sps:$4 sm:$0xff]  }
  0x8d   :  { %v40_v40 = vpop.xlane.xlu0 %39 }
  0x8e   :  { %v45_v41 = vmul.f32 0.00390625, %v40_v40  ;;  %v90_v40 = vrot.slane %v37_v34, %v1884_v30 }
  0x90   :  { %v1766_v42 = vsub.f32 %v1642_v0, %v45_v41  ;;  %v1769_v43 = vsub.f32 %v1647_v1, %v45_v41  ;;  %v1419_v0 = vld [vmem:[%s2144_s3 + $0x184] ss:$16 sps:$4 sm:$0xff]   ;;  %v1421_v1 = vld [vmem:[%s2144_s3 + $0x18c] ss:$16 sps:$4 sm:$0xff]   ;;  %v94_v41 = vrot.slane %v37_v34, %v1887_v31  ;;  %v1512_v34 = vld [vmem:[%s2145_s5 + $0x1d0] ss:$8 sps:$4 sm:$0xff]  }
  0x91   :  { %v43_v44 = vpop.xlane.xlu0 %42  ;;  %531 = vmatprep.subr.bf16.mxu0 %v1419_v0  ;;  %574 = vmatprep.subr.bf16.mxu1 %v1421_v1  ;;  %v1469_v0 = vld [vmem:[%s2145_s5 + $0x44] ss:$8 sps:$4 sm:$0xff]  }
  0x92   :  { %v46_v45 = vmul.f32 0.00390625, %v43_v44  ;;  %v51_v46 = vmul.f32 %v1766_v42, %v1766_v42  ;;  %v52_v47 = vmul.f32 %v1769_v43, %v1769_v43  ;;  %575 = vmatpush2.bf16.msra.mxu1 %v1424_v3  ;;  %v1472_v1 = vld [vmem:[%s2145_s5 + $0x144] ss:$8 sps:$4 sm:$0xff]   ;;  %v1470_v3 = vld [vmem:[%s2145_s5 + $0x140] ss:$8 sps:$4 sm:$0xff]  }
  0x93   :  { %576 = vmatprep.subr.bf16.mxu1 %v1427_v5  ;;  %v1478_v5 = vld [vmem:[%s2145_s5 + $0x134] ss:$8 sps:$4 sm:$0xff]  }
  0x94   :  { %v1776_v48 = vsub.f32 %v1652_v2, %v46_v45  ;;  %v1779_v49 = vsub.f32 %v1659_v4, %v46_v45  ;;  %v55_v50 = vadd.f32 %v52_v47, %v51_v46  ;;  %v1423_v2 = vld [vmem:[%s2144_s3 + $0x180] ss:$16 sps:$4 sm:$0xff]   ;;  %v1425_v4 = vld [vmem:[%s2144_s3 + $0x164] ss:$16 sps:$4 sm:$0xff]  }
  0x95   :  { %532 = vmatpush2.bf16.msra.mxu0 %v1423_v2  ;;  %v1467_v2 = vld [vmem:[%s2145_s5 + $0x40] ss:$8 sps:$4 sm:$0xff]  }
  0x96   :  { %56 = vadd.xlane.f32.xlu1 %v55_v50  ;;  %v53_v51 = vmul.f32 %v1776_v48, %v1776_v48  ;;  %v54_v52 = vmul.f32 %v1779_v49, %v1779_v49  ;;  %533 = vmatprep.subr.bf16.mxu0 %v1425_v4  ;;  %v1475_v4 = vld [vmem:[%s2145_s5 + $0x34] ss:$8 sps:$4 sm:$0xff]  }
  0x97   :  { %577 = vmatpush2.bf16.msra.mxu1 %v1430_v7  ;;  %v1476_v7 = vld [vmem:[%s2145_s5 + $0x130] ss:$8 sps:$4 sm:$0xff]  }
  0x98   :  { %v58_v53 = vadd.f32 %v54_v52, %v53_v51  ;;  %578 = vmatprep.subr.bf16.mxu1 %v1433_v9  ;;  %v1484_v9 = vld [vmem:[%s2145_s5 + $0x124] ss:$8 sps:$4 sm:$0xff]  }
  0x99   :  { %534 = vmatpush2.bf16.msra.mxu0 %v1429_v6  ;;  %v1473_v6 = vld [vmem:[%s2145_s5 + $0x30] ss:$8 sps:$4 sm:$0xff]  }
  0x9a   :  { %59 = vadd.xlane.f32.xlu1 %v58_v53  ;;  %535 = vmatprep.subr.bf16.mxu0 %v1431_v8  ;;  %v1481_v8 = vld [vmem:[%s2145_s5 + $0x24] ss:$8 sps:$4 sm:$0xff]  }
  0x9b   :  { %579 = vmatpush2.bf16.msra.mxu1 %v1436_v11  ;;  %v1482_v11 = vld [vmem:[%s2145_s5 + $0x120] ss:$8 sps:$4 sm:$0xff]  }
  0x9c   :  { %580 = vmatprep.subr.bf16.mxu1 %v1439_v13  ;;  %v1490_v13 = vld [vmem:[%s2145_s5 + $0x114] ss:$8 sps:$4 sm:$0xff]  }
  0x9d   :  { %536 = vmatpush2.bf16.msra.mxu0 %v1435_v10  ;;  %v1479_v10 = vld [vmem:[%s2145_s5 + $0x20] ss:$8 sps:$4 sm:$0xff]  }
  0x9e   :  { %537 = vmatprep.subr.bf16.mxu0 %v1437_v12  ;;  %v1487_v12 = vld [vmem:[%s2145_s5 + $0x14] ss:$8 sps:$4 sm:$0xff]  }
  0x9f   :  { %581 = vmatpush2.bf16.msra.mxu1 %v1442_v15  ;;  %v1488_v15 = vld [vmem:[%s2145_s5 + $0x110] ss:$8 sps:$4 sm:$0xff]  }
  0xa0   :  { %582 = vmatprep.subr.bf16.mxu1 %v1445_v17  ;;  %v1496_v17 = vld [vmem:[%s2145_s5 + $0x104] ss:$8 sps:$4 sm:$0xff]  }
  0xa1   :  { %538 = vmatpush2.bf16.msra.mxu0 %v1441_v14  ;;  %v1485_v14 = vld [vmem:[%s2145_s5 + $0x10] ss:$8 sps:$4 sm:$0xff]  }
  0xa2   :  { %539 = vmatprep.subr.bf16.mxu0 %v1443_v16  ;;  %v1493_v16 = vld [vmem:[%s2145_s5 + $0x4] ss:$8 sps:$4 sm:$0xff]  }
  0xa3   :  { %583 = vmatpush2.bf16.msra.mxu1 %v1448_v19  ;;  %v1494_v19 = vld [vmem:[%s2145_s5 + $0x100] ss:$8 sps:$4 sm:$0xff]  }
  0xa4   :  { %1094 = vmatprep.subr.bf16.mxu1 %v1454_v21  ;;  %v1502_v21 = vld [vmem:[%s2145_s5 + $0x1f4] ss:$8 sps:$4 sm:$0xff]  }
  0xa5   :  { %540 = vmatpush2.bf16.msra.mxu0 %v1447_v18  ;;  %v1491_v18 = vld [vmem:[%s2145_s5] ss:$8 sps:$4 sm:$0xff]  }
  0xa6   :  { %1051 = vmatprep.subr.bf16.mxu0 %v1451_v20  ;;  %v1499_v20 = vld [vmem:[%s2145_s5 + $0xf4] ss:$8 sps:$4 sm:$0xff]  }
 0x11f   :  { %v57_v22 = vpop.xlane.xlu1 %56 }
 0x120   :  { %v61_v23 = vmul.f32 0.00390625, %v57_v22  ;;  %v1497_v22 = vld [vmem:[%s2145_s5 + $0xf0] ss:$8 sps:$4 sm:$0xff]  }
 0x122   :  { %v63_v24 = vadd.f32 1e-05, %v61_v23  ;;  %v1500_v23 = vld [vmem:[%s2145_s5 + $0x1f0] ss:$8 sps:$4 sm:$0xff]  }
 0x123   :  { %v60_v25 = vpop.xlane.xlu1 %59 }
 0x124   :  { %1545 = vrsqrt.f32 %v63_v24  ;;  %v62_v26 = vmul.f32 0.00390625, %v60_v25  ;;  %v1505_v24 = vld [vmem:[%s2145_s5 + $0xe4] ss:$8 sps:$4 sm:$0xff]  }
 0x125   :  { %v1508_v25 = vld [vmem:[%s2145_s5 + $0x1e4] ss:$8 sps:$4 sm:$0xff]  }
 0x126   :  { %v64_v27 = vadd.f32 1e-05, %v62_v26  ;;  %v1503_v26 = vld [vmem:[%s2145_s5 + $0xe0] ss:$8 sps:$4 sm:$0xff]  }
 0x128   :  { %1547 = vrsqrt.f32 %v64_v27  ;;  %v1506_v27 = vld [vmem:[%s2145_s5 + $0x1e0] ss:$8 sps:$4 sm:$0xff]  }
 0x131   :  { %v1546_v33 = vpop.eup %1545 }
 0x132   :  { %v68_v35 = vmul.f32 %v1546_v33, %v1769_v43  ;;  %v67_v38 = vmul.f32 %v1546_v33, %v1766_v42  ;;  %v1449_v42 = vld [vmem:[%s2145_s5 + $0x70] ss:$8 sps:$4 sm:$0xff]  }
 0x133   :  { %v1509_v33 = vld [vmem:[%s2145_s5 + $0xd0] ss:$8 sps:$4 sm:$0xff]  }
 0x134   :  { %v83_v45 = vmul.f32 %v79_v37, %v68_v35  ;;  %v82_v47 = vmul.f32 %v75_v36, %v67_v38  ;;  %v1517_v35 = vld [vmem:[%s2145_s5 + $0xc4] ss:$8 sps:$4 sm:$0xff]   ;;  %v1518_v38 = vld [vmem:[%s2145_s5 + $0x1c0] ss:$8 sps:$4 sm:$0xff]  }
 0x135   :  { %v1548_v39 = vpop.eup %1547 }
 0x136   :  { %v70_v44 = vmul.f32 %v1548_v39, %v1779_v49  ;;  %v69_v46 = vmul.f32 %v1548_v39, %v1776_v48  ;;  %v98_v43 = vadd.f32 %v94_v41, %v83_v45  ;;  %v97_v53 = vadd.f32 %v90_v40, %v82_v47  ;;  %v1452_v49 = vld [vmem:[%s2145_s5 + $0x170] ss:$8 sps:$4 sm:$0xff]   ;;  %v1457_v48 = vld [vmem:[%s2145_s5 + $0x64] ss:$8 sps:$4 sm:$0xff]   ;;  %v1523_v39 = vld [vmem:[%s2145_s5 + $0xb4] ss:$8 sps:$4 sm:$0xff]  }
 0x137   :  { %v1529_v45 = vld [vmem:[%s2145_s5 + $0xa4] ss:$8 sps:$4 sm:$0xff]   ;;  %v1527_v47 = vld [vmem:[%s2145_s5 + $0xa0] ss:$8 sps:$4 sm:$0xff]  }
 0x138   :  { %v85_v50 = vmul.f32 %v79_v37, %v70_v44  ;;  %v84_v51 = vmul.f32 %v75_v36, %v69_v46  ;;  %v1520_v36 = vld [vmem:[%s2145_s5 + $0x1c4] ss:$8 sps:$4 sm:$0xff]   ;;  %v1515_v37 = vld [vmem:[%s2145_s5 + $0xc0] ss:$8 sps:$4 sm:$0xff]   ;;  %v1524_v44 = vld [vmem:[%s2145_s5 + $0x1b0] ss:$8 sps:$4 sm:$0xff]  }
 0x139   :  { %v1532_v46 = vld [vmem:[%s2145_s5 + $0x1a4] ss:$8 sps:$4 sm:$0xff]  }
 0x13a   :  { %v100_v52 = vadd.f32 %v94_v41, %v85_v50  ;;  %v99_v54 = vadd.f32 %v90_v40, %v84_v51  ;;  %v1526_v40 = vld [vmem:[%s2145_s5 + $0x1b4] ss:$8 sps:$4 sm:$0xff]   ;;  %v1521_v41 = vld [vmem:[%s2145_s5 + $0xb0] ss:$8 sps:$4 sm:$0xff]   ;;  %v1530_v50 = vld [vmem:[%s2145_s5 + $0x1a0] ss:$8 sps:$4 sm:$0xff]  }
 0x13b   :  { %v1535_v51 = vld [vmem:[%s2145_s5 + $0x94] ss:$8 sps:$4 sm:$0xff]  }
 0x13c   :  { %v102_v55 = vpack.c.bf16 %v100_v52, %v98_v43  ;;  %v101_v56 = vpack.c.bf16 %v99_v54, %v97_v53  ;;  %v1538_v43 = vld [vmem:[%s2145_s5 + $0x194] ss:$8 sps:$4 sm:$0xff]   ;;  %v1533_v52 = vld [vmem:[%s2145_s5 + $0x90] ss:$8 sps:$4 sm:$0xff]   ;;  %v1541_v54 = vld [vmem:[%s2145_s5 + $0x84] ss:$8 sps:$4 sm:$0xff]  }
 0x13d   :  { %v1536_v53 = vld [vmem:[%s2145_s5 + $0x190] ss:$8 sps:$4 sm:$0xff]  }
 0x13e   :  { %541 = vmatprep.mubr.bf16.mxu0 %v102_v55  ;;  %584 = vmatprep.mubr.bf16.mxu1 %v102_v55  ;;  %v1544_v55 = vld [vmem:[%s2145_s5 + $0x184] ss:$8 sps:$4 sm:$0xff]  }
 0x13f   :  { %542 = vmatmul.mubr.bf16.vlgmr.msra.gmra.mxu0 %v101_v56  ;;  %585 = vmatmul.mubr.bf16.vlgmr.msra.gmra.mxu1 %v101_v56  ;;  %v1539_v56 = vld [vmem:[%s2145_s5 + $0x80] ss:$8 sps:$4 sm:$0xff]  }
 0x140   :  { %1052 = vmatpush1.bf16.msra.mxu0 %v1449_v42  ;;  %1095 = vmatpush1.bf16.msra.mxu1 %v1452_v49  ;;  %v1542_v42 = vld [vmem:[%s2145_s5 + $0x180] ss:$8 sps:$4 sm:$0xff]   ;;  %v179_v49 = vsub.s32 2, %v1881_v29 }
 0x141   :  { %1053 = vmatprep.subr.bf16.mxu0 %v1457_v48  ;;  %1096 = vmatprep.subr.bf16.mxu1 %v1460_v57  ;;  %v167_v48 = vld [vmem:[%s2148_s4] sm:$0xf]  ;;  %v183_v57 = vsub.s32 3, %v1881_v29 }
 0x144   :  { %1054 = vmatpush1.bf16.msra.mxu0 %v1455_v58  ;;  %1097 = vmatpush1.bf16.msra.mxu1 %v1458_v59  ;;  %v172_v58 = vrot.slane %v167_v48, %v1884_v30  ;;  %v180_v59 = vrot.slane %v167_v48, %v179_v49 }
 0x145   :  { %1055 = vmatprep.subr.bf16.mxu0 %v1463_v60  ;;  %1098 = vmatprep.subr.bf16.mxu1 %v1466_v61  ;;  %v176_v60 = vrot.slane %v167_v48, %v1887_v31  ;;  %v184_v61 = vrot.slane %v167_v48, %v183_v57 }
 0x148   :  { %1056 = vmatpush1.bf16.msra.mxu0 %v1461_v62  ;;  %1099 = vmatpush1.bf16.msra.mxu1 %v1464_v63 }
 0x149   :  { %1057 = vmatprep.subr.bf16.mxu0 %v1469_v0  ;;  %1100 = vmatprep.subr.bf16.mxu1 %v1472_v1 }
 0x14c   :  { %1058 = vmatpush1.bf16.msra.mxu0 %v1467_v2  ;;  %1101 = vmatpush1.bf16.msra.mxu1 %v1470_v3 }
 0x14d   :  { %1059 = vmatprep.subr.bf16.mxu0 %v1475_v4  ;;  %1102 = vmatprep.subr.bf16.mxu1 %v1478_v5 }
 0x150   :  { %1060 = vmatpush1.bf16.msra.mxu0 %v1473_v6  ;;  %1103 = vmatpush1.bf16.msra.mxu1 %v1476_v7 }
 0x151   :  { %1061 = vmatprep.subr.bf16.mxu0 %v1481_v8  ;;  %1104 = vmatprep.subr.bf16.mxu1 %v1484_v9 }
 0x154   :  { %1062 = vmatpush1.bf16.msra.mxu0 %v1479_v10  ;;  %1105 = vmatpush1.bf16.msra.mxu1 %v1482_v11 }
 0x155   :  { %1063 = vmatprep.subr.bf16.mxu0 %v1487_v12  ;;  %1106 = vmatprep.subr.bf16.mxu1 %v1490_v13 }
 0x158   :  { %1064 = vmatpush1.bf16.msra.mxu0 %v1485_v14  ;;  %1107 = vmatpush1.bf16.msra.mxu1 %v1488_v15 }
 0x159   :  { %1065 = vmatprep.subr.bf16.mxu0 %v1493_v16  ;;  %1108 = vmatprep.subr.bf16.mxu1 %v1496_v17 }
 0x15c   :  { %1066 = vmatpush1.bf16.msra.mxu0 %v1491_v18  ;;  %1109 = vmatpush1.bf16.msra.mxu1 %v1494_v19 }
 0x15d   :  { %1067 = vmatprep.subr.bf16.mxu0 %v1499_v20  ;;  %1110 = vmatprep.subr.bf16.mxu1 %v1502_v21 }
 0x160   :  { %1068 = vmatpush2.bf16.msra.mxu0 %v1497_v22  ;;  %1111 = vmatpush2.bf16.msra.mxu1 %v1500_v23 }
 0x161   :  { %1069 = vmatprep.subr.bf16.mxu0 %v1505_v24  ;;  %1112 = vmatprep.subr.bf16.mxu1 %v1508_v25 }
 0x164   :  { %1070 = vmatpush2.bf16.msra.mxu0 %v1503_v26  ;;  %1113 = vmatpush2.bf16.msra.mxu1 %v1506_v27 }
 0x165   :  { %1071 = vmatprep.subr.bf16.mxu0 %v1511_v28  ;;  %1114 = vmatprep.subr.bf16.mxu1 %v1514_v32 }
 0x168   :  { %1072 = vmatpush2.bf16.msra.mxu0 %v1509_v33  ;;  %1115 = vmatpush2.bf16.msra.mxu1 %v1512_v34 }
 0x169   :  { %1073 = vmatprep.subr.bf16.mxu0 %v1517_v35  ;;  %1116 = vmatprep.subr.bf16.mxu1 %v1520_v36 }
 0x16c   :  { %1074 = vmatpush2.bf16.msra.mxu0 %v1515_v37  ;;  %1117 = vmatpush2.bf16.msra.mxu1 %v1518_v38 }
 0x16d   :  { %1075 = vmatprep.subr.bf16.mxu0 %v1523_v39  ;;  %1118 = vmatprep.subr.bf16.mxu1 %v1526_v40 }
 0x170   :  { %1076 = vmatpush2.bf16.msra.mxu0 %v1521_v41  ;;  %1119 = vmatpush2.bf16.msra.mxu1 %v1524_v44 }
 0x171   :  { %1077 = vmatprep.subr.bf16.mxu0 %v1529_v45  ;;  %1120 = vmatprep.subr.bf16.mxu1 %v1532_v46 }
 0x174   :  { %1078 = vmatpush2.bf16.msra.mxu0 %v1527_v47  ;;  %1121 = vmatpush2.bf16.msra.mxu1 %v1530_v50 }
 0x175   :  { %1079 = vmatprep.subr.bf16.mxu0 %v1535_v51  ;;  %1122 = vmatprep.subr.bf16.mxu1 %v1538_v43 }
 0x178   :  { %1080 = vmatpush2.bf16.msra.mxu0 %v1533_v52  ;;  %1123 = vmatpush2.bf16.msra.mxu1 %v1536_v53 }
 0x179   :  { %1081 = vmatprep.subr.bf16.mxu0 %v1541_v54  ;;  %1124 = vmatprep.subr.bf16.mxu1 %v1544_v55 }
 0x17c   :  { %1082 = vmatpush2.bf16.msra.mxu0 %v1539_v56  ;;  %1125 = vmatpush2.bf16.msra.mxu1 %v1542_v42 }
 0x1ff   :  { %v543_v62 = vpop.f32.mrf.mxu0  ;;  %v586_v63 = vpop.f32.mrf.mxu1 }
 0x200   :  { %v2096_v0 = vadd.f32 %v543_v62, %v172_v58  ;;  %v2098_v1 = vadd.f32 %v586_v63, %v180_v59 }
 0x201   :  { %v545_v2 = vpop.f32.mrf.mxu0  ;;  %v588_v3 = vpop.f32.mrf.mxu1 }
 0x202   :  { %v1281_v4 = vmul.f32 -1.442695, %v2096_v0  ;;  %v1283_v5 = vmul.f32 -1.442695, %v2098_v1  ;;  %v546_v6 = vadd.f32 %v545_v2, %v176_v60  ;;  %v589_v29 = vadd.f32 %v588_v3, %v184_v61 }
 0x203   :  { %v547_v7 = vpop.f32.mrf.mxu0  ;;  %v590_v8 = vpop.f32.mrf.mxu1 }
 0x204   :  { %1549 = vpow2.f32 %v1281_v4  ;;  %v1282_v9 = vmul.f32 -1.442695, %v546_v6  ;;  %v1284_v10 = vmul.f32 -1.442695, %v589_v29  ;;  %v548_v11 = vadd.f32 %v547_v7, %v172_v58 }
 0x205   :  { %1551 = vpow2.f32 %v1283_v5  ;;  %v591_v12 = vadd.f32 %v590_v8, %v180_v59  ;;  %v549_v13 = vpop.f32.mrf.mxu0  ;;  %v592_v14 = vpop.f32.mrf.mxu1 }
 0x206   :  { %1553 = vpow2.f32 %v1282_v9  ;;  %v1285_v15 = vmul.f32 -1.442695, %v548_v11  ;;  %v550_v16 = vadd.f32 %v549_v13, %v176_v60  ;;  %v593_v17 = vadd.f32 %v592_v14, %v184_v61  ;;  %v719_v60 = vld [vmem:[%s2149_s6] sm:$0x3] }
 0x207   :  { %1555 = vpow2.f32 %v1284_v10  ;;  %v1287_v18 = vmul.f32 -1.442695, %v591_v12  ;;  %v724_v61 = vrot.slane %v719_v60, %v1884_v30  ;;  %v728_v62 = vrot.slane %v719_v60, %v1887_v31 }
 0x208   :  { %1557 = vpow2.f32 %v1285_v15  ;;  %v1286_v19 = vmul.f32 -1.442695, %v550_v16  ;;  %v1288_v20 = vmul.f32 -1.442695, %v593_v17  ;;  %v1585_v15 = vld [vmem:[%s2143_s0] sm:$0xff] }
 0x209   :  { %1559 = vpow2.f32 %v1287_v18 }
 0x20a   :  { %1561 = vpow2.f32 %v1286_v19 }
 0x20b   :  { %1563 = vpow2.f32 %v1288_v20 }
 0x211   :  { %v1550_v21 = vpop.eup %1549 }
 0x212   :  { %v1552_v22 = vpop.eup %1551  ;;  %v619_v23 = vadd.f32 1.0, %v1550_v21 }
 0x213   :  { %v1554_v24 = vpop.eup %1553  ;;  %v621_v25 = vadd.f32 1.0, %v1552_v22 }
 0x214   :  { %v1556_v26 = vpop.eup %1555  ;;  %1565 = vrcp.f32 %v619_v23  ;;  %v620_v27 = vadd.f32 1.0, %v1554_v24  ;;  %v1587_v23 = vld [vmem:[%s2143_s0 + $0x10] sm:$0xff] }
 0x215   :  { %v1558_v28 = vpop.eup %1557  ;;  %1567 = vrcp.f32 %v621_v25  ;;  %v622_v32 = vadd.f32 1.0, %v1556_v26  ;;  %v1588_v25 = vld [vmem:[%s2143_s0 + $0x18] sm:$0xff] }
 0x216   :  { %v1560_v33 = vpop.eup %1559  ;;  %1569 = vrcp.f32 %v620_v27  ;;  %v623_v34 = vadd.f32 1.0, %v1558_v28 }
 0x217   :  { %v1562_v35 = vpop.eup %1561  ;;  %1571 = vrcp.f32 %v622_v32  ;;  %v625_v36 = vadd.f32 1.0, %v1560_v33 }
 0x218   :  { %v1564_v37 = vpop.eup %1563  ;;  %1573 = vrcp.f32 %v623_v34  ;;  %v624_v38 = vadd.f32 1.0, %v1562_v35 }
 0x219   :  { %1575 = vrcp.f32 %v625_v36  ;;  %v626_v39 = vadd.f32 1.0, %v1564_v37 }
 0x21a   :  { %1577 = vrcp.f32 %v624_v38 }
 0x21b   :  { %1579 = vrcp.f32 %v626_v39 }
 0x221   :  { %v1566_v40 = vpop.eup %1565 }
 0x222   :  { %v1568_v41 = vpop.eup %1567  ;;  %v643_v55 = vmul.f32 %v1566_v40, %v2096_v0 }
 0x223   :  { %v1570_v44 = vpop.eup %1569  ;;  %v645_v49 = vmul.f32 %v1568_v41, %v2098_v1 }
 0x224   :  { %v1572_v45 = vpop.eup %1571  ;;  %v644_v52 = vmul.f32 %v1570_v44, %v546_v6 }
 0x225   :  { %v1574_v46 = vpop.eup %1573  ;;  %v646_v56 = vmul.f32 %v1572_v45, %v589_v29 }
 0x226   :  { %v1576_v47 = vpop.eup %1575  ;;  %v647_v51 = vmul.f32 %v1574_v46, %v548_v11 }
 0x227   :  { %v1578_v50 = vpop.eup %1577  ;;  %v649_v53 = vmul.f32 %v1576_v47, %v591_v12 }
 0x228   :  { %v1580_v43 = vpop.eup %1579  ;;  %v648_v54 = vmul.f32 %v1578_v50, %v550_v16  ;;  %v651_v57 = vpack.c.bf16 %v647_v51, %v643_v55  ;;  %v1146_v55 = vld [vmem:[%s2151_s8] sm:$0x3] }
 0x229   :  { %v650_v42 = vmul.f32 %v1580_v43, %v593_v17  ;;  %v653_v59 = vpack.c.bf16 %v649_v53, %v645_v49  ;;  %v1586_v17 = vld [vmem:[%s2143_s0 + $0x8] sm:$0xff] }
 0x22a   :  { %v652_v48 = vpack.c.bf16 %v648_v54, %v644_v52  ;;  %v1145_v54 = vld [vmem:[%s2150_s7] sm:$0x3] }
 0x22b   :  { %v654_v58 = vpack.c.bf16 %v650_v42, %v646_v56  ;;  %v1183_v56 = vrot.slane %v1145_v54, %v1884_v30  ;;  %v1187_v42 = vrot.slane %v1145_v54, %v1887_v31 }
 0x22c   :  { %1083 = vmatprep.mubr.bf16.mxu0 %v652_v48  ;;  %v1198_v48 = vrot.slane %v1146_v55, %v1884_v30 }
 0x22d   :  { %1126 = vmatprep.mubr.bf16.mxu1 %v654_v58  ;;  %1084 = vmatmul.mubr.bf16.vlgmr.msra.gmra.mxu0 %v651_v57  ;;  %v1202_v57 = vrot.slane %v1146_v55, %v1887_v31 }
 0x22e   :  { %1127 = vmatmul.mubr.bf16.vlgmr.msra.gmra.mxu1 %v653_v59 }
 0x2ed   :  { %v1085_v63 = vpop.f32.mrf.mxu0 }
 0x2ee   :  { %v1086_v0 = vadd.f32 %v1085_v63, %v724_v61  ;;  %v1128_v2 = vpop.f32.mrf.mxu1 }
 0x2ef   :  { %v1087_v1 = vpop.f32.mrf.mxu0 }
 0x2f0   :  { %v1129_v3 = vadd.f32 %v1128_v2, %v1086_v0  ;;  %v1088_v4 = vadd.f32 %v1087_v1, %v728_v62  ;;  %v1130_v5 = vpop.f32.mrf.mxu1 }
 0x2f1   :  { %v1089_v6 = vpop.f32.mrf.mxu0 }
 0x2f2   :  { %v1137_v29 = vmul.f32 0.5, %v1129_v3  ;;  %v1131_v7 = vadd.f32 %v1130_v5, %v1088_v4  ;;  %v1090_v8 = vadd.f32 %v1089_v6, %v724_v61  ;;  %v1132_v9 = vpop.f32.mrf.mxu1 }
 0x2f3   :  { %v1091_v10 = vpop.f32.mrf.mxu0 }
 0x2f4   :  { %v1138_v11 = vmul.f32 0.5, %v1131_v7  ;;  %v1133_v12 = vadd.f32 %v1132_v9, %v1090_v8  ;;  %v1092_v13 = vadd.f32 %v1091_v10, %v728_v62  ;;  %v1134_v14 = vpop.f32.mrf.mxu1  ;;  %v1141_v16 = vadd.f32 %v1585_v15, %v1137_v29 }
 0x2f6   :  { %v1142_v18 = vadd.f32 %v1586_v17, %v1138_v11  ;;  %v1139_v19 = vmul.f32 0.5, %v1133_v12  ;;  %v1135_v20 = vadd.f32 %v1134_v14, %v1092_v13 }
 0x2f8   :  { %v1140_v21 = vmul.f32 0.5, %v1135_v20  ;;  %v1147_v22 = vadd.f32 %v1142_v18, %v1141_v16  ;;  %v1143_v24 = vadd.f32 %v1587_v23, %v1139_v19 }
 0x2fa   :  { %v1144_v26 = vadd.f32 %v1588_v25, %v1140_v21  ;;  %1148 = vadd.xlane.f32.xlu0 %v1147_v22 }
 0x2fc   :  { %v1150_v27 = vadd.f32 %v1144_v26, %v1143_v24 }
 0x2fe   :  { %1151 = vadd.xlane.f32.xlu1 %v1150_v27 }
 0x383   :  { %v1149_v28 = vpop.xlane.xlu0 %1148 }
 0x384   :  { %v1153_v32 = vmul.f32 0.00390625, %v1149_v28 }
 0x386   :  { %v1155_v33 = vsub.f32 %v1141_v16, %v1153_v32  ;;  %v1156_v34 = vsub.f32 %v1142_v18, %v1153_v32 }
 0x387   :  { %v1152_v35 = vpop.xlane.xlu1 %1151 }
 0x388   :  { %v1154_v36 = vmul.f32 0.00390625, %v1152_v35  ;;  %v1159_v37 = vmul.f32 %v1155_v33, %v1155_v33  ;;  %v1160_v38 = vmul.f32 %v1156_v34, %v1156_v34 }
 0x38a   :  { %v1157_v39 = vsub.f32 %v1143_v24, %v1154_v36  ;;  %v1158_v40 = vsub.f32 %v1144_v26, %v1154_v36  ;;  %v1163_v41 = vadd.f32 %v1160_v38, %v1159_v37 }
 0x38c   :  { %1164 = vadd.xlane.f32.xlu0 %v1163_v41  ;;  %v1161_v44 = vmul.f32 %v1157_v39, %v1157_v39  ;;  %v1162_v45 = vmul.f32 %v1158_v40, %v1158_v40 }
 0x38e   :  { %v1166_v46 = vadd.f32 %v1162_v45, %v1161_v44 }
 0x390   :  { %1167 = vadd.xlane.f32.xlu1 %v1166_v46 }
 0x415   :  { %v1165_v47 = vpop.xlane.xlu0 %1164 }
 0x416   :  { %v1169_v50 = vmul.f32 0.00390625, %v1165_v47 }
 0x418   :  { %v1171_v51 = vadd.f32 1e-05, %v1169_v50 }
 0x419   :  { %v1168_v43 = vpop.xlane.xlu1 %1167 }
 0x41a   :  { %1581 = vrsqrt.f32 %v1171_v51  ;;  %v1170_v52 = vmul.f32 0.00390625, %v1168_v43 }
 0x41c   :  { %v1172_v53 = vadd.f32 1e-05, %v1170_v52 }
 0x41e   :  { %1583 = vrsqrt.f32 %v1172_v53 }
 0x427   :  { %v1582_v49 = vpop.eup %1581 }
 0x428   :  { %v1175_v58 = vmul.f32 %v1582_v49, %v1155_v33  ;;  %v1176_v59 = vmul.f32 %v1582_v49, %v1156_v34 }
 0x42a   :  { %v1190_v60 = vmul.f32 %v1183_v56, %v1175_v58  ;;  %v1191_v61 = vmul.f32 %v1187_v42, %v1176_v59 }
 0x42b   :  { %v1584_v62 = vpop.eup %1583 }
 0x42c   :  { %v1205_v63 = vadd.f32 %v1198_v48, %v1190_v60  ;;  %v1206_v0 = vadd.f32 %v1202_v57, %v1191_v61  ;;  %v1177_v2 = vmul.f32 %v1584_v62, %v1157_v39  ;;  %v1178_v1 = vmul.f32 %v1584_v62, %v1158_v40 }
 0x42e   :  { %1209 = vst [vmem:[%s2152_s9] sm:$0xff] %v1205_v63  ;;  %1210 = vst [vmem:[%s2152_s9 + $0x8] sm:$0xff] %v1206_v0  ;;  %v1192_v30 = vmul.f32 %v1183_v56, %v1177_v2  ;;  %v1193_v3 = vmul.f32 %v1187_v42, %v1178_v1 }
 0x430   :  { %v1207_v31 = vadd.f32 %v1198_v48, %v1192_v30  ;;  %v1208_v4 = vadd.f32 %v1202_v57, %v1193_v3 }
 0x432   :  { %1211 = vst [vmem:[%s2152_s9 + $0x10] sm:$0xff] %v1207_v31  ;;  %1212 = vst [vmem:[%s2152_s9 + $0x18] sm:$0xff] %v1208_v4 }

</bundles_post_ra>
